<compile_context>
chip_gen: v5e
topology: v5e:2x2
jax: 0.10.0
libtpu: 0.0.40
codegen_flags: <defaults>
</compile_context>

<pallas_src>
import functools
import math

import jax
import jax.numpy as jnp
import numpy as np
from jax import lax
from jax.experimental import pallas as pl
from jax.experimental.pallas import tpu as pltpu


# ---------------------------------------------------------------------------
# Kernel: one grid step = one (batch block, time chunk). Gate order: i, f, g, o.
# ---------------------------------------------------------------------------
def _rnn_kernel(x_ref, h0_ref, c0_ref, *rest, n_layer, hidden_dim, time_block, seq_len):
    # rest = [W_ih_0, W_hh_0, b_0, ..., W_ih_{L-1}, W_hh_{L-1}, b_{L-1},
    #         W_head, b_head, out_ref, hn_ref, cn_ref,
    #         h_scr, c_scr, xproj_scr, act_scr]
    H = hidden_dim
    Tc = time_block
    lw = rest[:3 * n_layer]
    wo_ref, bo_ref = rest[3 * n_layer], rest[3 * n_layer + 1]
    out_ref, hn_ref, cn_ref = rest[3 * n_layer + 2:3 * n_layer + 5]
    h_scr, c_scr, xproj_scr, act_scr = rest[3 * n_layer + 5:3 * n_layer + 9]

    Bc = x_ref.shape[0]
    t_blk = pl.program_id(1)
    # Padded tail steps must not advance the recurrent state (so h_n/c_n match the true
    # sequence). Static flag: only needed when T was padded up to a multiple of Tc.
    needs_mask = (seq_len % Tc) != 0

    @pl.when(t_blk == 0)
    def _init():
        h_scr[...] = h0_ref[...]
        c_scr[...] = c0_ref[...]

    def project_chunk(read_row, w_ref, b_ref):
        # Batched-over-time input projection for one layer: Bc matmuls with M = Tc
        # (instead of Tc matmuls with M = Bc). Results stored time-major so the
        # recurrence reads one (Bc, 4H) slab per step with a leading-dim index.
        w = w_ref[...]                                   # bf16 (D_l, 4H), local hoist
        b = b_ref[...]                                   # f32  (1, 4H)
        for bi in range(Bc):
            xb = read_row(bi).astype(jnp.bfloat16)       # (Tc, D_l)
            xproj_scr[:, bi, :] = (
                jnp.dot(xb, w, preferred_element_type=jnp.float32) + b)

    def run_layer(l):
        whh_ref = lw[3 * l + 1]

        def step(t, carry):
            h_prev = h_scr[l]                            # (Bc, H) f32
            c_prev = c_scr[l]
            # gates = (x_t @ W_ih + b)  [precomputed]  +  h_{t-1} @ W_hh
            g = xproj_scr[t] + jnp.dot(h_prev.astype(jnp.bfloat16), whh_ref[...],
                                       preferred_element_type=jnp.float32)
            i_g = jax.nn.sigmoid(g[:, 0 * H:1 * H])
            f_g = jax.nn.sigmoid(g[:, 1 * H:2 * H])
            g_g = jnp.tanh(g[:, 2 * H:3 * H])
            o_g = jax.nn.sigmoid(g[:, 3 * H:4 * H])
            c_new = f_g * c_prev + i_g * g_g
            h_new = o_g * jnp.tanh(c_new)
            if needs_mask:
                valid = (t_blk * Tc + t) < seq_len
                h_new = jnp.where(valid, h_new, h_prev)
                c_new = jnp.where(valid, c_new, c_prev)
            h_scr[l] = h_new
            c_scr[l] = c_new
            act_scr[t] = h_new                           # chunk activations (VMEM only)
            return carry

        # Partial unroll: LLO visibility without a whole-chunk straight-line region.
        lax.fori_loop(0, Tc, step, 0, unroll=min(8, Tc))

    # Layer 0 consumes the x chunk; layers >= 1 consume the previous layer's chunk
    # activations (never round-trip through HBM).
    project_chunk(lambda bi: x_ref[bi], lw[0], lw[2])
    run_layer(0)
    for l in range(1, n_layer):
        project_chunk(lambda bi: act_scr[:, bi, :], lw[3 * l], lw[3 * l + 2])
        run_layer(l)

    # Fused voice||song head, out of the timestep loop: one (Tc, H) @ (H, 2*O) matmul
    # per batch row, written as one (Tc, 2*O) slab straight into the batch-major block.
    w_o = wo_ref[...]
    b_o = bo_ref[...]
    for bi in range(Bc):
        hb = act_scr[:, bi, :].astype(jnp.bfloat16)      # (Tc, H)
        out_ref[bi] = (jnp.dot(hb, w_o, preferred_element_type=jnp.float32)
                       + b_o).astype(out_ref.dtype)

    # h_n/c_n blocks stay resident across the sequential ("arbitrary") time axis and
    # are written once on the last time chunk. Do NOT mark the time axis "parallel".
    @pl.when(t_blk == pl.num_programs(1) - 1)
    def _finalize():
        hn_ref[...] = h_scr[...]
        cn_ref[...] = c_scr[...]


# ---------------------------------------------------------------------------
# Wrapper
# ---------------------------------------------------------------------------
def rnn_forward(params, x, h_state, *, time_block=64, batch_block=None):
    """x: (B, T, in_dim); h_state = (h0, c0), each (n_layer, B, H).
    Returns (out (B, T, 2*out_dim), (h_n, c_n))."""
    h0, c0 = h_state
    n_layer, B, H = h0.shape
    _, T, D_in = x.shape
    w_head, b_head = params["head"]
    O2 = w_head.shape[1]

    # Time chunking. A chunk smaller than the (padded) time extent must be a multiple
    # of 8 (sublane rule); instead of degrading Tc, pad T up and mask the tail.
    if T <= time_block:
        Tc, T_pad = T, T
    else:
        Tc = max(8, (min(time_block, T) // 8) * 8)
        T_pad = ((T + Tc - 1) // Tc) * Tc
    x_in = x if T_pad == T else jnp.pad(x, ((0, 0), (0, T_pad - T), (0, 0)))

    # Batch blocking: only useful to shard across TensorCores (v7x). A partial block
    # must divide B and stay sublane-aligned; otherwise keep the whole batch.
    Bc = B
    if batch_block is not None and 0 < int(batch_block) < B:
        cand = int(batch_block)
        if B % cand == 0 and cand % 8 == 0:
            Bc = cand

    in_specs = [
        pl.BlockSpec((Bc, Tc, D_in), lambda b, t: (b, t, 0)),        # x chunk
        pl.BlockSpec((n_layer, Bc, H), lambda b, t: (0, b, 0)),      # h0
        pl.BlockSpec((n_layer, Bc, H), lambda b, t: (0, b, 0)),      # c0
    ]
    args = [x_in, h0, c0]
    for w_ih, w_hh, bias in params["lstm"]:
        in_specs += [pl.BlockSpec(w_ih.shape, lambda b, t: (0, 0)),
                     pl.BlockSpec(w_hh.shape, lambda b, t: (0, 0)),
                     pl.BlockSpec(bias.shape, lambda b, t: (0, 0))]
        args += [w_ih, w_hh, bias]
    in_specs += [pl.BlockSpec(w_head.shape, lambda b, t: (0, 0)),
                 pl.BlockSpec(b_head.shape, lambda b, t: (0, 0))]
    args += [w_head, b_head]

    out_shapes = (
        jax.ShapeDtypeStruct((B, T_pad, O2), jnp.float32),
        jax.ShapeDtypeStruct((n_layer, B, H), jnp.float32),
        jax.ShapeDtypeStruct((n_layer, B, H), jnp.float32),
    )
    out_specs = (
        pl.BlockSpec((Bc, Tc, O2), lambda b, t: (b, t, 0)),          # fused head output
        pl.BlockSpec((n_layer, Bc, H), lambda b, t: (0, b, 0)),      # h_n
        pl.BlockSpec((n_layer, Bc, H), lambda b, t: (0, b, 0)),      # c_n
    )

    # VMEM budget: resident weights + (double-buffered) x/out/state blocks + scratches.
    w_bytes = sum(int(np.prod(a.shape)) * a.dtype.itemsize
                  for trip in params["lstm"] for a in trip)
    w_bytes += int(np.prod(w_head.shape)) * w_head.dtype.itemsize
    w_bytes += int(np.prod(b_head.shape)) * b_head.dtype.itemsize
    io_bytes = Bc * Tc * (D_in + O2) * 4 + 4 * n_layer * Bc * H * 4
    scr_bytes = (2 * n_layer * Bc * H + Tc * Bc * 5 * H) * 4
    vmem_limit = int(min(64 * 2 ** 20,
                         max(32 * 2 ** 20, 2 * (w_bytes + io_bytes) + scr_bytes)))

    kernel = functools.partial(_rnn_kernel, n_layer=n_layer, hidden_dim=H,
                               time_block=Tc, seq_len=T)

    out_pad, h_n, c_n = pl.pallas_call(
        kernel,
        out_shape=out_shapes,
        grid_spec=pltpu.PrefetchScalarGridSpec(
            num_scalar_prefetch=0,
            grid=(B // Bc, T_pad // Tc),
            in_specs=in_specs,
            out_specs=out_specs,
            scratch_shapes=[
                pltpu.VMEM((n_layer, Bc, H), jnp.float32),      # h state
                pltpu.VMEM((n_layer, Bc, H), jnp.float32),      # c state
                pltpu.VMEM((Tc, Bc, 4 * H), jnp.float32),       # chunk input projection
                pltpu.VMEM((Tc, Bc, H), jnp.float32),           # chunk activations
            ]),
        compiler_params=pltpu.CompilerParams(
            dimension_semantics=("parallel", "arbitrary"),      # batch ||, time serial
            vmem_limit_bytes=vmem_limit),
    )(*args)

    out = out_pad if T_pad == T else out_pad[:, :T, :]
    return out, (h_n, c_n)


# ---------------------------------------------------------------------------
# Parameter setup (PyTorch-style init; weights pre-transposed + pre-cast to bf16).
# ---------------------------------------------------------------------------
def init_params(key, in_dim, hidden_dim, n_layer, out_dim):
    k = 1.0 / math.sqrt(hidden_dim)
    params = {"lstm": [], "head": None}
    for layer in range(n_layer):
        d_in = in_dim if layer == 0 else hidden_dim
        key, k1, k2, k3, k4 = jax.random.split(key, 5)
        w_ih = jax.random.uniform(k1, (4 * hidden_dim, d_in), jnp.float32, -k, k)
        w_hh = jax.random.uniform(k2, (4 * hidden_dim, hidden_dim), jnp.float32, -k, k)
        b_ih = jax.random.uniform(k3, (4 * hidden_dim,), jnp.float32, -k, k)
        b_hh = jax.random.uniform(k4, (4 * hidden_dim,), jnp.float32, -k, k)
        params["lstm"].append((
            w_ih.T.astype(jnp.bfloat16),                   # (d_in, 4H) bf16
            w_hh.T.astype(jnp.bfloat16),                   # (H, 4H)   bf16
            (b_ih + b_hh).reshape(1, 4 * hidden_dim),      # (1, 4H)   f32
        ))
    key, k1, k2, k3, k4 = jax.random.split(key, 5)
    w_v = jax.random.uniform(k1, (out_dim, hidden_dim), jnp.float32, -k, k)
    b_v = jax.random.uniform(k2, (out_dim,), jnp.float32, -k, k)
    w_s = jax.random.uniform(k3, (out_dim, hidden_dim), jnp.float32, -k, k)
    b_s = jax.random.uniform(k4, (out_dim,), jnp.float32, -k, k)
    w_head = jnp.concatenate([w_v.T, w_s.T], axis=1).astype(jnp.bfloat16)  # (H, 2*O)
    b_head = jnp.concatenate([b_v, b_s]).reshape(1, 2 * out_dim)           # f32
    params["head"] = (w_head, b_head)
    return params


# ---------------------------------------------------------------------------
# Pure-JAX reference (optionally matching the kernel's bf16 matmul operands).
# ---------------------------------------------------------------------------
def rnn_forward_ref(params, x, h_state, *, match_kernel_precision=False):
    h0, c0 = h_state
    n_layer, B, H = h0.shape

    def cast_act(v):
        return v.astype(jnp.bfloat16) if match_kernel_precision else v

    def cast_w(w):
        return w if match_kernel_precision else w.astype(jnp.float32)

    layer_in = x
    h_ns, c_ns = [], []
    for layer in range(n_layer):
        w_ih, w_hh, bias = params["lstm"][layer]
        w_ih_c, w_hh_c = cast_w(w_ih), cast_w(w_hh)

        def step(carry, x_t, w_ih_c=w_ih_c, w_hh_c=w_hh_c, bias=bias):
            h, c = carry
            gates = (jnp.dot(cast_act(x_t), w_ih_c, preferred_element_type=jnp.float32)
                     + bias
                     + jnp.dot(cast_act(h), w_hh_c, preferred_element_type=jnp.float32))
            i_g = jax.nn.sigmoid(gates[:, 0 * H:1 * H])
            f_g = jax.nn.sigmoid(gates[:, 1 * H:2 * H])
            g_g = jnp.tanh(gates[:, 2 * H:3 * H])
            o_g = jax.nn.sigmoid(gates[:, 3 * H:4 * H])
            c_new = f_g * c + i_g * g_g
            h_new = o_g * jnp.tanh(c_new)
            return (h_new, c_new), h_new

        (h_n, c_n), outs = lax.scan(step, (h0[layer], c0[layer]),
                                    jnp.transpose(layer_in, (1, 0, 2)))
        layer_in = jnp.transpose(outs, (1, 0, 2))
        h_ns.append(h_n)
        c_ns.append(c_n)

    w_head, b_head = params["head"]
    out = (jnp.dot(cast_act(layer_in), cast_w(w_head),
                   preferred_element_type=jnp.float32) + b_head)
    return out, (jnp.stack(h_ns), jnp.stack(c_ns))


if __name__ == "__main__":
    in_dim, hidden_dim, n_layer, out_dim = 4, 32, 2, 8
    B, T = 2, 8

    key = jax.random.PRNGKey(0)
    k_p, k_x, k_h, k_c, k_x2 = jax.random.split(key, 5)
    params = init_params(k_p, in_dim, hidden_dim, n_layer, out_dim)
    x = jax.random.normal(k_x, (B, T, in_dim), jnp.float32)
    h0 = jax.random.normal(k_h, (n_layer, B, hidden_dim), jnp.float32)
    c0 = jax.random.normal(k_c, (n_layer, B, hidden_dim), jnp.float32)

    out, (h_n, c_n) = rnn_forward(params, x, (h0, c0))
    out, h_n, c_n = jax.block_until_ready((out, h_n, c_n))
    assert out.shape == (B, T, 2 * out_dim)
    assert h_n.shape == (n_layer, B, hidden_dim)
    assert c_n.shape == (n_layer, B, hidden_dim)

    # Tight check vs a reference using the same bf16 matmul operands.
    out_m, (h_m, c_m) = rnn_forward_ref(params, x, (h0, c0), match_kernel_precision=True)
    np.testing.assert_allclose(np.asarray(out), np.asarray(out_m), rtol=2e-3, atol=2e-3)
    np.testing.assert_allclose(np.asarray(h_n), np.asarray(h_m), rtol=2e-3, atol=2e-3)
    np.testing.assert_allclose(np.asarray(c_n), np.asarray(c_m), rtol=2e-3, atol=2e-3)

    # Loose check vs an f32-activation reference (difference = bf16 operand rounding).
    out_f, (h_f, c_f) = rnn_forward_ref(params, x, (h0, c0))
    np.testing.assert_allclose(np.asarray(out), np.asarray(out_f), rtol=5e-2, atol=5e-2)
    np.testing.assert_allclose(np.asarray(h_n), np.asarray(h_f), rtol=5e-2, atol=5e-2)
    np.testing.assert_allclose(np.asarray(c_n), np.asarray(c_f), rtol=5e-2, atol=5e-2)

    # Second config exercises time padding + tail masking + multi-chunk state carry:
    # T=12 with time_block=8 -> Tc=8, padded to 16, last 4 steps masked.
    T2 = 12
    x2 = jax.random.normal(k_x2, (B, T2, in_dim), jnp.float32)
    out2, (h2, c2) = rnn_forward(params, x2, (h0, c0), time_block=8)
    out2, h2, c2 = jax.block_until_ready((out2, h2, c2))
    assert out2.shape == (B, T2, 2 * out_dim)
    out2_m, (h2_m, c2_m) = rnn_forward_ref(params, x2, (h0, c0),
                                           match_kernel_precision=True)
    np.testing.assert_allclose(np.asarray(out2), np.asarray(out2_m), rtol=2e-3, atol=2e-3)
    np.testing.assert_allclose(np.asarray(h2), np.asarray(h2_m), rtol=2e-3, atol=2e-3)
    np.testing.assert_allclose(np.asarray(c2), np.asarray(c2_m), rtol=2e-3, atol=2e-3)

    print("KERNEL_OK")
</pallas_src>

<mosaic_0001>
module attributes {stable_mosaic.version = 11 : i64} {
  func.func @_rnn_kernel(%arg0: i32, %arg1: i32, %arg2: memref<2x8x4xf32, #tpu.memory_space<vmem>>, %arg3: memref<2x2x32xf32, #tpu.memory_space<vmem>>, %arg4: memref<2x2x32xf32, #tpu.memory_space<vmem>>, %arg5: memref<4x128xbf16, #tpu.memory_space<vmem>>, %arg6: memref<32x128xbf16, #tpu.memory_space<vmem>>, %arg7: memref<1x128xf32, #tpu.memory_space<vmem>>, %arg8: memref<32x128xbf16, #tpu.memory_space<vmem>>, %arg9: memref<32x128xbf16, #tpu.memory_space<vmem>>, %arg10: memref<1x128xf32, #tpu.memory_space<vmem>>, %arg11: memref<32x16xbf16, #tpu.memory_space<vmem>>, %arg12: memref<1x16xf32, #tpu.memory_space<vmem>>, %arg13: memref<2x8x16xf32, #tpu.memory_space<vmem>>, %arg14: memref<2x2x32xf32, #tpu.memory_space<vmem>>, %arg15: memref<2x2x32xf32, #tpu.memory_space<vmem>>, %arg16: memref<2x2x32xf32, #tpu.memory_space<vmem>>, %arg17: memref<2x2x32xf32, #tpu.memory_space<vmem>>, %arg18: memref<8x2x128xf32, #tpu.memory_space<vmem>>, %arg19: memref<8x2x32xf32, #tpu.memory_space<vmem>>) attributes {dimension_semantics = [#tpu.dimension_semantics<parallel>, #tpu.dimension_semantics<arbitrary>], iteration_bounds = array<i64: 1, 1>, scalar_prefetch = 0 : i64, scratch_operands = 4 : i64, tpu.core_type = #tpu.core_type<tc>, window_params = [{transform_indices = @transform_0, window_bounds = array<i64: 2, 8, 4>}, {transform_indices = @transform_1, window_bounds = array<i64: 2, 2, 32>}, {transform_indices = @transform_2, window_bounds = array<i64: 2, 2, 32>}, {pipeline_mode = #tpu.pipeline_mode<synchronous>, transform_indices = @transform_3, window_bounds = array<i64: 4, 128>}, {pipeline_mode = #tpu.pipeline_mode<synchronous>, transform_indices = @transform_4, window_bounds = array<i64: 32, 128>}, {pipeline_mode = #tpu.pipeline_mode<synchronous>, transform_indices = @transform_5, window_bounds = array<i64: 1, 128>}, {pipeline_mode = #tpu.pipeline_mode<synchronous>, transform_indices = @transform_6, window_bounds = array<i64: 32, 128>}, {pipeline_mode = #tpu.pipeline_mode<synchronous>, transform_indices = @transform_7, window_bounds = array<i64: 32, 128>}, {pipeline_mode = #tpu.pipeline_mode<synchronous>, transform_indices = @transform_8, window_bounds = array<i64: 1, 128>}, {pipeline_mode = #tpu.pipeline_mode<synchronous>, transform_indices = @transform_9, window_bounds = array<i64: 32, 16>}, {pipeline_mode = #tpu.pipeline_mode<synchronous>, transform_indices = @transform_10, window_bounds = array<i64: 1, 16>}, {transform_indices = @transform_11, window_bounds = array<i64: 2, 8, 16>}, {transform_indices = @transform_12, window_bounds = array<i64: 2, 2, 32>}, {transform_indices = @transform_13, window_bounds = array<i64: 2, 2, 32>}]} {
    %c0_i32 = arith.constant 0 : i32
    %0 = arith.cmpi eq, %arg1, %c0_i32 : i32
    %1 = arith.extui %0 : i1 to i32
    %c0_i32_0 = arith.constant 0 : i32
    %2 = arith.cmpi ne, %1, %c0_i32_0 : i32
    scf.if %2 {
      %c0_416 = arith.constant 0 : index
      %c0_417 = arith.constant 0 : index
      %c0_418 = arith.constant 0 : index
      %802 = vector.load %arg3[%c0_416, %c0_417, %c0_418] : memref<2x2x32xf32, #tpu.memory_space<vmem>>, vector<2x2x32xf32>
      %c0_419 = arith.constant 0 : index
      %c0_420 = arith.constant 0 : index
      %c0_421 = arith.constant 0 : index
      %803 = vector.load %arg16[%c0_419, %c0_420, %c0_421] : memref<2x2x32xf32, #tpu.memory_space<vmem>>, vector<2x2x32xf32>
      tpu.vector_store %arg16[%c0_419, %c0_420, %c0_421], %802 {strides = array<i32>} : memref<2x2x32xf32, #tpu.memory_space<vmem>>, vector<2x2x32xf32>,
      %c0_422 = arith.constant 0 : index
      %c0_423 = arith.constant 0 : index
      %c0_424 = arith.constant 0 : index
      %804 = vector.load %arg4[%c0_422, %c0_423, %c0_424] : memref<2x2x32xf32, #tpu.memory_space<vmem>>, vector<2x2x32xf32>
      %c0_425 = arith.constant 0 : index
      %c0_426 = arith.constant 0 : index
      %c0_427 = arith.constant 0 : index
      %805 = vector.load %arg17[%c0_425, %c0_426, %c0_427] : memref<2x2x32xf32, #tpu.memory_space<vmem>>, vector<2x2x32xf32>
      tpu.vector_store %arg17[%c0_425, %c0_426, %c0_427], %804 {strides = array<i32>} : memref<2x2x32xf32, #tpu.memory_space<vmem>>, vector<2x2x32xf32>,
    } else {
    }
    %c0 = arith.constant 0 : index
    %c0_1 = arith.constant 0 : index
    %3 = vector.load %arg5[%c0, %c0_1] : memref<4x128xbf16, #tpu.memory_space<vmem>>, vector<4x128xbf16>
    %c0_2 = arith.constant 0 : index
    %c0_3 = arith.constant 0 : index
    %4 = vector.load %arg7[%c0_2, %c0_3] : memref<1x128xf32, #tpu.memory_space<vmem>>, vector<1x128xf32>
    %c0_4 = arith.constant 0 : index
    %c0_5 = arith.constant 0 : index
    %c0_6 = arith.constant 0 : index
    %5 = vector.load %arg2[%c0_4, %c0_5, %c0_6] : memref<2x8x4xf32, #tpu.memory_space<vmem>>, vector<1x8x4xf32>
    %6 = vector.shape_cast %5 : vector<1x8x4xf32> to vector<8x4xf32>
    %7 = arith.truncf %6 : vector<8x4xf32> to vector<8x4xbf16>
    %cst = arith.constant dense<0.000000e+00> : vector<8x128xf32>
    %8 = tpu.matmul %7, %3, %cst {dimension_numbers = #tpu.dot_dimension_numbers<[1], [0], [0], [1], [0, 0, 1, 1], [], []>} : vector<8x4xbf16>, vector<4x128xbf16>, vector<8x128xf32> -> vector<8x128xf32>
    %9 = vector.broadcast %4 : vector<1x128xf32> to vector<8x128xf32>
    %10 = arith.addf %8, %9 : vector<8x128xf32>
    %c0_7 = arith.constant 0 : index
    %c0_8 = arith.constant 0 : index
    %c0_9 = arith.constant 0 : index
    %11 = vector.load %arg18[%c0_7, %c0_8, %c0_9] : memref<8x2x128xf32, #tpu.memory_space<vmem>>, vector<8x1x128xf32>
    %12 = vector.shape_cast %11 : vector<8x1x128xf32> to vector<8x128xf32>
    %13 = vector.shape_cast %10 : vector<8x128xf32> to vector<8x1x128xf32>
    tpu.vector_store %arg18[%c0_7, %c0_8, %c0_9], %13 {strides = array<i32>} : memref<8x2x128xf32, #tpu.memory_space<vmem>>, vector<8x1x128xf32>,
    %c1 = arith.constant 1 : index
    %c0_10 = arith.constant 0 : index
    %c0_11 = arith.constant 0 : index
    %14 = vector.load %arg2[%c1, %c0_10, %c0_11] : memref<2x8x4xf32, #tpu.memory_space<vmem>>, vector<1x8x4xf32>
    %15 = vector.shape_cast %14 : vector<1x8x4xf32> to vector<8x4xf32>
    %16 = arith.truncf %15 : vector<8x4xf32> to vector<8x4xbf16>
    %cst_12 = arith.constant dense<0.000000e+00> : vector<8x128xf32>
    %17 = tpu.matmul %16, %3, %cst_12 {dimension_numbers = #tpu.dot_dimension_numbers<[1], [0], [0], [1], [0, 0, 1, 1], [], []>} : vector<8x4xbf16>, vector<4x128xbf16>, vector<8x128xf32> -> vector<8x128xf32>
    %18 = vector.broadcast %4 : vector<1x128xf32> to vector<8x128xf32>
    %19 = arith.addf %17, %18 : vector<8x128xf32>
    %c0_13 = arith.constant 0 : index
    %c1_14 = arith.constant 1 : index
    %c0_15 = arith.constant 0 : index
    %20 = vector.load %arg18[%c0_13, %c1_14, %c0_15] : memref<8x2x128xf32, #tpu.memory_space<vmem>>, vector<8x1x128xf32>
    %21 = vector.shape_cast %20 : vector<8x1x128xf32> to vector<8x128xf32>
    %22 = vector.shape_cast %19 : vector<8x128xf32> to vector<8x1x128xf32>
    tpu.vector_store %arg18[%c0_13, %c1_14, %c0_15], %22 {strides = array<i32>} : memref<8x2x128xf32, #tpu.memory_space<vmem>>, vector<8x1x128xf32>,
    %c0_i32_16 = arith.constant 0 : i32
    %c0_17 = arith.constant 0 : index
    %c0_18 = arith.constant 0 : index
    %c0_19 = arith.constant 0 : index
    %23 = vector.load %arg16[%c0_17, %c0_18, %c0_19] : memref<2x2x32xf32, #tpu.memory_space<vmem>>, vector<1x2x32xf32>
    %24 = vector.shape_cast %23 : vector<1x2x32xf32> to vector<2x32xf32>
    %c0_20 = arith.constant 0 : index
    %c0_21 = arith.constant 0 : index
    %c0_22 = arith.constant 0 : index
    %25 = vector.load %arg17[%c0_20, %c0_21, %c0_22] : memref<2x2x32xf32, #tpu.memory_space<vmem>>, vector<1x2x32xf32>
    %26 = vector.shape_cast %25 : vector<1x2x32xf32> to vector<2x32xf32>
    %27 = arith.index_cast %c0_i32_16 : i32 to index
    %c0_23 = arith.constant 0 : index
    %c0_24 = arith.constant 0 : index
    %28 = vector.load %arg18[%27, %c0_23, %c0_24] : memref<8x2x128xf32, #tpu.memory_space<vmem>>, vector<1x2x128xf32>
    %29 = vector.shape_cast %28 : vector<1x2x128xf32> to vector<2x128xf32>
    %30 = arith.truncf %24 : vector<2x32xf32> to vector<2x32xbf16>
    %c0_25 = arith.constant 0 : index
    %c0_26 = arith.constant 0 : index
    %31 = vector.load %arg6[%c0_25, %c0_26] : memref<32x128xbf16, #tpu.memory_space<vmem>>, vector<32x128xbf16>
    %cst_27 = arith.constant dense<0.000000e+00> : vector<2x128xf32>
    %32 = tpu.matmul %30, %31, %cst_27 {dimension_numbers = #tpu.dot_dimension_numbers<[1], [0], [0], [1], [0, 0, 1, 1], [], []>} : vector<2x32xbf16>, vector<32x128xbf16>, vector<2x128xf32> -> vector<2x128xf32>
    %33 = arith.addf %29, %32 : vector<2x128xf32>
    %34 = vector.extract_strided_slice %33 {offsets = [0, 0], sizes = [2, 32], strides = [1, 1]} : vector<2x128xf32> to vector<2x32xf32>
    %35 = arith.negf %34 : vector<2x32xf32>
    %36 = math.exp %35 : vector<2x32xf32>
    %cst_28 = arith.constant 1.000000e+00 : f32
    %37 = vector.broadcast %cst_28 : f32 to vector<2x32xf32>
    %38 = arith.addf %37, %36 : vector<2x32xf32>
    %39 = arith.divf %37, %38 : vector<2x32xf32>
    %40 = vector.extract_strided_slice %33 {offsets = [0, 32], sizes = [2, 32], strides = [1, 1]} : vector<2x128xf32> to vector<2x32xf32>
    %41 = arith.negf %40 : vector<2x32xf32>
    %42 = math.exp %41 : vector<2x32xf32>
    %cst_29 = arith.constant 1.000000e+00 : f32
    %43 = vector.broadcast %cst_29 : f32 to vector<2x32xf32>
    %44 = arith.addf %43, %42 : vector<2x32xf32>
    %45 = arith.divf %43, %44 : vector<2x32xf32>
    %46 = vector.extract_strided_slice %33 {offsets = [0, 64], sizes = [2, 32], strides = [1, 1]} : vector<2x128xf32> to vector<2x32xf32>
    %47 = math.tanh %46 : vector<2x32xf32>
    %48 = vector.extract_strided_slice %33 {offsets = [0, 96], sizes = [2, 32], strides = [1, 1]} : vector<2x128xf32> to vector<2x32xf32>
    %49 = arith.negf %48 : vector<2x32xf32>
    %50 = math.exp %49 : vector<2x32xf32>
    %cst_30 = arith.constant 1.000000e+00 : f32
    %51 = vector.broadcast %cst_30 : f32 to vector<2x32xf32>
    %52 = arith.addf %51, %50 : vector<2x32xf32>
    %53 = arith.divf %51, %52 : vector<2x32xf32>
    %54 = arith.mulf %45, %26 : vector<2x32xf32>
    %55 = arith.mulf %39, %47 : vector<2x32xf32>
    %56 = arith.addf %54, %55 : vector<2x32xf32>
    %57 = math.tanh %56 : vector<2x32xf32>
    %58 = arith.mulf %53, %57 : vector<2x32xf32>
    %c0_31 = arith.constant 0 : index
    %c0_32 = arith.constant 0 : index
    %c0_33 = arith.constant 0 : index
    %59 = vector.load %arg16[%c0_31, %c0_32, %c0_33] : memref<2x2x32xf32, #tpu.memory_space<vmem>>, vector<1x2x32xf32>
    %60 = vector.shape_cast %59 : vector<1x2x32xf32> to vector<2x32xf32>
    %61 = vector.shape_cast %58 : vector<2x32xf32> to vector<1x2x32xf32>
    tpu.vector_store %arg16[%c0_31, %c0_32, %c0_33], %61 {strides = array<i32>} : memref<2x2x32xf32, #tpu.memory_space<vmem>>, vector<1x2x32xf32>,
    %c0_34 = arith.constant 0 : index
    %c0_35 = arith.constant 0 : index
    %c0_36 = arith.constant 0 : index
    %62 = vector.load %arg17[%c0_34, %c0_35, %c0_36] : memref<2x2x32xf32, #tpu.memory_space<vmem>>, vector<1x2x32xf32>
    %63 = vector.shape_cast %62 : vector<1x2x32xf32> to vector<2x32xf32>
    %64 = vector.shape_cast %56 : vector<2x32xf32> to vector<1x2x32xf32>
    tpu.vector_store %arg17[%c0_34, %c0_35, %c0_36], %64 {strides = array<i32>} : memref<2x2x32xf32, #tpu.memory_space<vmem>>, vector<1x2x32xf32>,
    %65 = arith.index_cast %c0_i32_16 : i32 to index
    %c0_37 = arith.constant 0 : index
    %c0_38 = arith.constant 0 : index
    %66 = vector.load %arg19[%65, %c0_37, %c0_38] : memref<8x2x32xf32, #tpu.memory_space<vmem>>, vector<1x2x32xf32>
    %67 = vector.shape_cast %66 : vector<1x2x32xf32> to vector<2x32xf32>
    %68 = vector.shape_cast %58 : vector<2x32xf32> to vector<1x2x32xf32>
    tpu.vector_store %arg19[%65, %c0_37, %c0_38], %68 {strides = array<i32>} : memref<8x2x32xf32, #tpu.memory_space<vmem>>, vector<1x2x32xf32>,
    %c1_i32 = arith.constant 1 : i32
    %c0_39 = arith.constant 0 : index
    %c0_40 = arith.constant 0 : index
    %c0_41 = arith.constant 0 : index
    %69 = vector.load %arg16[%c0_39, %c0_40, %c0_41] : memref<2x2x32xf32, #tpu.memory_space<vmem>>, vector<1x2x32xf32>
    %70 = vector.shape_cast %69 : vector<1x2x32xf32> to vector<2x32xf32>
    %c0_42 = arith.constant 0 : index
    %c0_43 = arith.constant 0 : index
    %c0_44 = arith.constant 0 : index
    %71 = vector.load %arg17[%c0_42, %c0_43, %c0_44] : memref<2x2x32xf32, #tpu.memory_space<vmem>>, vector<1x2x32xf32>
    %72 = vector.shape_cast %71 : vector<1x2x32xf32> to vector<2x32xf32>
    %73 = arith.index_cast %c1_i32 : i32 to index
    %c0_45 = arith.constant 0 : index
    %c0_46 = arith.constant 0 : index
    %74 = vector.load %arg18[%73, %c0_45, %c0_46] : memref<8x2x128xf32, #tpu.memory_space<vmem>>, vector<1x2x128xf32>
    %75 = vector.shape_cast %74 : vector<1x2x128xf32> to vector<2x128xf32>
    %76 = arith.truncf %70 : vector<2x32xf32> to vector<2x32xbf16>
    %c0_47 = arith.constant 0 : index
    %c0_48 = arith.constant 0 : index
    %77 = vector.load %arg6[%c0_47, %c0_48] : memref<32x128xbf16, #tpu.memory_space<vmem>>, vector<32x128xbf16>
    %cst_49 = arith.constant dense<0.000000e+00> : vector<2x128xf32>
    %78 = tpu.matmul %76, %77, %cst_49 {dimension_numbers = #tpu.dot_dimension_numbers<[1], [0], [0], [1], [0, 0, 1, 1], [], []>} : vector<2x32xbf16>, vector<32x128xbf16>, vector<2x128xf32> -> vector<2x128xf32>
    %79 = arith.addf %75, %78 : vector<2x128xf32>
    %80 = vector.extract_strided_slice %79 {offsets = [0, 0], sizes = [2, 32], strides = [1, 1]} : vector<2x128xf32> to vector<2x32xf32>
    %81 = arith.negf %80 : vector<2x32xf32>
    %82 = math.exp %81 : vector<2x32xf32>
    %cst_50 = arith.constant 1.000000e+00 : f32
    %83 = vector.broadcast %cst_50 : f32 to vector<2x32xf32>
    %84 = arith.addf %83, %82 : vector<2x32xf32>
    %85 = arith.divf %83, %84 : vector<2x32xf32>
    %86 = vector.extract_strided_slice %79 {offsets = [0, 32], sizes = [2, 32], strides = [1, 1]} : vector<2x128xf32> to vector<2x32xf32>
    %87 = arith.negf %86 : vector<2x32xf32>
    %88 = math.exp %87 : vector<2x32xf32>
    %cst_51 = arith.constant 1.000000e+00 : f32
    %89 = vector.broadcast %cst_51 : f32 to vector<2x32xf32>
    %90 = arith.addf %89, %88 : vector<2x32xf32>
    %91 = arith.divf %89, %90 : vector<2x32xf32>
    %92 = vector.extract_strided_slice %79 {offsets = [0, 64], sizes = [2, 32], strides = [1, 1]} : vector<2x128xf32> to vector<2x32xf32>
    %93 = math.tanh %92 : vector<2x32xf32>
    %94 = vector.extract_strided_slice %79 {offsets = [0, 96], sizes = [2, 32], strides = [1, 1]} : vector<2x128xf32> to vector<2x32xf32>
    %95 = arith.negf %94 : vector<2x32xf32>
    %96 = math.exp %95 : vector<2x32xf32>
    %cst_52 = arith.constant 1.000000e+00 : f32
    %97 = vector.broadcast %cst_52 : f32 to vector<2x32xf32>
    %98 = arith.addf %97, %96 : vector<2x32xf32>
    %99 = arith.divf %97, %98 : vector<2x32xf32>
    %100 = arith.mulf %91, %72 : vector<2x32xf32>
    %101 = arith.mulf %85, %93 : vector<2x32xf32>
    %102 = arith.addf %100, %101 : vector<2x32xf32>
    %103 = math.tanh %102 : vector<2x32xf32>
    %104 = arith.mulf %99, %103 : vector<2x32xf32>
    %c0_53 = arith.constant 0 : index
    %c0_54 = arith.constant 0 : index
    %c0_55 = arith.constant 0 : index
    %105 = vector.load %arg16[%c0_53, %c0_54, %c0_55] : memref<2x2x32xf32, #tpu.memory_space<vmem>>, vector<1x2x32xf32>
    %106 = vector.shape_cast %105 : vector<1x2x32xf32> to vector<2x32xf32>
    %107 = vector.shape_cast %104 : vector<2x32xf32> to vector<1x2x32xf32>
    tpu.vector_store %arg16[%c0_53, %c0_54, %c0_55], %107 {strides = array<i32>} : memref<2x2x32xf32, #tpu.memory_space<vmem>>, vector<1x2x32xf32>,
    %c0_56 = arith.constant 0 : index
    %c0_57 = arith.constant 0 : index
    %c0_58 = arith.constant 0 : index
    %108 = vector.load %arg17[%c0_56, %c0_57, %c0_58] : memref<2x2x32xf32, #tpu.memory_space<vmem>>, vector<1x2x32xf32>
    %109 = vector.shape_cast %108 : vector<1x2x32xf32> to vector<2x32xf32>
    %110 = vector.shape_cast %102 : vector<2x32xf32> to vector<1x2x32xf32>
    tpu.vector_store %arg17[%c0_56, %c0_57, %c0_58], %110 {strides = array<i32>} : memref<2x2x32xf32, #tpu.memory_space<vmem>>, vector<1x2x32xf32>,
    %111 = arith.index_cast %c1_i32 : i32 to index
    %c0_59 = arith.constant 0 : index
    %c0_60 = arith.constant 0 : index
    %112 = vector.load %arg19[%111, %c0_59, %c0_60] : memref<8x2x32xf32, #tpu.memory_space<vmem>>, vector<1x2x32xf32>
    %113 = vector.shape_cast %112 : vector<1x2x32xf32> to vector<2x32xf32>
    %114 = vector.shape_cast %104 : vector<2x32xf32> to vector<1x2x32xf32>
    tpu.vector_store %arg19[%111, %c0_59, %c0_60], %114 {strides = array<i32>} : memref<8x2x32xf32, #tpu.memory_space<vmem>>, vector<1x2x32xf32>,
    %c2_i32 = arith.constant 2 : i32
    %c0_61 = arith.constant 0 : index
    %c0_62 = arith.constant 0 : index
    %c0_63 = arith.constant 0 : index
    %115 = vector.load %arg16[%c0_61, %c0_62, %c0_63] : memref<2x2x32xf32, #tpu.memory_space<vmem>>, vector<1x2x32xf32>
    %116 = vector.shape_cast %115 : vector<1x2x32xf32> to vector<2x32xf32>
    %c0_64 = arith.constant 0 : index
    %c0_65 = arith.constant 0 : index
    %c0_66 = arith.constant 0 : index
    %117 = vector.load %arg17[%c0_64, %c0_65, %c0_66] : memref<2x2x32xf32, #tpu.memory_space<vmem>>, vector<1x2x32xf32>
    %118 = vector.shape_cast %117 : vector<1x2x32xf32> to vector<2x32xf32>
    %119 = arith.index_cast %c2_i32 : i32 to index
    %c0_67 = arith.constant 0 : index
    %c0_68 = arith.constant 0 : index
    %120 = vector.load %arg18[%119, %c0_67, %c0_68] : memref<8x2x128xf32, #tpu.memory_space<vmem>>, vector<1x2x128xf32>
    %121 = vector.shape_cast %120 : vector<1x2x128xf32> to vector<2x128xf32>
    %122 = arith.truncf %116 : vector<2x32xf32> to vector<2x32xbf16>
    %c0_69 = arith.constant 0 : index
    %c0_70 = arith.constant 0 : index
    %123 = vector.load %arg6[%c0_69, %c0_70] : memref<32x128xbf16, #tpu.memory_space<vmem>>, vector<32x128xbf16>
    %cst_71 = arith.constant dense<0.000000e+00> : vector<2x128xf32>
    %124 = tpu.matmul %122, %123, %cst_71 {dimension_numbers = #tpu.dot_dimension_numbers<[1], [0], [0], [1], [0, 0, 1, 1], [], []>} : vector<2x32xbf16>, vector<32x128xbf16>, vector<2x128xf32> -> vector<2x128xf32>
    %125 = arith.addf %121, %124 : vector<2x128xf32>
    %126 = vector.extract_strided_slice %125 {offsets = [0, 0], sizes = [2, 32], strides = [1, 1]} : vector<2x128xf32> to vector<2x32xf32>
    %127 = arith.negf %126 : vector<2x32xf32>
    %128 = math.exp %127 : vector<2x32xf32>
    %cst_72 = arith.constant 1.000000e+00 : f32
    %129 = vector.broadcast %cst_72 : f32 to vector<2x32xf32>
    %130 = arith.addf %129, %128 : vector<2x32xf32>
    %131 = arith.divf %129, %130 : vector<2x32xf32>
    %132 = vector.extract_strided_slice %125 {offsets = [0, 32], sizes = [2, 32], strides = [1, 1]} : vector<2x128xf32> to vector<2x32xf32>
    %133 = arith.negf %132 : vector<2x32xf32>
    %134 = math.exp %133 : vector<2x32xf32>
    %cst_73 = arith.constant 1.000000e+00 : f32
    %135 = vector.broadcast %cst_73 : f32 to vector<2x32xf32>
    %136 = arith.addf %135, %134 : vector<2x32xf32>
    %137 = arith.divf %135, %136 : vector<2x32xf32>
    %138 = vector.extract_strided_slice %125 {offsets = [0, 64], sizes = [2, 32], strides = [1, 1]} : vector<2x128xf32> to vector<2x32xf32>
    %139 = math.tanh %138 : vector<2x32xf32>
    %140 = vector.extract_strided_slice %125 {offsets = [0, 96], sizes = [2, 32], strides = [1, 1]} : vector<2x128xf32> to vector<2x32xf32>
    %141 = arith.negf %140 : vector<2x32xf32>
    %142 = math.exp %141 : vector<2x32xf32>
    %cst_74 = arith.constant 1.000000e+00 : f32
    %143 = vector.broadcast %cst_74 : f32 to vector<2x32xf32>
    %144 = arith.addf %143, %142 : vector<2x32xf32>
    %145 = arith.divf %143, %144 : vector<2x32xf32>
    %146 = arith.mulf %137, %118 : vector<2x32xf32>
    %147 = arith.mulf %131, %139 : vector<2x32xf32>
    %148 = arith.addf %146, %147 : vector<2x32xf32>
    %149 = math.tanh %148 : vector<2x32xf32>
    %150 = arith.mulf %145, %149 : vector<2x32xf32>
    %c0_75 = arith.constant 0 : index
    %c0_76 = arith.constant 0 : index
    %c0_77 = arith.constant 0 : index
    %151 = vector.load %arg16[%c0_75, %c0_76, %c0_77] : memref<2x2x32xf32, #tpu.memory_space<vmem>>, vector<1x2x32xf32>
    %152 = vector.shape_cast %151 : vector<1x2x32xf32> to vector<2x32xf32>
    %153 = vector.shape_cast %150 : vector<2x32xf32> to vector<1x2x32xf32>
    tpu.vector_store %arg16[%c0_75, %c0_76, %c0_77], %153 {strides = array<i32>} : memref<2x2x32xf32, #tpu.memory_space<vmem>>, vector<1x2x32xf32>,
    %c0_78 = arith.constant 0 : index
    %c0_79 = arith.constant 0 : index
    %c0_80 = arith.constant 0 : index
    %154 = vector.load %arg17[%c0_78, %c0_79, %c0_80] : memref<2x2x32xf32, #tpu.memory_space<vmem>>, vector<1x2x32xf32>
    %155 = vector.shape_cast %154 : vector<1x2x32xf32> to vector<2x32xf32>
    %156 = vector.shape_cast %148 : vector<2x32xf32> to vector<1x2x32xf32>
    tpu.vector_store %arg17[%c0_78, %c0_79, %c0_80], %156 {strides = array<i32>} : memref<2x2x32xf32, #tpu.memory_space<vmem>>, vector<1x2x32xf32>,
    %157 = arith.index_cast %c2_i32 : i32 to index
    %c0_81 = arith.constant 0 : index
    %c0_82 = arith.constant 0 : index
    %158 = vector.load %arg19[%157, %c0_81, %c0_82] : memref<8x2x32xf32, #tpu.memory_space<vmem>>, vector<1x2x32xf32>
    %159 = vector.shape_cast %158 : vector<1x2x32xf32> to vector<2x32xf32>
    %160 = vector.shape_cast %150 : vector<2x32xf32> to vector<1x2x32xf32>
    tpu.vector_store %arg19[%157, %c0_81, %c0_82], %160 {strides = array<i32>} : memref<8x2x32xf32, #tpu.memory_space<vmem>>, vector<1x2x32xf32>,
    %c3_i32 = arith.constant 3 : i32
    %c0_83 = arith.constant 0 : index
    %c0_84 = arith.constant 0 : index
    %c0_85 = arith.constant 0 : index
    %161 = vector.load %arg16[%c0_83, %c0_84, %c0_85] : memref<2x2x32xf32, #tpu.memory_space<vmem>>, vector<1x2x32xf32>
    %162 = vector.shape_cast %161 : vector<1x2x32xf32> to vector<2x32xf32>
    %c0_86 = arith.constant 0 : index
    %c0_87 = arith.constant 0 : index
    %c0_88 = arith.constant 0 : index
    %163 = vector.load %arg17[%c0_86, %c0_87, %c0_88] : memref<2x2x32xf32, #tpu.memory_space<vmem>>, vector<1x2x32xf32>
    %164 = vector.shape_cast %163 : vector<1x2x32xf32> to vector<2x32xf32>
    %165 = arith.index_cast %c3_i32 : i32 to index
    %c0_89 = arith.constant 0 : index
    %c0_90 = arith.constant 0 : index
    %166 = vector.load %arg18[%165, %c0_89, %c0_90] : memref<8x2x128xf32, #tpu.memory_space<vmem>>, vector<1x2x128xf32>
    %167 = vector.shape_cast %166 : vector<1x2x128xf32> to vector<2x128xf32>
    %168 = arith.truncf %162 : vector<2x32xf32> to vector<2x32xbf16>
    %c0_91 = arith.constant 0 : index
    %c0_92 = arith.constant 0 : index
    %169 = vector.load %arg6[%c0_91, %c0_92] : memref<32x128xbf16, #tpu.memory_space<vmem>>, vector<32x128xbf16>
    %cst_93 = arith.constant dense<0.000000e+00> : vector<2x128xf32>
    %170 = tpu.matmul %168, %169, %cst_93 {dimension_numbers = #tpu.dot_dimension_numbers<[1], [0], [0], [1], [0, 0, 1, 1], [], []>} : vector<2x32xbf16>, vector<32x128xbf16>, vector<2x128xf32> -> vector<2x128xf32>
    %171 = arith.addf %167, %170 : vector<2x128xf32>
    %172 = vector.extract_strided_slice %171 {offsets = [0, 0], sizes = [2, 32], strides = [1, 1]} : vector<2x128xf32> to vector<2x32xf32>
    %173 = arith.negf %172 : vector<2x32xf32>
    %174 = math.exp %173 : vector<2x32xf32>
    %cst_94 = arith.constant 1.000000e+00 : f32
    %175 = vector.broadcast %cst_94 : f32 to vector<2x32xf32>
    %176 = arith.addf %175, %174 : vector<2x32xf32>
    %177 = arith.divf %175, %176 : vector<2x32xf32>
    %178 = vector.extract_strided_slice %171 {offsets = [0, 32], sizes = [2, 32], strides = [1, 1]} : vector<2x128xf32> to vector<2x32xf32>
    %179 = arith.negf %178 : vector<2x32xf32>
    %180 = math.exp %179 : vector<2x32xf32>
    %cst_95 = arith.constant 1.000000e+00 : f32
    %181 = vector.broadcast %cst_95 : f32 to vector<2x32xf32>
    %182 = arith.addf %181, %180 : vector<2x32xf32>
    %183 = arith.divf %181, %182 : vector<2x32xf32>
    %184 = vector.extract_strided_slice %171 {offsets = [0, 64], sizes = [2, 32], strides = [1, 1]} : vector<2x128xf32> to vector<2x32xf32>
    %185 = math.tanh %184 : vector<2x32xf32>
    %186 = vector.extract_strided_slice %171 {offsets = [0, 96], sizes = [2, 32], strides = [1, 1]} : vector<2x128xf32> to vector<2x32xf32>
    %187 = arith.negf %186 : vector<2x32xf32>
    %188 = math.exp %187 : vector<2x32xf32>
    %cst_96 = arith.constant 1.000000e+00 : f32
    %189 = vector.broadcast %cst_96 : f32 to vector<2x32xf32>
    %190 = arith.addf %189, %188 : vector<2x32xf32>
    %191 = arith.divf %189, %190 : vector<2x32xf32>
    %192 = arith.mulf %183, %164 : vector<2x32xf32>
    %193 = arith.mulf %177, %185 : vector<2x32xf32>
    %194 = arith.addf %192, %193 : vector<2x32xf32>
    %195 = math.tanh %194 : vector<2x32xf32>
    %196 = arith.mulf %191, %195 : vector<2x32xf32>
    %c0_97 = arith.constant 0 : index
    %c0_98 = arith.constant 0 : index
    %c0_99 = arith.constant 0 : index
    %197 = vector.load %arg16[%c0_97, %c0_98, %c0_99] : memref<2x2x32xf32, #tpu.memory_space<vmem>>, vector<1x2x32xf32>
    %198 = vector.shape_cast %197 : vector<1x2x32xf32> to vector<2x32xf32>
    %199 = vector.shape_cast %196 : vector<2x32xf32> to vector<1x2x32xf32>
    tpu.vector_store %arg16[%c0_97, %c0_98, %c0_99], %199 {strides = array<i32>} : memref<2x2x32xf32, #tpu.memory_space<vmem>>, vector<1x2x32xf32>,
    %c0_100 = arith.constant 0 : index
    %c0_101 = arith.constant 0 : index
    %c0_102 = arith.constant 0 : index
    %200 = vector.load %arg17[%c0_100, %c0_101, %c0_102] : memref<2x2x32xf32, #tpu.memory_space<vmem>>, vector<1x2x32xf32>
    %201 = vector.shape_cast %200 : vector<1x2x32xf32> to vector<2x32xf32>
    %202 = vector.shape_cast %194 : vector<2x32xf32> to vector<1x2x32xf32>
    tpu.vector_store %arg17[%c0_100, %c0_101, %c0_102], %202 {strides = array<i32>} : memref<2x2x32xf32, #tpu.memory_space<vmem>>, vector<1x2x32xf32>,
    %203 = arith.index_cast %c3_i32 : i32 to index
    %c0_103 = arith.constant 0 : index
    %c0_104 = arith.constant 0 : index
    %204 = vector.load %arg19[%203, %c0_103, %c0_104] : memref<8x2x32xf32, #tpu.memory_space<vmem>>, vector<1x2x32xf32>
    %205 = vector.shape_cast %204 : vector<1x2x32xf32> to vector<2x32xf32>
    %206 = vector.shape_cast %196 : vector<2x32xf32> to vector<1x2x32xf32>
    tpu.vector_store %arg19[%203, %c0_103, %c0_104], %206 {strides = array<i32>} : memref<8x2x32xf32, #tpu.memory_space<vmem>>, vector<1x2x32xf32>,
    %c4_i32 = arith.constant 4 : i32
    %c0_105 = arith.constant 0 : index
    %c0_106 = arith.constant 0 : index
    %c0_107 = arith.constant 0 : index
    %207 = vector.load %arg16[%c0_105, %c0_106, %c0_107] : memref<2x2x32xf32, #tpu.memory_space<vmem>>, vector<1x2x32xf32>
    %208 = vector.shape_cast %207 : vector<1x2x32xf32> to vector<2x32xf32>
    %c0_108 = arith.constant 0 : index
    %c0_109 = arith.constant 0 : index
    %c0_110 = arith.constant 0 : index
    %209 = vector.load %arg17[%c0_108, %c0_109, %c0_110] : memref<2x2x32xf32, #tpu.memory_space<vmem>>, vector<1x2x32xf32>
    %210 = vector.shape_cast %209 : vector<1x2x32xf32> to vector<2x32xf32>
    %211 = arith.index_cast %c4_i32 : i32 to index
    %c0_111 = arith.constant 0 : index
    %c0_112 = arith.constant 0 : index
    %212 = vector.load %arg18[%211, %c0_111, %c0_112] : memref<8x2x128xf32, #tpu.memory_space<vmem>>, vector<1x2x128xf32>
    %213 = vector.shape_cast %212 : vector<1x2x128xf32> to vector<2x128xf32>
    %214 = arith.truncf %208 : vector<2x32xf32> to vector<2x32xbf16>
    %c0_113 = arith.constant 0 : index
    %c0_114 = arith.constant 0 : index
    %215 = vector.load %arg6[%c0_113, %c0_114] : memref<32x128xbf16, #tpu.memory_space<vmem>>, vector<32x128xbf16>
    %cst_115 = arith.constant dense<0.000000e+00> : vector<2x128xf32>
    %216 = tpu.matmul %214, %215, %cst_115 {dimension_numbers = #tpu.dot_dimension_numbers<[1], [0], [0], [1], [0, 0, 1, 1], [], []>} : vector<2x32xbf16>, vector<32x128xbf16>, vector<2x128xf32> -> vector<2x128xf32>
    %217 = arith.addf %213, %216 : vector<2x128xf32>
    %218 = vector.extract_strided_slice %217 {offsets = [0, 0], sizes = [2, 32], strides = [1, 1]} : vector<2x128xf32> to vector<2x32xf32>
    %219 = arith.negf %218 : vector<2x32xf32>
    %220 = math.exp %219 : vector<2x32xf32>
    %cst_116 = arith.constant 1.000000e+00 : f32
    %221 = vector.broadcast %cst_116 : f32 to vector<2x32xf32>
    %222 = arith.addf %221, %220 : vector<2x32xf32>
    %223 = arith.divf %221, %222 : vector<2x32xf32>
    %224 = vector.extract_strided_slice %217 {offsets = [0, 32], sizes = [2, 32], strides = [1, 1]} : vector<2x128xf32> to vector<2x32xf32>
    %225 = arith.negf %224 : vector<2x32xf32>
    %226 = math.exp %225 : vector<2x32xf32>
    %cst_117 = arith.constant 1.000000e+00 : f32
    %227 = vector.broadcast %cst_117 : f32 to vector<2x32xf32>
    %228 = arith.addf %227, %226 : vector<2x32xf32>
    %229 = arith.divf %227, %228 : vector<2x32xf32>
    %230 = vector.extract_strided_slice %217 {offsets = [0, 64], sizes = [2, 32], strides = [1, 1]} : vector<2x128xf32> to vector<2x32xf32>
    %231 = math.tanh %230 : vector<2x32xf32>
    %232 = vector.extract_strided_slice %217 {offsets = [0, 96], sizes = [2, 32], strides = [1, 1]} : vector<2x128xf32> to vector<2x32xf32>
    %233 = arith.negf %232 : vector<2x32xf32>
    %234 = math.exp %233 : vector<2x32xf32>
    %cst_118 = arith.constant 1.000000e+00 : f32
    %235 = vector.broadcast %cst_118 : f32 to vector<2x32xf32>
    %236 = arith.addf %235, %234 : vector<2x32xf32>
    %237 = arith.divf %235, %236 : vector<2x32xf32>
    %238 = arith.mulf %229, %210 : vector<2x32xf32>
    %239 = arith.mulf %223, %231 : vector<2x32xf32>
    %240 = arith.addf %238, %239 : vector<2x32xf32>
    %241 = math.tanh %240 : vector<2x32xf32>
    %242 = arith.mulf %237, %241 : vector<2x32xf32>
    %c0_119 = arith.constant 0 : index
    %c0_120 = arith.constant 0 : index
    %c0_121 = arith.constant 0 : index
    %243 = vector.load %arg16[%c0_119, %c0_120, %c0_121] : memref<2x2x32xf32, #tpu.memory_space<vmem>>, vector<1x2x32xf32>
    %244 = vector.shape_cast %243 : vector<1x2x32xf32> to vector<2x32xf32>
    %245 = vector.shape_cast %242 : vector<2x32xf32> to vector<1x2x32xf32>
    tpu.vector_store %arg16[%c0_119, %c0_120, %c0_121], %245 {strides = array<i32>} : memref<2x2x32xf32, #tpu.memory_space<vmem>>, vector<1x2x32xf32>,
    %c0_122 = arith.constant 0 : index
    %c0_123 = arith.constant 0 : index
    %c0_124 = arith.constant 0 : index
    %246 = vector.load %arg17[%c0_122, %c0_123, %c0_124] : memref<2x2x32xf32, #tpu.memory_space<vmem>>, vector<1x2x32xf32>
    %247 = vector.shape_cast %246 : vector<1x2x32xf32> to vector<2x32xf32>
    %248 = vector.shape_cast %240 : vector<2x32xf32> to vector<1x2x32xf32>
    tpu.vector_store %arg17[%c0_122, %c0_123, %c0_124], %248 {strides = array<i32>} : memref<2x2x32xf32, #tpu.memory_space<vmem>>, vector<1x2x32xf32>,
    %249 = arith.index_cast %c4_i32 : i32 to index
    %c0_125 = arith.constant 0 : index
    %c0_126 = arith.constant 0 : index
    %250 = vector.load %arg19[%249, %c0_125, %c0_126] : memref<8x2x32xf32, #tpu.memory_space<vmem>>, vector<1x2x32xf32>
    %251 = vector.shape_cast %250 : vector<1x2x32xf32> to vector<2x32xf32>
    %252 = vector.shape_cast %242 : vector<2x32xf32> to vector<1x2x32xf32>
    tpu.vector_store %arg19[%249, %c0_125, %c0_126], %252 {strides = array<i32>} : memref<8x2x32xf32, #tpu.memory_space<vmem>>, vector<1x2x32xf32>,
    %c5_i32 = arith.constant 5 : i32
    %c0_127 = arith.constant 0 : index
    %c0_128 = arith.constant 0 : index
    %c0_129 = arith.constant 0 : index
    %253 = vector.load %arg16[%c0_127, %c0_128, %c0_129] : memref<2x2x32xf32, #tpu.memory_space<vmem>>, vector<1x2x32xf32>
    %254 = vector.shape_cast %253 : vector<1x2x32xf32> to vector<2x32xf32>
    %c0_130 = arith.constant 0 : index
    %c0_131 = arith.constant 0 : index
    %c0_132 = arith.constant 0 : index
    %255 = vector.load %arg17[%c0_130, %c0_131, %c0_132] : memref<2x2x32xf32, #tpu.memory_space<vmem>>, vector<1x2x32xf32>
    %256 = vector.shape_cast %255 : vector<1x2x32xf32> to vector<2x32xf32>
    %257 = arith.index_cast %c5_i32 : i32 to index
    %c0_133 = arith.constant 0 : index
    %c0_134 = arith.constant 0 : index
    %258 = vector.load %arg18[%257, %c0_133, %c0_134] : memref<8x2x128xf32, #tpu.memory_space<vmem>>, vector<1x2x128xf32>
    %259 = vector.shape_cast %258 : vector<1x2x128xf32> to vector<2x128xf32>
    %260 = arith.truncf %254 : vector<2x32xf32> to vector<2x32xbf16>
    %c0_135 = arith.constant 0 : index
    %c0_136 = arith.constant 0 : index
    %261 = vector.load %arg6[%c0_135, %c0_136] : memref<32x128xbf16, #tpu.memory_space<vmem>>, vector<32x128xbf16>
    %cst_137 = arith.constant dense<0.000000e+00> : vector<2x128xf32>
    %262 = tpu.matmul %260, %261, %cst_137 {dimension_numbers = #tpu.dot_dimension_numbers<[1], [0], [0], [1], [0, 0, 1, 1], [], []>} : vector<2x32xbf16>, vector<32x128xbf16>, vector<2x128xf32> -> vector<2x128xf32>
    %263 = arith.addf %259, %262 : vector<2x128xf32>
    %264 = vector.extract_strided_slice %263 {offsets = [0, 0], sizes = [2, 32], strides = [1, 1]} : vector<2x128xf32> to vector<2x32xf32>
    %265 = arith.negf %264 : vector<2x32xf32>
    %266 = math.exp %265 : vector<2x32xf32>
    %cst_138 = arith.constant 1.000000e+00 : f32
    %267 = vector.broadcast %cst_138 : f32 to vector<2x32xf32>
    %268 = arith.addf %267, %266 : vector<2x32xf32>
    %269 = arith.divf %267, %268 : vector<2x32xf32>
    %270 = vector.extract_strided_slice %263 {offsets = [0, 32], sizes = [2, 32], strides = [1, 1]} : vector<2x128xf32> to vector<2x32xf32>
    %271 = arith.negf %270 : vector<2x32xf32>
    %272 = math.exp %271 : vector<2x32xf32>
    %cst_139 = arith.constant 1.000000e+00 : f32
    %273 = vector.broadcast %cst_139 : f32 to vector<2x32xf32>
    %274 = arith.addf %273, %272 : vector<2x32xf32>
    %275 = arith.divf %273, %274 : vector<2x32xf32>
    %276 = vector.extract_strided_slice %263 {offsets = [0, 64], sizes = [2, 32], strides = [1, 1]} : vector<2x128xf32> to vector<2x32xf32>
    %277 = math.tanh %276 : vector<2x32xf32>
    %278 = vector.extract_strided_slice %263 {offsets = [0, 96], sizes = [2, 32], strides = [1, 1]} : vector<2x128xf32> to vector<2x32xf32>
    %279 = arith.negf %278 : vector<2x32xf32>
    %280 = math.exp %279 : vector<2x32xf32>
    %cst_140 = arith.constant 1.000000e+00 : f32
    %281 = vector.broadcast %cst_140 : f32 to vector<2x32xf32>
    %282 = arith.addf %281, %280 : vector<2x32xf32>
    %283 = arith.divf %281, %282 : vector<2x32xf32>
    %284 = arith.mulf %275, %256 : vector<2x32xf32>
    %285 = arith.mulf %269, %277 : vector<2x32xf32>
    %286 = arith.addf %284, %285 : vector<2x32xf32>
    %287 = math.tanh %286 : vector<2x32xf32>
    %288 = arith.mulf %283, %287 : vector<2x32xf32>
    %c0_141 = arith.constant 0 : index
    %c0_142 = arith.constant 0 : index
    %c0_143 = arith.constant 0 : index
    %289 = vector.load %arg16[%c0_141, %c0_142, %c0_143] : memref<2x2x32xf32, #tpu.memory_space<vmem>>, vector<1x2x32xf32>
    %290 = vector.shape_cast %289 : vector<1x2x32xf32> to vector<2x32xf32>
    %291 = vector.shape_cast %288 : vector<2x32xf32> to vector<1x2x32xf32>
    tpu.vector_store %arg16[%c0_141, %c0_142, %c0_143], %291 {strides = array<i32>} : memref<2x2x32xf32, #tpu.memory_space<vmem>>, vector<1x2x32xf32>,
    %c0_144 = arith.constant 0 : index
    %c0_145 = arith.constant 0 : index
    %c0_146 = arith.constant 0 : index
    %292 = vector.load %arg17[%c0_144, %c0_145, %c0_146] : memref<2x2x32xf32, #tpu.memory_space<vmem>>, vector<1x2x32xf32>
    %293 = vector.shape_cast %292 : vector<1x2x32xf32> to vector<2x32xf32>
    %294 = vector.shape_cast %286 : vector<2x32xf32> to vector<1x2x32xf32>
    tpu.vector_store %arg17[%c0_144, %c0_145, %c0_146], %294 {strides = array<i32>} : memref<2x2x32xf32, #tpu.memory_space<vmem>>, vector<1x2x32xf32>,
    %295 = arith.index_cast %c5_i32 : i32 to index
    %c0_147 = arith.constant 0 : index
    %c0_148 = arith.constant 0 : index
    %296 = vector.load %arg19[%295, %c0_147, %c0_148] : memref<8x2x32xf32, #tpu.memory_space<vmem>>, vector<1x2x32xf32>
    %297 = vector.shape_cast %296 : vector<1x2x32xf32> to vector<2x32xf32>
    %298 = vector.shape_cast %288 : vector<2x32xf32> to vector<1x2x32xf32>
    tpu.vector_store %arg19[%295, %c0_147, %c0_148], %298 {strides = array<i32>} : memref<8x2x32xf32, #tpu.memory_space<vmem>>, vector<1x2x32xf32>,
    %c6_i32 = arith.constant 6 : i32
    %c0_149 = arith.constant 0 : index
    %c0_150 = arith.constant 0 : index
    %c0_151 = arith.constant 0 : index
    %299 = vector.load %arg16[%c0_149, %c0_150, %c0_151] : memref<2x2x32xf32, #tpu.memory_space<vmem>>, vector<1x2x32xf32>
    %300 = vector.shape_cast %299 : vector<1x2x32xf32> to vector<2x32xf32>
    %c0_152 = arith.constant 0 : index
    %c0_153 = arith.constant 0 : index
    %c0_154 = arith.constant 0 : index
    %301 = vector.load %arg17[%c0_152, %c0_153, %c0_154] : memref<2x2x32xf32, #tpu.memory_space<vmem>>, vector<1x2x32xf32>
    %302 = vector.shape_cast %301 : vector<1x2x32xf32> to vector<2x32xf32>
    %303 = arith.index_cast %c6_i32 : i32 to index
    %c0_155 = arith.constant 0 : index
    %c0_156 = arith.constant 0 : index
    %304 = vector.load %arg18[%303, %c0_155, %c0_156] : memref<8x2x128xf32, #tpu.memory_space<vmem>>, vector<1x2x128xf32>
    %305 = vector.shape_cast %304 : vector<1x2x128xf32> to vector<2x128xf32>
    %306 = arith.truncf %300 : vector<2x32xf32> to vector<2x32xbf16>
    %c0_157 = arith.constant 0 : index
    %c0_158 = arith.constant 0 : index
    %307 = vector.load %arg6[%c0_157, %c0_158] : memref<32x128xbf16, #tpu.memory_space<vmem>>, vector<32x128xbf16>
    %cst_159 = arith.constant dense<0.000000e+00> : vector<2x128xf32>
    %308 = tpu.matmul %306, %307, %cst_159 {dimension_numbers = #tpu.dot_dimension_numbers<[1], [0], [0], [1], [0, 0, 1, 1], [], []>} : vector<2x32xbf16>, vector<32x128xbf16>, vector<2x128xf32> -> vector<2x128xf32>
    %309 = arith.addf %305, %308 : vector<2x128xf32>
    %310 = vector.extract_strided_slice %309 {offsets = [0, 0], sizes = [2, 32], strides = [1, 1]} : vector<2x128xf32> to vector<2x32xf32>
    %311 = arith.negf %310 : vector<2x32xf32>
    %312 = math.exp %311 : vector<2x32xf32>
    %cst_160 = arith.constant 1.000000e+00 : f32
    %313 = vector.broadcast %cst_160 : f32 to vector<2x32xf32>
    %314 = arith.addf %313, %312 : vector<2x32xf32>
    %315 = arith.divf %313, %314 : vector<2x32xf32>
    %316 = vector.extract_strided_slice %309 {offsets = [0, 32], sizes = [2, 32], strides = [1, 1]} : vector<2x128xf32> to vector<2x32xf32>
    %317 = arith.negf %316 : vector<2x32xf32>
    %318 = math.exp %317 : vector<2x32xf32>
    %cst_161 = arith.constant 1.000000e+00 : f32
    %319 = vector.broadcast %cst_161 : f32 to vector<2x32xf32>
    %320 = arith.addf %319, %318 : vector<2x32xf32>
    %321 = arith.divf %319, %320 : vector<2x32xf32>
    %322 = vector.extract_strided_slice %309 {offsets = [0, 64], sizes = [2, 32], strides = [1, 1]} : vector<2x128xf32> to vector<2x32xf32>
    %323 = math.tanh %322 : vector<2x32xf32>
    %324 = vector.extract_strided_slice %309 {offsets = [0, 96], sizes = [2, 32], strides = [1, 1]} : vector<2x128xf32> to vector<2x32xf32>
    %325 = arith.negf %324 : vector<2x32xf32>
    %326 = math.exp %325 : vector<2x32xf32>
    %cst_162 = arith.constant 1.000000e+00 : f32
    %327 = vector.broadcast %cst_162 : f32 to vector<2x32xf32>
    %328 = arith.addf %327, %326 : vector<2x32xf32>
    %329 = arith.divf %327, %328 : vector<2x32xf32>
    %330 = arith.mulf %321, %302 : vector<2x32xf32>
    %331 = arith.mulf %315, %323 : vector<2x32xf32>
    %332 = arith.addf %330, %331 : vector<2x32xf32>
    %333 = math.tanh %332 : vector<2x32xf32>
    %334 = arith.mulf %329, %333 : vector<2x32xf32>
    %c0_163 = arith.constant 0 : index
    %c0_164 = arith.constant 0 : index
    %c0_165 = arith.constant 0 : index
    %335 = vector.load %arg16[%c0_163, %c0_164, %c0_165] : memref<2x2x32xf32, #tpu.memory_space<vmem>>, vector<1x2x32xf32>
    %336 = vector.shape_cast %335 : vector<1x2x32xf32> to vector<2x32xf32>
    %337 = vector.shape_cast %334 : vector<2x32xf32> to vector<1x2x32xf32>
    tpu.vector_store %arg16[%c0_163, %c0_164, %c0_165], %337 {strides = array<i32>} : memref<2x2x32xf32, #tpu.memory_space<vmem>>, vector<1x2x32xf32>,
    %c0_166 = arith.constant 0 : index
    %c0_167 = arith.constant 0 : index
    %c0_168 = arith.constant 0 : index
    %338 = vector.load %arg17[%c0_166, %c0_167, %c0_168] : memref<2x2x32xf32, #tpu.memory_space<vmem>>, vector<1x2x32xf32>
    %339 = vector.shape_cast %338 : vector<1x2x32xf32> to vector<2x32xf32>
    %340 = vector.shape_cast %332 : vector<2x32xf32> to vector<1x2x32xf32>
    tpu.vector_store %arg17[%c0_166, %c0_167, %c0_168], %340 {strides = array<i32>} : memref<2x2x32xf32, #tpu.memory_space<vmem>>, vector<1x2x32xf32>,
    %341 = arith.index_cast %c6_i32 : i32 to index
    %c0_169 = arith.constant 0 : index
    %c0_170 = arith.constant 0 : index
    %342 = vector.load %arg19[%341, %c0_169, %c0_170] : memref<8x2x32xf32, #tpu.memory_space<vmem>>, vector<1x2x32xf32>
    %343 = vector.shape_cast %342 : vector<1x2x32xf32> to vector<2x32xf32>
    %344 = vector.shape_cast %334 : vector<2x32xf32> to vector<1x2x32xf32>
    tpu.vector_store %arg19[%341, %c0_169, %c0_170], %344 {strides = array<i32>} : memref<8x2x32xf32, #tpu.memory_space<vmem>>, vector<1x2x32xf32>,
    %c7_i32 = arith.constant 7 : i32
    %c0_171 = arith.constant 0 : index
    %c0_172 = arith.constant 0 : index
    %c0_173 = arith.constant 0 : index
    %345 = vector.load %arg16[%c0_171, %c0_172, %c0_173] : memref<2x2x32xf32, #tpu.memory_space<vmem>>, vector<1x2x32xf32>
    %346 = vector.shape_cast %345 : vector<1x2x32xf32> to vector<2x32xf32>
    %c0_174 = arith.constant 0 : index
    %c0_175 = arith.constant 0 : index
    %c0_176 = arith.constant 0 : index
    %347 = vector.load %arg17[%c0_174, %c0_175, %c0_176] : memref<2x2x32xf32, #tpu.memory_space<vmem>>, vector<1x2x32xf32>
    %348 = vector.shape_cast %347 : vector<1x2x32xf32> to vector<2x32xf32>
    %349 = arith.index_cast %c7_i32 : i32 to index
    %c0_177 = arith.constant 0 : index
    %c0_178 = arith.constant 0 : index
    %350 = vector.load %arg18[%349, %c0_177, %c0_178] : memref<8x2x128xf32, #tpu.memory_space<vmem>>, vector<1x2x128xf32>
    %351 = vector.shape_cast %350 : vector<1x2x128xf32> to vector<2x128xf32>
    %352 = arith.truncf %346 : vector<2x32xf32> to vector<2x32xbf16>
    %c0_179 = arith.constant 0 : index
    %c0_180 = arith.constant 0 : index
    %353 = vector.load %arg6[%c0_179, %c0_180] : memref<32x128xbf16, #tpu.memory_space<vmem>>, vector<32x128xbf16>
    %cst_181 = arith.constant dense<0.000000e+00> : vector<2x128xf32>
    %354 = tpu.matmul %352, %353, %cst_181 {dimension_numbers = #tpu.dot_dimension_numbers<[1], [0], [0], [1], [0, 0, 1, 1], [], []>} : vector<2x32xbf16>, vector<32x128xbf16>, vector<2x128xf32> -> vector<2x128xf32>
    %355 = arith.addf %351, %354 : vector<2x128xf32>
    %356 = vector.extract_strided_slice %355 {offsets = [0, 0], sizes = [2, 32], strides = [1, 1]} : vector<2x128xf32> to vector<2x32xf32>
    %357 = arith.negf %356 : vector<2x32xf32>
    %358 = math.exp %357 : vector<2x32xf32>
    %cst_182 = arith.constant 1.000000e+00 : f32
    %359 = vector.broadcast %cst_182 : f32 to vector<2x32xf32>
    %360 = arith.addf %359, %358 : vector<2x32xf32>
    %361 = arith.divf %359, %360 : vector<2x32xf32>
    %362 = vector.extract_strided_slice %355 {offsets = [0, 32], sizes = [2, 32], strides = [1, 1]} : vector<2x128xf32> to vector<2x32xf32>
    %363 = arith.negf %362 : vector<2x32xf32>
    %364 = math.exp %363 : vector<2x32xf32>
    %cst_183 = arith.constant 1.000000e+00 : f32
    %365 = vector.broadcast %cst_183 : f32 to vector<2x32xf32>
    %366 = arith.addf %365, %364 : vector<2x32xf32>
    %367 = arith.divf %365, %366 : vector<2x32xf32>
    %368 = vector.extract_strided_slice %355 {offsets = [0, 64], sizes = [2, 32], strides = [1, 1]} : vector<2x128xf32> to vector<2x32xf32>
    %369 = math.tanh %368 : vector<2x32xf32>
    %370 = vector.extract_strided_slice %355 {offsets = [0, 96], sizes = [2, 32], strides = [1, 1]} : vector<2x128xf32> to vector<2x32xf32>
    %371 = arith.negf %370 : vector<2x32xf32>
    %372 = math.exp %371 : vector<2x32xf32>
    %cst_184 = arith.constant 1.000000e+00 : f32
    %373 = vector.broadcast %cst_184 : f32 to vector<2x32xf32>
    %374 = arith.addf %373, %372 : vector<2x32xf32>
    %375 = arith.divf %373, %374 : vector<2x32xf32>
    %376 = arith.mulf %367, %348 : vector<2x32xf32>
    %377 = arith.mulf %361, %369 : vector<2x32xf32>
    %378 = arith.addf %376, %377 : vector<2x32xf32>
    %379 = math.tanh %378 : vector<2x32xf32>
    %380 = arith.mulf %375, %379 : vector<2x32xf32>
    %c0_185 = arith.constant 0 : index
    %c0_186 = arith.constant 0 : index
    %c0_187 = arith.constant 0 : index
    %381 = vector.load %arg16[%c0_185, %c0_186, %c0_187] : memref<2x2x32xf32, #tpu.memory_space<vmem>>, vector<1x2x32xf32>
    %382 = vector.shape_cast %381 : vector<1x2x32xf32> to vector<2x32xf32>
    %383 = vector.shape_cast %380 : vector<2x32xf32> to vector<1x2x32xf32>
    tpu.vector_store %arg16[%c0_185, %c0_186, %c0_187], %383 {strides = array<i32>} : memref<2x2x32xf32, #tpu.memory_space<vmem>>, vector<1x2x32xf32>,
    %c0_188 = arith.constant 0 : index
    %c0_189 = arith.constant 0 : index
    %c0_190 = arith.constant 0 : index
    %384 = vector.load %arg17[%c0_188, %c0_189, %c0_190] : memref<2x2x32xf32, #tpu.memory_space<vmem>>, vector<1x2x32xf32>
    %385 = vector.shape_cast %384 : vector<1x2x32xf32> to vector<2x32xf32>
    %386 = vector.shape_cast %378 : vector<2x32xf32> to vector<1x2x32xf32>
    tpu.vector_store %arg17[%c0_188, %c0_189, %c0_190], %386 {strides = array<i32>} : memref<2x2x32xf32, #tpu.memory_space<vmem>>, vector<1x2x32xf32>,
    %387 = arith.index_cast %c7_i32 : i32 to index
    %c0_191 = arith.constant 0 : index
    %c0_192 = arith.constant 0 : index
    %388 = vector.load %arg19[%387, %c0_191, %c0_192] : memref<8x2x32xf32, #tpu.memory_space<vmem>>, vector<1x2x32xf32>
    %389 = vector.shape_cast %388 : vector<1x2x32xf32> to vector<2x32xf32>
    %390 = vector.shape_cast %380 : vector<2x32xf32> to vector<1x2x32xf32>
    tpu.vector_store %arg19[%387, %c0_191, %c0_192], %390 {strides = array<i32>} : memref<8x2x32xf32, #tpu.memory_space<vmem>>, vector<1x2x32xf32>,
    %c8_i32 = arith.constant 8 : i32
    %c0_193 = arith.constant 0 : index
    %c0_194 = arith.constant 0 : index
    %391 = vector.load %arg8[%c0_193, %c0_194] : memref<32x128xbf16, #tpu.memory_space<vmem>>, vector<32x128xbf16>
    %c0_195 = arith.constant 0 : index
    %c0_196 = arith.constant 0 : index
    %392 = vector.load %arg10[%c0_195, %c0_196] : memref<1x128xf32, #tpu.memory_space<vmem>>, vector<1x128xf32>
    %c0_197 = arith.constant 0 : index
    %c0_198 = arith.constant 0 : index
    %c0_199 = arith.constant 0 : index
    %393 = vector.load %arg19[%c0_197, %c0_198, %c0_199] : memref<8x2x32xf32, #tpu.memory_space<vmem>>, vector<8x1x32xf32>
    %394 = vector.shape_cast %393 : vector<8x1x32xf32> to vector<8x32xf32>
    %395 = arith.truncf %394 : vector<8x32xf32> to vector<8x32xbf16>
    %cst_200 = arith.constant dense<0.000000e+00> : vector<8x128xf32>
    %396 = tpu.matmul %395, %391, %cst_200 {dimension_numbers = #tpu.dot_dimension_numbers<[1], [0], [0], [1], [0, 0, 1, 1], [], []>} : vector<8x32xbf16>, vector<32x128xbf16>, vector<8x128xf32> -> vector<8x128xf32>
    %397 = vector.broadcast %392 : vector<1x128xf32> to vector<8x128xf32>
    %398 = arith.addf %396, %397 : vector<8x128xf32>
    %c0_201 = arith.constant 0 : index
    %c0_202 = arith.constant 0 : index
    %c0_203 = arith.constant 0 : index
    %399 = vector.load %arg18[%c0_201, %c0_202, %c0_203] : memref<8x2x128xf32, #tpu.memory_space<vmem>>, vector<8x1x128xf32>
    %400 = vector.shape_cast %399 : vector<8x1x128xf32> to vector<8x128xf32>
    %401 = vector.shape_cast %398 : vector<8x128xf32> to vector<8x1x128xf32>
    tpu.vector_store %arg18[%c0_201, %c0_202, %c0_203], %401 {strides = array<i32>} : memref<8x2x128xf32, #tpu.memory_space<vmem>>, vector<8x1x128xf32>,
    %c0_204 = arith.constant 0 : index
    %c1_205 = arith.constant 1 : index
    %c0_206 = arith.constant 0 : index
    %402 = vector.load %arg19[%c0_204, %c1_205, %c0_206] : memref<8x2x32xf32, #tpu.memory_space<vmem>>, vector<8x1x32xf32>
    %403 = vector.shape_cast %402 : vector<8x1x32xf32> to vector<8x32xf32>
    %404 = arith.truncf %403 : vector<8x32xf32> to vector<8x32xbf16>
    %cst_207 = arith.constant dense<0.000000e+00> : vector<8x128xf32>
    %405 = tpu.matmul %404, %391, %cst_207 {dimension_numbers = #tpu.dot_dimension_numbers<[1], [0], [0], [1], [0, 0, 1, 1], [], []>} : vector<8x32xbf16>, vector<32x128xbf16>, vector<8x128xf32> -> vector<8x128xf32>
    %406 = vector.broadcast %392 : vector<1x128xf32> to vector<8x128xf32>
    %407 = arith.addf %405, %406 : vector<8x128xf32>
    %c0_208 = arith.constant 0 : index
    %c1_209 = arith.constant 1 : index
    %c0_210 = arith.constant 0 : index
    %408 = vector.load %arg18[%c0_208, %c1_209, %c0_210] : memref<8x2x128xf32, #tpu.memory_space<vmem>>, vector<8x1x128xf32>
    %409 = vector.shape_cast %408 : vector<8x1x128xf32> to vector<8x128xf32>
    %410 = vector.shape_cast %407 : vector<8x128xf32> to vector<8x1x128xf32>
    tpu.vector_store %arg18[%c0_208, %c1_209, %c0_210], %410 {strides = array<i32>} : memref<8x2x128xf32, #tpu.memory_space<vmem>>, vector<8x1x128xf32>,
    %c0_i32_211 = arith.constant 0 : i32
    %c1_212 = arith.constant 1 : index
    %c0_213 = arith.constant 0 : index
    %c0_214 = arith.constant 0 : index
    %411 = vector.load %arg16[%c1_212, %c0_213, %c0_214] : memref<2x2x32xf32, #tpu.memory_space<vmem>>, vector<1x2x32xf32>
    %412 = vector.shape_cast %411 : vector<1x2x32xf32> to vector<2x32xf32>
    %c1_215 = arith.constant 1 : index
    %c0_216 = arith.constant 0 : index
    %c0_217 = arith.constant 0 : index
    %413 = vector.load %arg17[%c1_215, %c0_216, %c0_217] : memref<2x2x32xf32, #tpu.memory_space<vmem>>, vector<1x2x32xf32>
    %414 = vector.shape_cast %413 : vector<1x2x32xf32> to vector<2x32xf32>
    %415 = arith.index_cast %c0_i32_211 : i32 to index
    %c0_218 = arith.constant 0 : index
    %c0_219 = arith.constant 0 : index
    %416 = vector.load %arg18[%415, %c0_218, %c0_219] : memref<8x2x128xf32, #tpu.memory_space<vmem>>, vector<1x2x128xf32>
    %417 = vector.shape_cast %416 : vector<1x2x128xf32> to vector<2x128xf32>
    %418 = arith.truncf %412 : vector<2x32xf32> to vector<2x32xbf16>
    %c0_220 = arith.constant 0 : index
    %c0_221 = arith.constant 0 : index
    %419 = vector.load %arg9[%c0_220, %c0_221] : memref<32x128xbf16, #tpu.memory_space<vmem>>, vector<32x128xbf16>
    %cst_222 = arith.constant dense<0.000000e+00> : vector<2x128xf32>
    %420 = tpu.matmul %418, %419, %cst_222 {dimension_numbers = #tpu.dot_dimension_numbers<[1], [0], [0], [1], [0, 0, 1, 1], [], []>} : vector<2x32xbf16>, vector<32x128xbf16>, vector<2x128xf32> -> vector<2x128xf32>
    %421 = arith.addf %417, %420 : vector<2x128xf32>
    %422 = vector.extract_strided_slice %421 {offsets = [0, 0], sizes = [2, 32], strides = [1, 1]} : vector<2x128xf32> to vector<2x32xf32>
    %423 = arith.negf %422 : vector<2x32xf32>
    %424 = math.exp %423 : vector<2x32xf32>
    %cst_223 = arith.constant 1.000000e+00 : f32
    %425 = vector.broadcast %cst_223 : f32 to vector<2x32xf32>
    %426 = arith.addf %425, %424 : vector<2x32xf32>
    %427 = arith.divf %425, %426 : vector<2x32xf32>
    %428 = vector.extract_strided_slice %421 {offsets = [0, 32], sizes = [2, 32], strides = [1, 1]} : vector<2x128xf32> to vector<2x32xf32>
    %429 = arith.negf %428 : vector<2x32xf32>
    %430 = math.exp %429 : vector<2x32xf32>
    %cst_224 = arith.constant 1.000000e+00 : f32
    %431 = vector.broadcast %cst_224 : f32 to vector<2x32xf32>
    %432 = arith.addf %431, %430 : vector<2x32xf32>
    %433 = arith.divf %431, %432 : vector<2x32xf32>
    %434 = vector.extract_strided_slice %421 {offsets = [0, 64], sizes = [2, 32], strides = [1, 1]} : vector<2x128xf32> to vector<2x32xf32>
    %435 = math.tanh %434 : vector<2x32xf32>
    %436 = vector.extract_strided_slice %421 {offsets = [0, 96], sizes = [2, 32], strides = [1, 1]} : vector<2x128xf32> to vector<2x32xf32>
    %437 = arith.negf %436 : vector<2x32xf32>
    %438 = math.exp %437 : vector<2x32xf32>
    %cst_225 = arith.constant 1.000000e+00 : f32
    %439 = vector.broadcast %cst_225 : f32 to vector<2x32xf32>
    %440 = arith.addf %439, %438 : vector<2x32xf32>
    %441 = arith.divf %439, %440 : vector<2x32xf32>
    %442 = arith.mulf %433, %414 : vector<2x32xf32>
    %443 = arith.mulf %427, %435 : vector<2x32xf32>
    %444 = arith.addf %442, %443 : vector<2x32xf32>
    %445 = math.tanh %444 : vector<2x32xf32>
    %446 = arith.mulf %441, %445 : vector<2x32xf32>
    %c1_226 = arith.constant 1 : index
    %c0_227 = arith.constant 0 : index
    %c0_228 = arith.constant 0 : index
    %447 = vector.load %arg16[%c1_226, %c0_227, %c0_228] : memref<2x2x32xf32, #tpu.memory_space<vmem>>, vector<1x2x32xf32>
    %448 = vector.shape_cast %447 : vector<1x2x32xf32> to vector<2x32xf32>
    %449 = vector.shape_cast %446 : vector<2x32xf32> to vector<1x2x32xf32>
    tpu.vector_store %arg16[%c1_226, %c0_227, %c0_228], %449 {strides = array<i32>} : memref<2x2x32xf32, #tpu.memory_space<vmem>>, vector<1x2x32xf32>,
    %c1_229 = arith.constant 1 : index
    %c0_230 = arith.constant 0 : index
    %c0_231 = arith.constant 0 : index
    %450 = vector.load %arg17[%c1_229, %c0_230, %c0_231] : memref<2x2x32xf32, #tpu.memory_space<vmem>>, vector<1x2x32xf32>
    %451 = vector.shape_cast %450 : vector<1x2x32xf32> to vector<2x32xf32>
    %452 = vector.shape_cast %444 : vector<2x32xf32> to vector<1x2x32xf32>
    tpu.vector_store %arg17[%c1_229, %c0_230, %c0_231], %452 {strides = array<i32>} : memref<2x2x32xf32, #tpu.memory_space<vmem>>, vector<1x2x32xf32>,
    %453 = arith.index_cast %c0_i32_211 : i32 to index
    %c0_232 = arith.constant 0 : index
    %c0_233 = arith.constant 0 : index
    %454 = vector.load %arg19[%453, %c0_232, %c0_233] : memref<8x2x32xf32, #tpu.memory_space<vmem>>, vector<1x2x32xf32>
    %455 = vector.shape_cast %454 : vector<1x2x32xf32> to vector<2x32xf32>
    %456 = vector.shape_cast %446 : vector<2x32xf32> to vector<1x2x32xf32>
    tpu.vector_store %arg19[%453, %c0_232, %c0_233], %456 {strides = array<i32>} : memref<8x2x32xf32, #tpu.memory_space<vmem>>, vector<1x2x32xf32>,
    %c1_i32_234 = arith.constant 1 : i32
    %c1_235 = arith.constant 1 : index
    %c0_236 = arith.constant 0 : index
    %c0_237 = arith.constant 0 : index
    %457 = vector.load %arg16[%c1_235, %c0_236, %c0_237] : memref<2x2x32xf32, #tpu.memory_space<vmem>>, vector<1x2x32xf32>
    %458 = vector.shape_cast %457 : vector<1x2x32xf32> to vector<2x32xf32>
    %c1_238 = arith.constant 1 : index
    %c0_239 = arith.constant 0 : index
    %c0_240 = arith.constant 0 : index
    %459 = vector.load %arg17[%c1_238, %c0_239, %c0_240] : memref<2x2x32xf32, #tpu.memory_space<vmem>>, vector<1x2x32xf32>
    %460 = vector.shape_cast %459 : vector<1x2x32xf32> to vector<2x32xf32>
    %461 = arith.index_cast %c1_i32_234 : i32 to index
    %c0_241 = arith.constant 0 : index
    %c0_242 = arith.constant 0 : index
    %462 = vector.load %arg18[%461, %c0_241, %c0_242] : memref<8x2x128xf32, #tpu.memory_space<vmem>>, vector<1x2x128xf32>
    %463 = vector.shape_cast %462 : vector<1x2x128xf32> to vector<2x128xf32>
    %464 = arith.truncf %458 : vector<2x32xf32> to vector<2x32xbf16>
    %c0_243 = arith.constant 0 : index
    %c0_244 = arith.constant 0 : index
    %465 = vector.load %arg9[%c0_243, %c0_244] : memref<32x128xbf16, #tpu.memory_space<vmem>>, vector<32x128xbf16>
    %cst_245 = arith.constant dense<0.000000e+00> : vector<2x128xf32>
    %466 = tpu.matmul %464, %465, %cst_245 {dimension_numbers = #tpu.dot_dimension_numbers<[1], [0], [0], [1], [0, 0, 1, 1], [], []>} : vector<2x32xbf16>, vector<32x128xbf16>, vector<2x128xf32> -> vector<2x128xf32>
    %467 = arith.addf %463, %466 : vector<2x128xf32>
    %468 = vector.extract_strided_slice %467 {offsets = [0, 0], sizes = [2, 32], strides = [1, 1]} : vector<2x128xf32> to vector<2x32xf32>
    %469 = arith.negf %468 : vector<2x32xf32>
    %470 = math.exp %469 : vector<2x32xf32>
    %cst_246 = arith.constant 1.000000e+00 : f32
    %471 = vector.broadcast %cst_246 : f32 to vector<2x32xf32>
    %472 = arith.addf %471, %470 : vector<2x32xf32>
    %473 = arith.divf %471, %472 : vector<2x32xf32>
    %474 = vector.extract_strided_slice %467 {offsets = [0, 32], sizes = [2, 32], strides = [1, 1]} : vector<2x128xf32> to vector<2x32xf32>
    %475 = arith.negf %474 : vector<2x32xf32>
    %476 = math.exp %475 : vector<2x32xf32>
    %cst_247 = arith.constant 1.000000e+00 : f32
    %477 = vector.broadcast %cst_247 : f32 to vector<2x32xf32>
    %478 = arith.addf %477, %476 : vector<2x32xf32>
    %479 = arith.divf %477, %478 : vector<2x32xf32>
    %480 = vector.extract_strided_slice %467 {offsets = [0, 64], sizes = [2, 32], strides = [1, 1]} : vector<2x128xf32> to vector<2x32xf32>
    %481 = math.tanh %480 : vector<2x32xf32>
    %482 = vector.extract_strided_slice %467 {offsets = [0, 96], sizes = [2, 32], strides = [1, 1]} : vector<2x128xf32> to vector<2x32xf32>
    %483 = arith.negf %482 : vector<2x32xf32>
    %484 = math.exp %483 : vector<2x32xf32>
    %cst_248 = arith.constant 1.000000e+00 : f32
    %485 = vector.broadcast %cst_248 : f32 to vector<2x32xf32>
    %486 = arith.addf %485, %484 : vector<2x32xf32>
    %487 = arith.divf %485, %486 : vector<2x32xf32>
    %488 = arith.mulf %479, %460 : vector<2x32xf32>
    %489 = arith.mulf %473, %481 : vector<2x32xf32>
    %490 = arith.addf %488, %489 : vector<2x32xf32>
    %491 = math.tanh %490 : vector<2x32xf32>
    %492 = arith.mulf %487, %491 : vector<2x32xf32>
    %c1_249 = arith.constant 1 : index
    %c0_250 = arith.constant 0 : index
    %c0_251 = arith.constant 0 : index
    %493 = vector.load %arg16[%c1_249, %c0_250, %c0_251] : memref<2x2x32xf32, #tpu.memory_space<vmem>>, vector<1x2x32xf32>
    %494 = vector.shape_cast %493 : vector<1x2x32xf32> to vector<2x32xf32>
    %495 = vector.shape_cast %492 : vector<2x32xf32> to vector<1x2x32xf32>
    tpu.vector_store %arg16[%c1_249, %c0_250, %c0_251], %495 {strides = array<i32>} : memref<2x2x32xf32, #tpu.memory_space<vmem>>, vector<1x2x32xf32>,
    %c1_252 = arith.constant 1 : index
    %c0_253 = arith.constant 0 : index
    %c0_254 = arith.constant 0 : index
    %496 = vector.load %arg17[%c1_252, %c0_253, %c0_254] : memref<2x2x32xf32, #tpu.memory_space<vmem>>, vector<1x2x32xf32>
    %497 = vector.shape_cast %496 : vector<1x2x32xf32> to vector<2x32xf32>
    %498 = vector.shape_cast %490 : vector<2x32xf32> to vector<1x2x32xf32>
    tpu.vector_store %arg17[%c1_252, %c0_253, %c0_254], %498 {strides = array<i32>} : memref<2x2x32xf32, #tpu.memory_space<vmem>>, vector<1x2x32xf32>,
    %499 = arith.index_cast %c1_i32_234 : i32 to index
    %c0_255 = arith.constant 0 : index
    %c0_256 = arith.constant 0 : index
    %500 = vector.load %arg19[%499, %c0_255, %c0_256] : memref<8x2x32xf32, #tpu.memory_space<vmem>>, vector<1x2x32xf32>
    %501 = vector.shape_cast %500 : vector<1x2x32xf32> to vector<2x32xf32>
    %502 = vector.shape_cast %492 : vector<2x32xf32> to vector<1x2x32xf32>
    tpu.vector_store %arg19[%499, %c0_255, %c0_256], %502 {strides = array<i32>} : memref<8x2x32xf32, #tpu.memory_space<vmem>>, vector<1x2x32xf32>,
    %c2_i32_257 = arith.constant 2 : i32
    %c1_258 = arith.constant 1 : index
    %c0_259 = arith.constant 0 : index
    %c0_260 = arith.constant 0 : index
    %503 = vector.load %arg16[%c1_258, %c0_259, %c0_260] : memref<2x2x32xf32, #tpu.memory_space<vmem>>, vector<1x2x32xf32>
    %504 = vector.shape_cast %503 : vector<1x2x32xf32> to vector<2x32xf32>
    %c1_261 = arith.constant 1 : index
    %c0_262 = arith.constant 0 : index
    %c0_263 = arith.constant 0 : index
    %505 = vector.load %arg17[%c1_261, %c0_262, %c0_263] : memref<2x2x32xf32, #tpu.memory_space<vmem>>, vector<1x2x32xf32>
    %506 = vector.shape_cast %505 : vector<1x2x32xf32> to vector<2x32xf32>
    %507 = arith.index_cast %c2_i32_257 : i32 to index
    %c0_264 = arith.constant 0 : index
    %c0_265 = arith.constant 0 : index
    %508 = vector.load %arg18[%507, %c0_264, %c0_265] : memref<8x2x128xf32, #tpu.memory_space<vmem>>, vector<1x2x128xf32>
    %509 = vector.shape_cast %508 : vector<1x2x128xf32> to vector<2x128xf32>
    %510 = arith.truncf %504 : vector<2x32xf32> to vector<2x32xbf16>
    %c0_266 = arith.constant 0 : index
    %c0_267 = arith.constant 0 : index
    %511 = vector.load %arg9[%c0_266, %c0_267] : memref<32x128xbf16, #tpu.memory_space<vmem>>, vector<32x128xbf16>
    %cst_268 = arith.constant dense<0.000000e+00> : vector<2x128xf32>
    %512 = tpu.matmul %510, %511, %cst_268 {dimension_numbers = #tpu.dot_dimension_numbers<[1], [0], [0], [1], [0, 0, 1, 1], [], []>} : vector<2x32xbf16>, vector<32x128xbf16>, vector<2x128xf32> -> vector<2x128xf32>
    %513 = arith.addf %509, %512 : vector<2x128xf32>
    %514 = vector.extract_strided_slice %513 {offsets = [0, 0], sizes = [2, 32], strides = [1, 1]} : vector<2x128xf32> to vector<2x32xf32>
    %515 = arith.negf %514 : vector<2x32xf32>
    %516 = math.exp %515 : vector<2x32xf32>
    %cst_269 = arith.constant 1.000000e+00 : f32
    %517 = vector.broadcast %cst_269 : f32 to vector<2x32xf32>
    %518 = arith.addf %517, %516 : vector<2x32xf32>
    %519 = arith.divf %517, %518 : vector<2x32xf32>
    %520 = vector.extract_strided_slice %513 {offsets = [0, 32], sizes = [2, 32], strides = [1, 1]} : vector<2x128xf32> to vector<2x32xf32>
    %521 = arith.negf %520 : vector<2x32xf32>
    %522 = math.exp %521 : vector<2x32xf32>
    %cst_270 = arith.constant 1.000000e+00 : f32
    %523 = vector.broadcast %cst_270 : f32 to vector<2x32xf32>
    %524 = arith.addf %523, %522 : vector<2x32xf32>
    %525 = arith.divf %523, %524 : vector<2x32xf32>
    %526 = vector.extract_strided_slice %513 {offsets = [0, 64], sizes = [2, 32], strides = [1, 1]} : vector<2x128xf32> to vector<2x32xf32>
    %527 = math.tanh %526 : vector<2x32xf32>
    %528 = vector.extract_strided_slice %513 {offsets = [0, 96], sizes = [2, 32], strides = [1, 1]} : vector<2x128xf32> to vector<2x32xf32>
    %529 = arith.negf %528 : vector<2x32xf32>
    %530 = math.exp %529 : vector<2x32xf32>
    %cst_271 = arith.constant 1.000000e+00 : f32
    %531 = vector.broadcast %cst_271 : f32 to vector<2x32xf32>
    %532 = arith.addf %531, %530 : vector<2x32xf32>
    %533 = arith.divf %531, %532 : vector<2x32xf32>
    %534 = arith.mulf %525, %506 : vector<2x32xf32>
    %535 = arith.mulf %519, %527 : vector<2x32xf32>
    %536 = arith.addf %534, %535 : vector<2x32xf32>
    %537 = math.tanh %536 : vector<2x32xf32>
    %538 = arith.mulf %533, %537 : vector<2x32xf32>
    %c1_272 = arith.constant 1 : index
    %c0_273 = arith.constant 0 : index
    %c0_274 = arith.constant 0 : index
    %539 = vector.load %arg16[%c1_272, %c0_273, %c0_274] : memref<2x2x32xf32, #tpu.memory_space<vmem>>, vector<1x2x32xf32>
    %540 = vector.shape_cast %539 : vector<1x2x32xf32> to vector<2x32xf32>
    %541 = vector.shape_cast %538 : vector<2x32xf32> to vector<1x2x32xf32>
    tpu.vector_store %arg16[%c1_272, %c0_273, %c0_274], %541 {strides = array<i32>} : memref<2x2x32xf32, #tpu.memory_space<vmem>>, vector<1x2x32xf32>,
    %c1_275 = arith.constant 1 : index
    %c0_276 = arith.constant 0 : index
    %c0_277 = arith.constant 0 : index
    %542 = vector.load %arg17[%c1_275, %c0_276, %c0_277] : memref<2x2x32xf32, #tpu.memory_space<vmem>>, vector<1x2x32xf32>
    %543 = vector.shape_cast %542 : vector<1x2x32xf32> to vector<2x32xf32>
    %544 = vector.shape_cast %536 : vector<2x32xf32> to vector<1x2x32xf32>
    tpu.vector_store %arg17[%c1_275, %c0_276, %c0_277], %544 {strides = array<i32>} : memref<2x2x32xf32, #tpu.memory_space<vmem>>, vector<1x2x32xf32>,
    %545 = arith.index_cast %c2_i32_257 : i32 to index
    %c0_278 = arith.constant 0 : index
    %c0_279 = arith.constant 0 : index
    %546 = vector.load %arg19[%545, %c0_278, %c0_279] : memref<8x2x32xf32, #tpu.memory_space<vmem>>, vector<1x2x32xf32>
    %547 = vector.shape_cast %546 : vector<1x2x32xf32> to vector<2x32xf32>
    %548 = vector.shape_cast %538 : vector<2x32xf32> to vector<1x2x32xf32>
    tpu.vector_store %arg19[%545, %c0_278, %c0_279], %548 {strides = array<i32>} : memref<8x2x32xf32, #tpu.memory_space<vmem>>, vector<1x2x32xf32>,
    %c3_i32_280 = arith.constant 3 : i32
    %c1_281 = arith.constant 1 : index
    %c0_282 = arith.constant 0 : index
    %c0_283 = arith.constant 0 : index
    %549 = vector.load %arg16[%c1_281, %c0_282, %c0_283] : memref<2x2x32xf32, #tpu.memory_space<vmem>>, vector<1x2x32xf32>
    %550 = vector.shape_cast %549 : vector<1x2x32xf32> to vector<2x32xf32>
    %c1_284 = arith.constant 1 : index
    %c0_285 = arith.constant 0 : index
    %c0_286 = arith.constant 0 : index
    %551 = vector.load %arg17[%c1_284, %c0_285, %c0_286] : memref<2x2x32xf32, #tpu.memory_space<vmem>>, vector<1x2x32xf32>
    %552 = vector.shape_cast %551 : vector<1x2x32xf32> to vector<2x32xf32>
    %553 = arith.index_cast %c3_i32_280 : i32 to index
    %c0_287 = arith.constant 0 : index
    %c0_288 = arith.constant 0 : index
    %554 = vector.load %arg18[%553, %c0_287, %c0_288] : memref<8x2x128xf32, #tpu.memory_space<vmem>>, vector<1x2x128xf32>
    %555 = vector.shape_cast %554 : vector<1x2x128xf32> to vector<2x128xf32>
    %556 = arith.truncf %550 : vector<2x32xf32> to vector<2x32xbf16>
    %c0_289 = arith.constant 0 : index
    %c0_290 = arith.constant 0 : index
    %557 = vector.load %arg9[%c0_289, %c0_290] : memref<32x128xbf16, #tpu.memory_space<vmem>>, vector<32x128xbf16>
    %cst_291 = arith.constant dense<0.000000e+00> : vector<2x128xf32>
    %558 = tpu.matmul %556, %557, %cst_291 {dimension_numbers = #tpu.dot_dimension_numbers<[1], [0], [0], [1], [0, 0, 1, 1], [], []>} : vector<2x32xbf16>, vector<32x128xbf16>, vector<2x128xf32> -> vector<2x128xf32>
    %559 = arith.addf %555, %558 : vector<2x128xf32>
    %560 = vector.extract_strided_slice %559 {offsets = [0, 0], sizes = [2, 32], strides = [1, 1]} : vector<2x128xf32> to vector<2x32xf32>
    %561 = arith.negf %560 : vector<2x32xf32>
    %562 = math.exp %561 : vector<2x32xf32>
    %cst_292 = arith.constant 1.000000e+00 : f32
    %563 = vector.broadcast %cst_292 : f32 to vector<2x32xf32>
    %564 = arith.addf %563, %562 : vector<2x32xf32>
    %565 = arith.divf %563, %564 : vector<2x32xf32>
    %566 = vector.extract_strided_slice %559 {offsets = [0, 32], sizes = [2, 32], strides = [1, 1]} : vector<2x128xf32> to vector<2x32xf32>
    %567 = arith.negf %566 : vector<2x32xf32>
    %568 = math.exp %567 : vector<2x32xf32>
    %cst_293 = arith.constant 1.000000e+00 : f32
    %569 = vector.broadcast %cst_293 : f32 to vector<2x32xf32>
    %570 = arith.addf %569, %568 : vector<2x32xf32>
    %571 = arith.divf %569, %570 : vector<2x32xf32>
    %572 = vector.extract_strided_slice %559 {offsets = [0, 64], sizes = [2, 32], strides = [1, 1]} : vector<2x128xf32> to vector<2x32xf32>
    %573 = math.tanh %572 : vector<2x32xf32>
    %574 = vector.extract_strided_slice %559 {offsets = [0, 96], sizes = [2, 32], strides = [1, 1]} : vector<2x128xf32> to vector<2x32xf32>
    %575 = arith.negf %574 : vector<2x32xf32>
    %576 = math.exp %575 : vector<2x32xf32>
    %cst_294 = arith.constant 1.000000e+00 : f32
    %577 = vector.broadcast %cst_294 : f32 to vector<2x32xf32>
    %578 = arith.addf %577, %576 : vector<2x32xf32>
    %579 = arith.divf %577, %578 : vector<2x32xf32>
    %580 = arith.mulf %571, %552 : vector<2x32xf32>
    %581 = arith.mulf %565, %573 : vector<2x32xf32>
    %582 = arith.addf %580, %581 : vector<2x32xf32>
    %583 = math.tanh %582 : vector<2x32xf32>
    %584 = arith.mulf %579, %583 : vector<2x32xf32>
    %c1_295 = arith.constant 1 : index
    %c0_296 = arith.constant 0 : index
    %c0_297 = arith.constant 0 : index
    %585 = vector.load %arg16[%c1_295, %c0_296, %c0_297] : memref<2x2x32xf32, #tpu.memory_space<vmem>>, vector<1x2x32xf32>
    %586 = vector.shape_cast %585 : vector<1x2x32xf32> to vector<2x32xf32>
    %587 = vector.shape_cast %584 : vector<2x32xf32> to vector<1x2x32xf32>
    tpu.vector_store %arg16[%c1_295, %c0_296, %c0_297], %587 {strides = array<i32>} : memref<2x2x32xf32, #tpu.memory_space<vmem>>, vector<1x2x32xf32>,
    %c1_298 = arith.constant 1 : index
    %c0_299 = arith.constant 0 : index
    %c0_300 = arith.constant 0 : index
    %588 = vector.load %arg17[%c1_298, %c0_299, %c0_300] : memref<2x2x32xf32, #tpu.memory_space<vmem>>, vector<1x2x32xf32>
    %589 = vector.shape_cast %588 : vector<1x2x32xf32> to vector<2x32xf32>
    %590 = vector.shape_cast %582 : vector<2x32xf32> to vector<1x2x32xf32>
    tpu.vector_store %arg17[%c1_298, %c0_299, %c0_300], %590 {strides = array<i32>} : memref<2x2x32xf32, #tpu.memory_space<vmem>>, vector<1x2x32xf32>,
    %591 = arith.index_cast %c3_i32_280 : i32 to index
    %c0_301 = arith.constant 0 : index
    %c0_302 = arith.constant 0 : index
    %592 = vector.load %arg19[%591, %c0_301, %c0_302] : memref<8x2x32xf32, #tpu.memory_space<vmem>>, vector<1x2x32xf32>
    %593 = vector.shape_cast %592 : vector<1x2x32xf32> to vector<2x32xf32>
    %594 = vector.shape_cast %584 : vector<2x32xf32> to vector<1x2x32xf32>
    tpu.vector_store %arg19[%591, %c0_301, %c0_302], %594 {strides = array<i32>} : memref<8x2x32xf32, #tpu.memory_space<vmem>>, vector<1x2x32xf32>,
    %c4_i32_303 = arith.constant 4 : i32
    %c1_304 = arith.constant 1 : index
    %c0_305 = arith.constant 0 : index
    %c0_306 = arith.constant 0 : index
    %595 = vector.load %arg16[%c1_304, %c0_305, %c0_306] : memref<2x2x32xf32, #tpu.memory_space<vmem>>, vector<1x2x32xf32>
    %596 = vector.shape_cast %595 : vector<1x2x32xf32> to vector<2x32xf32>
    %c1_307 = arith.constant 1 : index
    %c0_308 = arith.constant 0 : index
    %c0_309 = arith.constant 0 : index
    %597 = vector.load %arg17[%c1_307, %c0_308, %c0_309] : memref<2x2x32xf32, #tpu.memory_space<vmem>>, vector<1x2x32xf32>
    %598 = vector.shape_cast %597 : vector<1x2x32xf32> to vector<2x32xf32>
    %599 = arith.index_cast %c4_i32_303 : i32 to index
    %c0_310 = arith.constant 0 : index
    %c0_311 = arith.constant 0 : index
    %600 = vector.load %arg18[%599, %c0_310, %c0_311] : memref<8x2x128xf32, #tpu.memory_space<vmem>>, vector<1x2x128xf32>
    %601 = vector.shape_cast %600 : vector<1x2x128xf32> to vector<2x128xf32>
    %602 = arith.truncf %596 : vector<2x32xf32> to vector<2x32xbf16>
    %c0_312 = arith.constant 0 : index
    %c0_313 = arith.constant 0 : index
    %603 = vector.load %arg9[%c0_312, %c0_313] : memref<32x128xbf16, #tpu.memory_space<vmem>>, vector<32x128xbf16>
    %cst_314 = arith.constant dense<0.000000e+00> : vector<2x128xf32>
    %604 = tpu.matmul %602, %603, %cst_314 {dimension_numbers = #tpu.dot_dimension_numbers<[1], [0], [0], [1], [0, 0, 1, 1], [], []>} : vector<2x32xbf16>, vector<32x128xbf16>, vector<2x128xf32> -> vector<2x128xf32>
    %605 = arith.addf %601, %604 : vector<2x128xf32>
    %606 = vector.extract_strided_slice %605 {offsets = [0, 0], sizes = [2, 32], strides = [1, 1]} : vector<2x128xf32> to vector<2x32xf32>
    %607 = arith.negf %606 : vector<2x32xf32>
    %608 = math.exp %607 : vector<2x32xf32>
    %cst_315 = arith.constant 1.000000e+00 : f32
    %609 = vector.broadcast %cst_315 : f32 to vector<2x32xf32>
    %610 = arith.addf %609, %608 : vector<2x32xf32>
    %611 = arith.divf %609, %610 : vector<2x32xf32>
    %612 = vector.extract_strided_slice %605 {offsets = [0, 32], sizes = [2, 32], strides = [1, 1]} : vector<2x128xf32> to vector<2x32xf32>
    %613 = arith.negf %612 : vector<2x32xf32>
    %614 = math.exp %613 : vector<2x32xf32>
    %cst_316 = arith.constant 1.000000e+00 : f32
    %615 = vector.broadcast %cst_316 : f32 to vector<2x32xf32>
    %616 = arith.addf %615, %614 : vector<2x32xf32>
    %617 = arith.divf %615, %616 : vector<2x32xf32>
    %618 = vector.extract_strided_slice %605 {offsets = [0, 64], sizes = [2, 32], strides = [1, 1]} : vector<2x128xf32> to vector<2x32xf32>
    %619 = math.tanh %618 : vector<2x32xf32>
    %620 = vector.extract_strided_slice %605 {offsets = [0, 96], sizes = [2, 32], strides = [1, 1]} : vector<2x128xf32> to vector<2x32xf32>
    %621 = arith.negf %620 : vector<2x32xf32>
    %622 = math.exp %621 : vector<2x32xf32>
    %cst_317 = arith.constant 1.000000e+00 : f32
    %623 = vector.broadcast %cst_317 : f32 to vector<2x32xf32>
    %624 = arith.addf %623, %622 : vector<2x32xf32>
    %625 = arith.divf %623, %624 : vector<2x32xf32>
    %626 = arith.mulf %617, %598 : vector<2x32xf32>
    %627 = arith.mulf %611, %619 : vector<2x32xf32>
    %628 = arith.addf %626, %627 : vector<2x32xf32>
    %629 = math.tanh %628 : vector<2x32xf32>
    %630 = arith.mulf %625, %629 : vector<2x32xf32>
    %c1_318 = arith.constant 1 : index
    %c0_319 = arith.constant 0 : index
    %c0_320 = arith.constant 0 : index
    %631 = vector.load %arg16[%c1_318, %c0_319, %c0_320] : memref<2x2x32xf32, #tpu.memory_space<vmem>>, vector<1x2x32xf32>
    %632 = vector.shape_cast %631 : vector<1x2x32xf32> to vector<2x32xf32>
    %633 = vector.shape_cast %630 : vector<2x32xf32> to vector<1x2x32xf32>
    tpu.vector_store %arg16[%c1_318, %c0_319, %c0_320], %633 {strides = array<i32>} : memref<2x2x32xf32, #tpu.memory_space<vmem>>, vector<1x2x32xf32>,
    %c1_321 = arith.constant 1 : index
    %c0_322 = arith.constant 0 : index
    %c0_323 = arith.constant 0 : index
    %634 = vector.load %arg17[%c1_321, %c0_322, %c0_323] : memref<2x2x32xf32, #tpu.memory_space<vmem>>, vector<1x2x32xf32>
    %635 = vector.shape_cast %634 : vector<1x2x32xf32> to vector<2x32xf32>
    %636 = vector.shape_cast %628 : vector<2x32xf32> to vector<1x2x32xf32>
    tpu.vector_store %arg17[%c1_321, %c0_322, %c0_323], %636 {strides = array<i32>} : memref<2x2x32xf32, #tpu.memory_space<vmem>>, vector<1x2x32xf32>,
    %637 = arith.index_cast %c4_i32_303 : i32 to index
    %c0_324 = arith.constant 0 : index
    %c0_325 = arith.constant 0 : index
    %638 = vector.load %arg19[%637, %c0_324, %c0_325] : memref<8x2x32xf32, #tpu.memory_space<vmem>>, vector<1x2x32xf32>
    %639 = vector.shape_cast %638 : vector<1x2x32xf32> to vector<2x32xf32>
    %640 = vector.shape_cast %630 : vector<2x32xf32> to vector<1x2x32xf32>
    tpu.vector_store %arg19[%637, %c0_324, %c0_325], %640 {strides = array<i32>} : memref<8x2x32xf32, #tpu.memory_space<vmem>>, vector<1x2x32xf32>,
    %c5_i32_326 = arith.constant 5 : i32
    %c1_327 = arith.constant 1 : index
    %c0_328 = arith.constant 0 : index
    %c0_329 = arith.constant 0 : index
    %641 = vector.load %arg16[%c1_327, %c0_328, %c0_329] : memref<2x2x32xf32, #tpu.memory_space<vmem>>, vector<1x2x32xf32>
    %642 = vector.shape_cast %641 : vector<1x2x32xf32> to vector<2x32xf32>
    %c1_330 = arith.constant 1 : index
    %c0_331 = arith.constant 0 : index
    %c0_332 = arith.constant 0 : index
    %643 = vector.load %arg17[%c1_330, %c0_331, %c0_332] : memref<2x2x32xf32, #tpu.memory_space<vmem>>, vector<1x2x32xf32>
    %644 = vector.shape_cast %643 : vector<1x2x32xf32> to vector<2x32xf32>
    %645 = arith.index_cast %c5_i32_326 : i32 to index
    %c0_333 = arith.constant 0 : index
    %c0_334 = arith.constant 0 : index
    %646 = vector.load %arg18[%645, %c0_333, %c0_334] : memref<8x2x128xf32, #tpu.memory_space<vmem>>, vector<1x2x128xf32>
    %647 = vector.shape_cast %646 : vector<1x2x128xf32> to vector<2x128xf32>
    %648 = arith.truncf %642 : vector<2x32xf32> to vector<2x32xbf16>
    %c0_335 = arith.constant 0 : index
    %c0_336 = arith.constant 0 : index
    %649 = vector.load %arg9[%c0_335, %c0_336] : memref<32x128xbf16, #tpu.memory_space<vmem>>, vector<32x128xbf16>
    %cst_337 = arith.constant dense<0.000000e+00> : vector<2x128xf32>
    %650 = tpu.matmul %648, %649, %cst_337 {dimension_numbers = #tpu.dot_dimension_numbers<[1], [0], [0], [1], [0, 0, 1, 1], [], []>} : vector<2x32xbf16>, vector<32x128xbf16>, vector<2x128xf32> -> vector<2x128xf32>
    %651 = arith.addf %647, %650 : vector<2x128xf32>
    %652 = vector.extract_strided_slice %651 {offsets = [0, 0], sizes = [2, 32], strides = [1, 1]} : vector<2x128xf32> to vector<2x32xf32>
    %653 = arith.negf %652 : vector<2x32xf32>
    %654 = math.exp %653 : vector<2x32xf32>
    %cst_338 = arith.constant 1.000000e+00 : f32
    %655 = vector.broadcast %cst_338 : f32 to vector<2x32xf32>
    %656 = arith.addf %655, %654 : vector<2x32xf32>
    %657 = arith.divf %655, %656 : vector<2x32xf32>
    %658 = vector.extract_strided_slice %651 {offsets = [0, 32], sizes = [2, 32], strides = [1, 1]} : vector<2x128xf32> to vector<2x32xf32>
    %659 = arith.negf %658 : vector<2x32xf32>
    %660 = math.exp %659 : vector<2x32xf32>
    %cst_339 = arith.constant 1.000000e+00 : f32
    %661 = vector.broadcast %cst_339 : f32 to vector<2x32xf32>
    %662 = arith.addf %661, %660 : vector<2x32xf32>
    %663 = arith.divf %661, %662 : vector<2x32xf32>
    %664 = vector.extract_strided_slice %651 {offsets = [0, 64], sizes = [2, 32], strides = [1, 1]} : vector<2x128xf32> to vector<2x32xf32>
    %665 = math.tanh %664 : vector<2x32xf32>
    %666 = vector.extract_strided_slice %651 {offsets = [0, 96], sizes = [2, 32], strides = [1, 1]} : vector<2x128xf32> to vector<2x32xf32>
    %667 = arith.negf %666 : vector<2x32xf32>
    %668 = math.exp %667 : vector<2x32xf32>
    %cst_340 = arith.constant 1.000000e+00 : f32
    %669 = vector.broadcast %cst_340 : f32 to vector<2x32xf32>
    %670 = arith.addf %669, %668 : vector<2x32xf32>
    %671 = arith.divf %669, %670 : vector<2x32xf32>
    %672 = arith.mulf %663, %644 : vector<2x32xf32>
    %673 = arith.mulf %657, %665 : vector<2x32xf32>
    %674 = arith.addf %672, %673 : vector<2x32xf32>
    %675 = math.tanh %674 : vector<2x32xf32>
    %676 = arith.mulf %671, %675 : vector<2x32xf32>
    %c1_341 = arith.constant 1 : index
    %c0_342 = arith.constant 0 : index
    %c0_343 = arith.constant 0 : index
    %677 = vector.load %arg16[%c1_341, %c0_342, %c0_343] : memref<2x2x32xf32, #tpu.memory_space<vmem>>, vector<1x2x32xf32>
    %678 = vector.shape_cast %677 : vector<1x2x32xf32> to vector<2x32xf32>
    %679 = vector.shape_cast %676 : vector<2x32xf32> to vector<1x2x32xf32>
    tpu.vector_store %arg16[%c1_341, %c0_342, %c0_343], %679 {strides = array<i32>} : memref<2x2x32xf32, #tpu.memory_space<vmem>>, vector<1x2x32xf32>,
    %c1_344 = arith.constant 1 : index
    %c0_345 = arith.constant 0 : index
    %c0_346 = arith.constant 0 : index
    %680 = vector.load %arg17[%c1_344, %c0_345, %c0_346] : memref<2x2x32xf32, #tpu.memory_space<vmem>>, vector<1x2x32xf32>
    %681 = vector.shape_cast %680 : vector<1x2x32xf32> to vector<2x32xf32>
    %682 = vector.shape_cast %674 : vector<2x32xf32> to vector<1x2x32xf32>
    tpu.vector_store %arg17[%c1_344, %c0_345, %c0_346], %682 {strides = array<i32>} : memref<2x2x32xf32, #tpu.memory_space<vmem>>, vector<1x2x32xf32>,
    %683 = arith.index_cast %c5_i32_326 : i32 to index
    %c0_347 = arith.constant 0 : index
    %c0_348 = arith.constant 0 : index
    %684 = vector.load %arg19[%683, %c0_347, %c0_348] : memref<8x2x32xf32, #tpu.memory_space<vmem>>, vector<1x2x32xf32>
    %685 = vector.shape_cast %684 : vector<1x2x32xf32> to vector<2x32xf32>
    %686 = vector.shape_cast %676 : vector<2x32xf32> to vector<1x2x32xf32>
    tpu.vector_store %arg19[%683, %c0_347, %c0_348], %686 {strides = array<i32>} : memref<8x2x32xf32, #tpu.memory_space<vmem>>, vector<1x2x32xf32>,
    %c6_i32_349 = arith.constant 6 : i32
    %c1_350 = arith.constant 1 : index
    %c0_351 = arith.constant 0 : index
    %c0_352 = arith.constant 0 : index
    %687 = vector.load %arg16[%c1_350, %c0_351, %c0_352] : memref<2x2x32xf32, #tpu.memory_space<vmem>>, vector<1x2x32xf32>
    %688 = vector.shape_cast %687 : vector<1x2x32xf32> to vector<2x32xf32>
    %c1_353 = arith.constant 1 : index
    %c0_354 = arith.constant 0 : index
    %c0_355 = arith.constant 0 : index
    %689 = vector.load %arg17[%c1_353, %c0_354, %c0_355] : memref<2x2x32xf32, #tpu.memory_space<vmem>>, vector<1x2x32xf32>
    %690 = vector.shape_cast %689 : vector<1x2x32xf32> to vector<2x32xf32>
    %691 = arith.index_cast %c6_i32_349 : i32 to index
    %c0_356 = arith.constant 0 : index
    %c0_357 = arith.constant 0 : index
    %692 = vector.load %arg18[%691, %c0_356, %c0_357] : memref<8x2x128xf32, #tpu.memory_space<vmem>>, vector<1x2x128xf32>
    %693 = vector.shape_cast %692 : vector<1x2x128xf32> to vector<2x128xf32>
    %694 = arith.truncf %688 : vector<2x32xf32> to vector<2x32xbf16>
    %c0_358 = arith.constant 0 : index
    %c0_359 = arith.constant 0 : index
    %695 = vector.load %arg9[%c0_358, %c0_359] : memref<32x128xbf16, #tpu.memory_space<vmem>>, vector<32x128xbf16>
    %cst_360 = arith.constant dense<0.000000e+00> : vector<2x128xf32>
    %696 = tpu.matmul %694, %695, %cst_360 {dimension_numbers = #tpu.dot_dimension_numbers<[1], [0], [0], [1], [0, 0, 1, 1], [], []>} : vector<2x32xbf16>, vector<32x128xbf16>, vector<2x128xf32> -> vector<2x128xf32>
    %697 = arith.addf %693, %696 : vector<2x128xf32>
    %698 = vector.extract_strided_slice %697 {offsets = [0, 0], sizes = [2, 32], strides = [1, 1]} : vector<2x128xf32> to vector<2x32xf32>
    %699 = arith.negf %698 : vector<2x32xf32>
    %700 = math.exp %699 : vector<2x32xf32>
    %cst_361 = arith.constant 1.000000e+00 : f32
    %701 = vector.broadcast %cst_361 : f32 to vector<2x32xf32>
    %702 = arith.addf %701, %700 : vector<2x32xf32>
    %703 = arith.divf %701, %702 : vector<2x32xf32>
    %704 = vector.extract_strided_slice %697 {offsets = [0, 32], sizes = [2, 32], strides = [1, 1]} : vector<2x128xf32> to vector<2x32xf32>
    %705 = arith.negf %704 : vector<2x32xf32>
    %706 = math.exp %705 : vector<2x32xf32>
    %cst_362 = arith.constant 1.000000e+00 : f32
    %707 = vector.broadcast %cst_362 : f32 to vector<2x32xf32>
    %708 = arith.addf %707, %706 : vector<2x32xf32>
    %709 = arith.divf %707, %708 : vector<2x32xf32>
    %710 = vector.extract_strided_slice %697 {offsets = [0, 64], sizes = [2, 32], strides = [1, 1]} : vector<2x128xf32> to vector<2x32xf32>
    %711 = math.tanh %710 : vector<2x32xf32>
    %712 = vector.extract_strided_slice %697 {offsets = [0, 96], sizes = [2, 32], strides = [1, 1]} : vector<2x128xf32> to vector<2x32xf32>
    %713 = arith.negf %712 : vector<2x32xf32>
    %714 = math.exp %713 : vector<2x32xf32>
    %cst_363 = arith.constant 1.000000e+00 : f32
    %715 = vector.broadcast %cst_363 : f32 to vector<2x32xf32>
    %716 = arith.addf %715, %714 : vector<2x32xf32>
    %717 = arith.divf %715, %716 : vector<2x32xf32>
    %718 = arith.mulf %709, %690 : vector<2x32xf32>
    %719 = arith.mulf %703, %711 : vector<2x32xf32>
    %720 = arith.addf %718, %719 : vector<2x32xf32>
    %721 = math.tanh %720 : vector<2x32xf32>
    %722 = arith.mulf %717, %721 : vector<2x32xf32>
    %c1_364 = arith.constant 1 : index
    %c0_365 = arith.constant 0 : index
    %c0_366 = arith.constant 0 : index
    %723 = vector.load %arg16[%c1_364, %c0_365, %c0_366] : memref<2x2x32xf32, #tpu.memory_space<vmem>>, vector<1x2x32xf32>
    %724 = vector.shape_cast %723 : vector<1x2x32xf32> to vector<2x32xf32>
    %725 = vector.shape_cast %722 : vector<2x32xf32> to vector<1x2x32xf32>
    tpu.vector_store %arg16[%c1_364, %c0_365, %c0_366], %725 {strides = array<i32>} : memref<2x2x32xf32, #tpu.memory_space<vmem>>, vector<1x2x32xf32>,
    %c1_367 = arith.constant 1 : index
    %c0_368 = arith.constant 0 : index
    %c0_369 = arith.constant 0 : index
    %726 = vector.load %arg17[%c1_367, %c0_368, %c0_369] : memref<2x2x32xf32, #tpu.memory_space<vmem>>, vector<1x2x32xf32>
    %727 = vector.shape_cast %726 : vector<1x2x32xf32> to vector<2x32xf32>
    %728 = vector.shape_cast %720 : vector<2x32xf32> to vector<1x2x32xf32>
    tpu.vector_store %arg17[%c1_367, %c0_368, %c0_369], %728 {strides = array<i32>} : memref<2x2x32xf32, #tpu.memory_space<vmem>>, vector<1x2x32xf32>,
    %729 = arith.index_cast %c6_i32_349 : i32 to index
    %c0_370 = arith.constant 0 : index
    %c0_371 = arith.constant 0 : index
    %730 = vector.load %arg19[%729, %c0_370, %c0_371] : memref<8x2x32xf32, #tpu.memory_space<vmem>>, vector<1x2x32xf32>
    %731 = vector.shape_cast %730 : vector<1x2x32xf32> to vector<2x32xf32>
    %732 = vector.shape_cast %722 : vector<2x32xf32> to vector<1x2x32xf32>
    tpu.vector_store %arg19[%729, %c0_370, %c0_371], %732 {strides = array<i32>} : memref<8x2x32xf32, #tpu.memory_space<vmem>>, vector<1x2x32xf32>,
    %c7_i32_372 = arith.constant 7 : i32
    %c1_373 = arith.constant 1 : index
    %c0_374 = arith.constant 0 : index
    %c0_375 = arith.constant 0 : index
    %733 = vector.load %arg16[%c1_373, %c0_374, %c0_375] : memref<2x2x32xf32, #tpu.memory_space<vmem>>, vector<1x2x32xf32>
    %734 = vector.shape_cast %733 : vector<1x2x32xf32> to vector<2x32xf32>
    %c1_376 = arith.constant 1 : index
    %c0_377 = arith.constant 0 : index
    %c0_378 = arith.constant 0 : index
    %735 = vector.load %arg17[%c1_376, %c0_377, %c0_378] : memref<2x2x32xf32, #tpu.memory_space<vmem>>, vector<1x2x32xf32>
    %736 = vector.shape_cast %735 : vector<1x2x32xf32> to vector<2x32xf32>
    %737 = arith.index_cast %c7_i32_372 : i32 to index
    %c0_379 = arith.constant 0 : index
    %c0_380 = arith.constant 0 : index
    %738 = vector.load %arg18[%737, %c0_379, %c0_380] : memref<8x2x128xf32, #tpu.memory_space<vmem>>, vector<1x2x128xf32>
    %739 = vector.shape_cast %738 : vector<1x2x128xf32> to vector<2x128xf32>
    %740 = arith.truncf %734 : vector<2x32xf32> to vector<2x32xbf16>
    %c0_381 = arith.constant 0 : index
    %c0_382 = arith.constant 0 : index
    %741 = vector.load %arg9[%c0_381, %c0_382] : memref<32x128xbf16, #tpu.memory_space<vmem>>, vector<32x128xbf16>
    %cst_383 = arith.constant dense<0.000000e+00> : vector<2x128xf32>
    %742 = tpu.matmul %740, %741, %cst_383 {dimension_numbers = #tpu.dot_dimension_numbers<[1], [0], [0], [1], [0, 0, 1, 1], [], []>} : vector<2x32xbf16>, vector<32x128xbf16>, vector<2x128xf32> -> vector<2x128xf32>
    %743 = arith.addf %739, %742 : vector<2x128xf32>
    %744 = vector.extract_strided_slice %743 {offsets = [0, 0], sizes = [2, 32], strides = [1, 1]} : vector<2x128xf32> to vector<2x32xf32>
    %745 = arith.negf %744 : vector<2x32xf32>
    %746 = math.exp %745 : vector<2x32xf32>
    %cst_384 = arith.constant 1.000000e+00 : f32
    %747 = vector.broadcast %cst_384 : f32 to vector<2x32xf32>
    %748 = arith.addf %747, %746 : vector<2x32xf32>
    %749 = arith.divf %747, %748 : vector<2x32xf32>
    %750 = vector.extract_strided_slice %743 {offsets = [0, 32], sizes = [2, 32], strides = [1, 1]} : vector<2x128xf32> to vector<2x32xf32>
    %751 = arith.negf %750 : vector<2x32xf32>
    %752 = math.exp %751 : vector<2x32xf32>
    %cst_385 = arith.constant 1.000000e+00 : f32
    %753 = vector.broadcast %cst_385 : f32 to vector<2x32xf32>
    %754 = arith.addf %753, %752 : vector<2x32xf32>
    %755 = arith.divf %753, %754 : vector<2x32xf32>
    %756 = vector.extract_strided_slice %743 {offsets = [0, 64], sizes = [2, 32], strides = [1, 1]} : vector<2x128xf32> to vector<2x32xf32>
    %757 = math.tanh %756 : vector<2x32xf32>
    %758 = vector.extract_strided_slice %743 {offsets = [0, 96], sizes = [2, 32], strides = [1, 1]} : vector<2x128xf32> to vector<2x32xf32>
    %759 = arith.negf %758 : vector<2x32xf32>
    %760 = math.exp %759 : vector<2x32xf32>
    %cst_386 = arith.constant 1.000000e+00 : f32
    %761 = vector.broadcast %cst_386 : f32 to vector<2x32xf32>
    %762 = arith.addf %761, %760 : vector<2x32xf32>
    %763 = arith.divf %761, %762 : vector<2x32xf32>
    %764 = arith.mulf %755, %736 : vector<2x32xf32>
    %765 = arith.mulf %749, %757 : vector<2x32xf32>
    %766 = arith.addf %764, %765 : vector<2x32xf32>
    %767 = math.tanh %766 : vector<2x32xf32>
    %768 = arith.mulf %763, %767 : vector<2x32xf32>
    %c1_387 = arith.constant 1 : index
    %c0_388 = arith.constant 0 : index
    %c0_389 = arith.constant 0 : index
    %769 = vector.load %arg16[%c1_387, %c0_388, %c0_389] : memref<2x2x32xf32, #tpu.memory_space<vmem>>, vector<1x2x32xf32>
    %770 = vector.shape_cast %769 : vector<1x2x32xf32> to vector<2x32xf32>
    %771 = vector.shape_cast %768 : vector<2x32xf32> to vector<1x2x32xf32>
    tpu.vector_store %arg16[%c1_387, %c0_388, %c0_389], %771 {strides = array<i32>} : memref<2x2x32xf32, #tpu.memory_space<vmem>>, vector<1x2x32xf32>,
    %c1_390 = arith.constant 1 : index
    %c0_391 = arith.constant 0 : index
    %c0_392 = arith.constant 0 : index
    %772 = vector.load %arg17[%c1_390, %c0_391, %c0_392] : memref<2x2x32xf32, #tpu.memory_space<vmem>>, vector<1x2x32xf32>
    %773 = vector.shape_cast %772 : vector<1x2x32xf32> to vector<2x32xf32>
    %774 = vector.shape_cast %766 : vector<2x32xf32> to vector<1x2x32xf32>
    tpu.vector_store %arg17[%c1_390, %c0_391, %c0_392], %774 {strides = array<i32>} : memref<2x2x32xf32, #tpu.memory_space<vmem>>, vector<1x2x32xf32>,
    %775 = arith.index_cast %c7_i32_372 : i32 to index
    %c0_393 = arith.constant 0 : index
    %c0_394 = arith.constant 0 : index
    %776 = vector.load %arg19[%775, %c0_393, %c0_394] : memref<8x2x32xf32, #tpu.memory_space<vmem>>, vector<1x2x32xf32>
    %777 = vector.shape_cast %776 : vector<1x2x32xf32> to vector<2x32xf32>
    %778 = vector.shape_cast %768 : vector<2x32xf32> to vector<1x2x32xf32>
    tpu.vector_store %arg19[%775, %c0_393, %c0_394], %778 {strides = array<i32>} : memref<8x2x32xf32, #tpu.memory_space<vmem>>, vector<1x2x32xf32>,
    %c8_i32_395 = arith.constant 8 : i32
    %c0_396 = arith.constant 0 : index
    %c0_397 = arith.constant 0 : index
    %779 = vector.load %arg11[%c0_396, %c0_397] : memref<32x16xbf16, #tpu.memory_space<vmem>>, vector<32x16xbf16>
    %c0_398 = arith.constant 0 : index
    %c0_399 = arith.constant 0 : index
    %780 = vector.load %arg12[%c0_398, %c0_399] : memref<1x16xf32, #tpu.memory_space<vmem>>, vector<1x16xf32>
    %c0_400 = arith.constant 0 : index
    %c0_401 = arith.constant 0 : index
    %c0_402 = arith.constant 0 : index
    %781 = vector.load %arg19[%c0_400, %c0_401, %c0_402] : memref<8x2x32xf32, #tpu.memory_space<vmem>>, vector<8x1x32xf32>
    %782 = vector.shape_cast %781 : vector<8x1x32xf32> to vector<8x32xf32>
    %783 = arith.truncf %782 : vector<8x32xf32> to vector<8x32xbf16>
    %cst_403 = arith.constant dense<0.000000e+00> : vector<8x16xf32>
    %784 = tpu.matmul %783, %779, %cst_403 {dimension_numbers = #tpu.dot_dimension_numbers<[1], [0], [0], [1], [0, 0, 1, 1], [], []>} : vector<8x32xbf16>, vector<32x16xbf16>, vector<8x16xf32> -> vector<8x16xf32>
    %785 = vector.broadcast %780 : vector<1x16xf32> to vector<8x16xf32>
    %786 = arith.addf %784, %785 : vector<8x16xf32>
    %c0_404 = arith.constant 0 : index
    %c0_405 = arith.constant 0 : index
    %c0_406 = arith.constant 0 : index
    %787 = vector.load %arg13[%c0_404, %c0_405, %c0_406] : memref<2x8x16xf32, #tpu.memory_space<vmem>>, vector<1x8x16xf32>
    %788 = vector.shape_cast %787 : vector<1x8x16xf32> to vector<8x16xf32>
    %789 = vector.shape_cast %786 : vector<8x16xf32> to vector<1x8x16xf32>
    tpu.vector_store %arg13[%c0_404, %c0_405, %c0_406], %789 {strides = array<i32>} : memref<2x8x16xf32, #tpu.memory_space<vmem>>, vector<1x8x16xf32>,
    %c0_407 = arith.constant 0 : index
    %c1_408 = arith.constant 1 : index
    %c0_409 = arith.constant 0 : index
    %790 = vector.load %arg19[%c0_407, %c1_408, %c0_409] : memref<8x2x32xf32, #tpu.memory_space<vmem>>, vector<8x1x32xf32>
    %791 = vector.shape_cast %790 : vector<8x1x32xf32> to vector<8x32xf32>
    %792 = arith.truncf %791 : vector<8x32xf32> to vector<8x32xbf16>
    %cst_410 = arith.constant dense<0.000000e+00> : vector<8x16xf32>
    %793 = tpu.matmul %792, %779, %cst_410 {dimension_numbers = #tpu.dot_dimension_numbers<[1], [0], [0], [1], [0, 0, 1, 1], [], []>} : vector<8x32xbf16>, vector<32x16xbf16>, vector<8x16xf32> -> vector<8x16xf32>
    %794 = vector.broadcast %780 : vector<1x16xf32> to vector<8x16xf32>
    %795 = arith.addf %793, %794 : vector<8x16xf32>
    %c1_411 = arith.constant 1 : index
    %c0_412 = arith.constant 0 : index
    %c0_413 = arith.constant 0 : index
    %796 = vector.load %arg13[%c1_411, %c0_412, %c0_413] : memref<2x8x16xf32, #tpu.memory_space<vmem>>, vector<1x8x16xf32>
    %797 = vector.shape_cast %796 : vector<1x8x16xf32> to vector<8x16xf32>
    %798 = vector.shape_cast %795 : vector<8x16xf32> to vector<1x8x16xf32>
    tpu.vector_store %arg13[%c1_411, %c0_412, %c0_413], %798 {strides = array<i32>} : memref<2x8x16xf32, #tpu.memory_space<vmem>>, vector<1x8x16xf32>,
    %c0_i32_414 = arith.constant 0 : i32
    %799 = arith.cmpi eq, %arg1, %c0_i32_414 : i32
    %800 = arith.extui %799 : i1 to i32
    %c0_i32_415 = arith.constant 0 : i32
    %801 = arith.cmpi ne, %800, %c0_i32_415 : i32
    scf.if %801 {
      %c0_416 = arith.constant 0 : index
      %c0_417 = arith.constant 0 : index
      %c0_418 = arith.constant 0 : index
      %802 = vector.load %arg16[%c0_416, %c0_417, %c0_418] : memref<2x2x32xf32, #tpu.memory_space<vmem>>, vector<2x2x32xf32>
      %c0_419 = arith.constant 0 : index
      %c0_420 = arith.constant 0 : index
      %c0_421 = arith.constant 0 : index
      %803 = vector.load %arg14[%c0_419, %c0_420, %c0_421] : memref<2x2x32xf32, #tpu.memory_space<vmem>>, vector<2x2x32xf32>
      tpu.vector_store %arg14[%c0_419, %c0_420, %c0_421], %802 {strides = array<i32>} : memref<2x2x32xf32, #tpu.memory_space<vmem>>, vector<2x2x32xf32>,
      %c0_422 = arith.constant 0 : index
      %c0_423 = arith.constant 0 : index
      %c0_424 = arith.constant 0 : index
      %804 = vector.load %arg17[%c0_422, %c0_423, %c0_424] : memref<2x2x32xf32, #tpu.memory_space<vmem>>, vector<2x2x32xf32>
      %c0_425 = arith.constant 0 : index
      %c0_426 = arith.constant 0 : index
      %c0_427 = arith.constant 0 : index
      %805 = vector.load %arg15[%c0_425, %c0_426, %c0_427] : memref<2x2x32xf32, #tpu.memory_space<vmem>>, vector<2x2x32xf32>
      tpu.vector_store %arg15[%c0_425, %c0_426, %c0_427], %804 {strides = array<i32>} : memref<2x2x32xf32, #tpu.memory_space<vmem>>, vector<2x2x32xf32>,
    } else {
    }
    return
  }
  func.func @transform_0(%arg0: i32, %arg1: i32) -> (i32, i32, i32) {
    %c0_i32 = arith.constant 0 : i32
    %c0_i32_0 = arith.constant 0 : i32
    return %arg0, %arg1, %c0_i32 : i32, i32, i32
  }
  func.func @transform_1(%arg0: i32, %arg1: i32) -> (i32, i32, i32) {
    %c0_i32 = arith.constant 0 : i32
    %c0_i32_0 = arith.constant 0 : i32
    %c0_i32_1 = arith.constant 0 : i32
    return %c0_i32, %arg0, %c0_i32_0 : i32, i32, i32
  }
  func.func @transform_2(%arg0: i32, %arg1: i32) -> (i32, i32, i32) {
    %c0_i32 = arith.constant 0 : i32
    %c0_i32_0 = arith.constant 0 : i32
    %c0_i32_1 = arith.constant 0 : i32
    return %c0_i32, %arg0, %c0_i32_0 : i32, i32, i32
  }
  func.func @transform_3(%arg0: i32, %arg1: i32) -> (i32, i32) {
    %c0_i32 = arith.constant 0 : i32
    %c0_i32_0 = arith.constant 0 : i32
    %c0_i32_1 = arith.constant 0 : i32
    return %c0_i32, %c0_i32_0 : i32, i32
  }
  func.func @transform_4(%arg0: i32, %arg1: i32) -> (i32, i32) {
    %c0_i32 = arith.constant 0 : i32
    %c0_i32_0 = arith.constant 0 : i32
    %c0_i32_1 = arith.constant 0 : i32
    return %c0_i32, %c0_i32_0 : i32, i32
  }
  func.func @transform_5(%arg0: i32, %arg1: i32) -> (i32, i32) {
    %c0_i32 = arith.constant 0 : i32
    %c0_i32_0 = arith.constant 0 : i32
    %c0_i32_1 = arith.constant 0 : i32
    return %c0_i32, %c0_i32_0 : i32, i32
  }
  func.func @transform_6(%arg0: i32, %arg1: i32) -> (i32, i32) {
    %c0_i32 = arith.constant 0 : i32
    %c0_i32_0 = arith.constant 0 : i32
    %c0_i32_1 = arith.constant 0 : i32
    return %c0_i32, %c0_i32_0 : i32, i32
  }
  func.func @transform_7(%arg0: i32, %arg1: i32) -> (i32, i32) {
    %c0_i32 = arith.constant 0 : i32
    %c0_i32_0 = arith.constant 0 : i32
    %c0_i32_1 = arith.constant 0 : i32
    return %c0_i32, %c0_i32_0 : i32, i32
  }
  func.func @transform_8(%arg0: i32, %arg1: i32) -> (i32, i32) {
    %c0_i32 = arith.constant 0 : i32
    %c0_i32_0 = arith.constant 0 : i32
    %c0_i32_1 = arith.constant 0 : i32
    return %c0_i32, %c0_i32_0 : i32, i32
  }
  func.func @transform_9(%arg0: i32, %arg1: i32) -> (i32, i32) {
    %c0_i32 = arith.constant 0 : i32
    %c0_i32_0 = arith.constant 0 : i32
    %c0_i32_1 = arith.constant 0 : i32
    return %c0_i32, %c0_i32_0 : i32, i32
  }
  func.func @transform_10(%arg0: i32, %arg1: i32) -> (i32, i32) {
    %c0_i32 = arith.constant 0 : i32
    %c0_i32_0 = arith.constant 0 : i32
    %c0_i32_1 = arith.constant 0 : i32
    return %c0_i32, %c0_i32_0 : i32, i32
  }
  func.func @transform_11(%arg0: i32, %arg1: i32) -> (i32, i32, i32) {
    %c0_i32 = arith.constant 0 : i32
    %c0_i32_0 = arith.constant 0 : i32
    return %arg0, %arg1, %c0_i32 : i32, i32, i32
  }
  func.func @transform_12(%arg0: i32, %arg1: i32) -> (i32, i32, i32) {
    %c0_i32 = arith.constant 0 : i32
    %c0_i32_0 = arith.constant 0 : i32
    %c0_i32_1 = arith.constant 0 : i32
    return %c0_i32, %arg0, %c0_i32_0 : i32, i32, i32
  }
  func.func @transform_13(%arg0: i32, %arg1: i32) -> (i32, i32, i32) {
    %c0_i32 = arith.constant 0 : i32
    %c0_i32_0 = arith.constant 0 : i32
    %c0_i32_1 = arith.constant 0 : i32
    return %c0_i32, %arg0, %c0_i32_0 : i32, i32, i32
  }
}

</mosaic_0001>

<bundles_post_ra>
// kernel: tpu_custom_call.1
= control target key start
LH: loop header
LB: loop body
LE: loop exit
PB: predicated region body
PF: predicated region fallthrough
CT: control target
= control target key end

     0   :  { %19 = vsyncpa [#allocation7], 0  ;;  %s2878_s0 = inlined_call_operand.vmem [shape: f32[2,8,4], index: 0, kind: input, shape index: {}]   ;;  %s2879_s1 = inlined_call_operand.vmem [shape: f32[2,2,32], index: 1, kind: input, shape index: {}]   ;;  %s2880_s2 = inlined_call_operand.vmem [shape: f32[2,2,32], index: 2, kind: input, shape index: {}]   ;;  %s2881_s3 = inlined_call_operand.vmem [shape: bf16[4,128], index: 3, kind: input, shape index: {}]   ;;  %s2882_s4 = inlined_call_operand.vmem [shape: bf16[32,128], index: 4, kind: input, shape index: {}]   ;;  %s2883_s5 = inlined_call_operand.vmem [shape: f32[1,128], index: 5, kind: input, shape index: {}]   ;;  %s2884_s6 = inlined_call_operand.vmem [shape: bf16[32,128], index: 6, kind: input, shape index: {}]   ;;  %s2885_s7 = inlined_call_operand.hbm [shape: bf16[32,128], index: 7, kind: input, shape index: {}]   ;;  %s2886_s8 = inlined_call_operand.vmem [shape: f32[1,128], index: 8, kind: input, shape index: {}]   ;;  %s2887_s9 = inlined_call_operand.vmem [shape: bf16[32,16], index: 9, kind: input, shape index: {}]   ;;  %s2888_s10 = inlined_call_operand.vmem [shape: f32[1,16], index: 10, kind: input, shape index: {}]   ;;  %s2889_s11 = inlined_call_operand.hbm [shape: f32[2,8,16], index: 11, kind: output, shape index: {0}]   ;;  %s2890_s12 = inlined_call_operand.hbm [shape: f32[2,2,32], index: 12, kind: output, shape index: {1}]   ;;  %s2891_s13 = inlined_call_operand.hbm [shape: f32[2,2,32], index: 13, kind: output, shape index: {2}]  }
   0x1   :  { %20 = vsyncpa [#allocation8], 0 }
   0x2   :  { %21 = vsyncpa [#allocation11], 0  ;;  %s40_s27 = sshll.u32 %s2885_s7, 4  ;;  %s2485_s28 = smov [#allocation6]   ;;  %s41_s27 = int_to_ptr.hbm [resolvable:$true] %s40_s27 }
   0x3   :  { %s42_s29 = sshll.u32 %s2485_s28, 4  ;;  %s2486_s30 = smov 64   ;;  %s43_s29 = int_to_ptr.vmem [resolvable:$true] %s42_s29 }
   0x4   :  { %s2487_s14 = smov 4  }
   0x5   :  { %48 = dma.hbm_to_vmem [thread:$0]  %s41_s27, 256, %s43_s29, [#allocation7], %s2486_s30, %s2486_s30, %s2487_s14  }
   0x6   :  { %2479 = dma.done.wait [#allocation7], 256  }
   0x7   :  { %2480 = vsyncadd [#allocation7], 4294967040  ;;  %vm84_vm0 = vcmask 1041408   ;;  %vm66_vm1 = vcmask 254976   ;;  %v73_v0 = vld [vmem:[%s2881_s3] sm:$0x3] }
   0x8   :  { %v2206_v1 = vld [vmem:[%s2882_s4 + $0x8] sm:$0xff]  ;;  %v75_v2 = vld [vmem:[%s2878_s0] sm:$0xff]  ;;  %v86_v3 = vsel %vm84_vm0, %v73_v0, 0  ;;  %vm80_vm2 = vcmask 31744   ;;  %vm186_vm3 = vcmask 261120   ;;  %s2489_s28 = smov 96  }
   0x9   :  { %v76_v4 = vpack.c.bf16 %v75_v2, %v75_v2  ;;  %v2023_v5 = vld [vmem:[%s2878_s0 + $0x8] sm:$0xff]  ;;  %v64_v6 = vld [vmem:[%s2879_s1] sm:$0x3]  ;;  %95 = vmatpush.bf16.msra.mxu0 %v86_v3  ;;  %137 = vmatpush.bf16.msra.mxu1 %v86_v3  ;;  %s1987_s29 = sshll.u32 %s2890_s12, 4  ;;  %s2490_s14 = smov [#allocation10]   ;;  %s1988_s29 = int_to_ptr.hbm [resolvable:$true] %s1987_s29 }
   0xa   :  { %v126_v7 = vpack.c.bf16 %v2023_v5, %v2023_v5  ;;  %67 = vst.msk [vmem:[#allocation2] sm:$0x3] %vm66_vm1, %v64_v6  ;;  %196 = vmatpush.bf16.msra.mxu2 %v2206_v1  ;;  %v2205_v8 = vld [vmem:[%s2882_s4] sm:$0xff]  ;;  %v2208_v61 = vld [vmem:[%s2882_s4 + $0x8] sm:$0xff]  ;;  %s1985_s15 = sshll.u32 %s2490_s14, 4  ;;  %s2491_s16 = smov 2   ;;  %s1986_s15 = int_to_ptr.vmem [resolvable:$true] %s1985_s15 }
   0xb   :  { %v69_v11 = vld [vmem:[%s2880_s2] sm:$0x3]  ;;  %287 = vmatpush.bf16.msra.mxu3 %v2208_v61  ;;  %s2492_s17 = smov [#allocation12]   ;;  %s2000_s20 = sshll.u32 %s2891_s13, 4  ;;  %s2001_s20 = int_to_ptr.hbm [resolvable:$true] %s2000_s20 }
   0xc   :  { %2022 = vmatmul.msk.bf16.vlgmr.msra.gmra.mxu0 %vm80_vm2, %v76_v4  ;;  %2024 = vmatmul.msk.bf16.vlgmr.msra.gmra.mxu1 %vm80_vm2, %v126_v7  ;;  %71 = vst.msk [vmem:[#allocation3] sm:$0x3] %vm66_vm1, %v69_v11  ;;  %v2252_v12 = vld [vmem:[%s2883_s5] ss:$0 sm:$0xff]  ;;  %s2488_s5 = smov 32   ;;  %s1998_s18 = sshll.u32 %s2492_s17, 4  ;;  %s1999_s18 = int_to_ptr.vmem [resolvable:$true] %s1998_s18 }
   0xd   :  { %v2207_v62 = vld [vmem:[%s2882_s4] sm:$0xff]  ;;  %s1974_s24 = sshll.u32 %s2889_s11, 4  ;;  %s2494_s13 = smov 128   ;;  %s1975_s24 = int_to_ptr.hbm [resolvable:$true] %s1974_s24 }
   0xe   :  { %197 = vmatpush.bf16.msra.mxu2 %v2205_v8 }
   0xf   :  { %288 = vmatpush.bf16.msra.mxu3 %v2207_v62 }
  0x11   :  { %v166_v9 = vld [vmem:[#allocation2] sm:$0x3] }
  0x12   :  { %v169_v10 = vpack.c.bf16 %v166_v9, %v166_v9 }
  0x13   :  { %v167_v38 = vld [vmem:[#allocation3] sm:$0x3] }
  0x14   :  { %2033 = vmatmul.msk.bf16.vlgmr.msra.gmra.mxu2 %vm186_vm3, %v169_v10 }
  0x89   :  { %v97_v13 = vpop.f32.mrf.mxu0  ;;  %v139_v14 = vpop.f32.mrf.mxu1 }
  0x8a   :  { %v98_v15 = vadd.f32 %v2252_v12, %v97_v13  ;;  %v140_v16 = vadd.f32 %v2252_v12, %v139_v14 }
  0x8c   :  { %v102_v17 = vrot.slane %v98_v15, 1  ;;  %v103_v18 = vrot.slane %v98_v15, 2  ;;  %v104_v19 = vrot.slane %v98_v15, 3  ;;  %116 = vst [vmem:[#allocation4] sm:$0x1] %v98_v15  ;;  %v105_v20 = vrot.slane %v98_v15, 4 }
  0x8d   :  { %158 = vst [vmem:[#allocation4 + $0x1] sm:$0x1] %v140_v16  ;;  %v106_v21 = vrot.slane %v98_v15, 5  ;;  %v107_v22 = vrot.slane %v98_v15, 6  ;;  %v108_v23 = vrot.slane %v98_v15, 7  ;;  %v144_v24 = vrot.slane %v140_v16, 1 }
  0x8e   :  { %117 = vst [vmem:[#allocation4 + $0x2] sm:$0x1] %v102_v17  ;;  %v145_v27 = vrot.slane %v140_v16, 2  ;;  %v146_v28 = vrot.slane %v140_v16, 3  ;;  %v147_v29 = vrot.slane %v140_v16, 4  ;;  %v148_v31 = vrot.slane %v140_v16, 5 }
  0x8f   :  { %118 = vst [vmem:[#allocation4 + $0x4] sm:$0x1] %v103_v18  ;;  %v149_v32 = vrot.slane %v140_v16, 6  ;;  %v150_v34 = vrot.slane %v140_v16, 7 }
  0x90   :  { %119 = vst [vmem:[#allocation4 + $0x6] sm:$0x1] %v104_v19 }
  0x91   :  { %120 = vst [vmem:[#allocation4 + $0x8] sm:$0x1] %v105_v20  ;;  %v99_v25 = vpop.f32.mrf.mxu0  ;;  %v141_v26 = vpop.f32.mrf.mxu1 }
  0x92   :  { %121 = vst [vmem:[#allocation4 + $0xa] sm:$0x1] %v106_v21 }
  0x93   :  { %122 = vst [vmem:[#allocation4 + $0xc] sm:$0x1] %v107_v22 }
  0x94   :  { %123 = vst [vmem:[#allocation4 + $0xe] sm:$0x1] %v108_v23  ;;  %v168_v30 = vld [vmem:[#allocation4] sm:$0x3] }
  0x95   :  { %159 = vst [vmem:[#allocation4 + $0x3] sm:$0x1] %v144_v24 }
  0x96   :  { %160 = vst [vmem:[#allocation4 + $0x5] sm:$0x1] %v145_v27 }
  0x97   :  { %v199_v33 = vpop.f32.mrf.mxu2  ;;  %161 = vst [vmem:[#allocation4 + $0x7] sm:$0x1] %v146_v28 }
  0x98   :  { %v203_v35 = vadd.f32 %v199_v33, %v168_v30  ;;  %162 = vst [vmem:[#allocation4 + $0x9] sm:$0x1] %v147_v29  ;;  %v2210_v30 = vld [vmem:[%s2882_s4 + $0x8] sm:$0xff] }
  0x99   :  { %163 = vst [vmem:[#allocation4 + $0xb] sm:$0x1] %v148_v31  ;;  %378 = vmatpush.bf16.msrb.mxu0 %v2210_v30 }
  0x9a   :  { %2255 = vtanh.f32 %v203_v35  ;;  %164 = vst [vmem:[#allocation4 + $0xd] sm:$0x1] %v149_v32  ;;  %v2034_v39 = vmul.f32 -1.442695, %v203_v35 }
  0x9b   :  { %165 = vst [vmem:[#allocation4 + $0xf] sm:$0x1] %v150_v34  ;;  %v2209_v34 = vld [vmem:[%s2882_s4] sm:$0xff] }
  0x9c   :  { %2257 = vpow2.f32 %v2034_v39  ;;  %v260_v4 = vld [vmem:[#allocation4 + $0x2] sm:$0x3] }
  0x9d   :  { %379 = vmatpush.bf16.msrb.mxu0 %v2209_v34  ;;  %v2214_v34 = vld [vmem:[%s2882_s4 + $0x8] sm:$0xff] }
  0x9e   :  { %560 = vmatpush.bf16.msrb.mxu2 %v2214_v34 }
  0x9f   :  { %v201_v36 = vpop.f32.mrf.mxu2 }
  0xa0   :  { %v2256_v37 = vpop.eup %2255 }
  0xa1   :  { %230 = vrot.lane.b32.xlu0 %v2256_v37, %s2486_s30 }
  0xa2   :  { %v2258_v40 = vpop.eup %2257 }
  0xa3   :  { %v207_v41 = vadd.f32 1.0, %v2258_v40 }
  0xa5   :  { %2259 = vrcp.f32 %v207_v41  ;;  %v219_v47 = vand.u32 2147483648, %v207_v41  ;;  %vm213_vm5 = vweird.f32 %v207_v41  ;;  %v217_v48 = vand.u32 2147483647, %v207_v41 }
  0xa7   :  { %v220_v50 = vor.u32 1.1754944e-38, %v219_v47  ;;  %vm218_vm7 = vcmp.eq.f32.partialorder %v217_v48, 8.507059e+37 }
  0xa9   :  { %225 = vrot.lane.b32.xlu0 %v167_v38, %s2488_s5  ;;  %v351_v38 = vld [vmem:[#allocation4 + $0x4] sm:$0x3] }
  0xab   :  { %v2260_v42 = vpop.eup %2259 }
  0xac   :  { %v209_v43 = vmul.f32 %v2260_v42, %v207_v41  ;;  %vm214_vm4 = vweird.f32 %v2260_v42 }
  0xad   :  { %vm215_vm6 = vmor %vm213_vm5, %vm214_vm4 }
  0xae   :  { %v210_v44 = vsub.f32 1.0, %v209_v43 }
  0xb0   :  { %v211_v45 = vmul.f32 %v2260_v42, %v210_v44 }
  0xb2   :  { %v212_v46 = vadd.f32 %v2260_v42, %v211_v45 }
  0xb4   :  { %v216_v49 = vsel %vm215_vm6, %v2260_v42, %v212_v46 }
  0xb5   :  { %v221_v52 = vsel %vm218_vm7, %v220_v50, %v216_v49 }
 0x113   :  { %v231_v51 = vpop.permute.xlu0 %230 }
 0x114   :  { %v233_v53 = vmul.f32 %v231_v51, %v221_v52 }
 0x116   :  { %235 = vrot.lane.b32.xlu1 %v233_v53, %s2488_s5 }
 0x11b   :  { %v226_v54 = vpop.permute.xlu0 %225 }
 0x11c   :  { %v228_v55 = vmul.f32 %v226_v54, %v221_v52 }
 0x188   :  { %v236_v56 = vpop.permute.xlu1 %235 }
 0x189   :  { %v238_v57 = vadd.f32 %v236_v56, %v228_v55 }
 0x18b   :  { %2261 = vtanh.f32 %v238_v57 }
 0x191   :  { %v2262_v58 = vpop.eup %2261 }
 0x192   :  { %241 = vrot.lane.b32.xlu1 %v2262_v58, %s2486_s30 }
 0x204   :  { %v242_v59 = vpop.permute.xlu1 %241 }
 0x205   :  { %v244_v60 = vmul.f32 %v242_v59, %v221_v52 }
 0x207   :  { %246 = vrot.lane.b32.xlu2 %v244_v60, %s2488_s5 }
 0x20f   :  { %252 = vrot.lane.b32.xlu2 %v238_v57, %s2489_s28 }
 0x261   :  { %v247_v63 = vpop.permute.xlu2 %246 }
 0x262   :  { %250 = vst.msk [vmem:[#allocation2] sm:$0x3] %vm66_vm1, %v247_v63 }
 0x263   :  { %256 = vst.msk [vmem:[#allocation5] sm:$0x3] %vm66_vm1, %v247_v63 }
 0x269   :  { %v253_v0 = vpop.permute.xlu2 %252  ;;  %v257_v1 = vld [vmem:[#allocation2] sm:$0x3] }
 0x26a   :  { %255 = vst.msk [vmem:[#allocation3] sm:$0x3] %vm66_vm1, %v253_v0  ;;  %v261_v2 = vpack.c.bf16 %v257_v1, %v257_v1  ;;  %v2212_v0 = vld [vmem:[%s2882_s4 + $0x8] sm:$0xff] }
 0x26b   :  { %469 = vmatpush.bf16.msrb.mxu1 %v2212_v0 }
 0x26c   :  { %2043 = vmatmul.msk.bf16.vlgmr.msra.gmra.mxu3 %vm186_vm3, %v261_v2 }
 0x271   :  { %v258_v3 = vld [vmem:[#allocation3] sm:$0x3] }
 0x272   :  { %316 = vrot.lane.b32.xlu1 %v258_v3, %s2488_s5 }
 0x2e4   :  { %v317_v24 = vpop.permute.xlu1 %316 }
 0x2ef   :  { %v290_v5 = vpop.f32.mrf.mxu3 }
 0x2f0   :  { %v294_v6 = vadd.f32 %v290_v5, %v260_v4  ;;  %v2211_v4 = vld [vmem:[%s2882_s4] sm:$0xff] }
 0x2f1   :  { %470 = vmatpush.bf16.msrb.mxu1 %v2211_v4  ;;  %v2216_v4 = vld [vmem:[%s2882_s4 + $0x8] sm:$0xff] }
 0x2f2   :  { %2263 = vtanh.f32 %v294_v6  ;;  %v2044_v9 = vmul.f32 -1.442695, %v294_v6  ;;  %651 = vmatpush.bf16.msrb.mxu3 %v2216_v4 }
 0x2f4   :  { %2265 = vpow2.f32 %v2044_v9 }
 0x2f7   :  { %v292_v7 = vpop.f32.mrf.mxu3 }
 0x2f8   :  { %v2264_v8 = vpop.eup %2263 }
 0x2f9   :  { %321 = vrot.lane.b32.xlu0 %v2264_v8, %s2486_s30  ;;  %v442_v8 = vld [vmem:[#allocation4 + $0x6] sm:$0x3] }
 0x2fa   :  { %v2266_v10 = vpop.eup %2265 }
 0x2fb   :  { %v298_v11 = vadd.f32 1.0, %v2266_v10 }
 0x2fd   :  { %2267 = vrcp.f32 %v298_v11  ;;  %v310_v17 = vand.u32 2147483648, %v298_v11  ;;  %vm304_vm9 = vweird.f32 %v298_v11  ;;  %v308_v18 = vand.u32 2147483647, %v298_v11 }
 0x2ff   :  { %v311_v20 = vor.u32 1.1754944e-38, %v310_v17  ;;  %vm309_vm11 = vcmp.eq.f32.partialorder %v308_v18, 8.507059e+37 }
 0x303   :  { %v2268_v12 = vpop.eup %2267 }
 0x304   :  { %v300_v13 = vmul.f32 %v2268_v12, %v298_v11  ;;  %vm305_vm8 = vweird.f32 %v2268_v12 }
 0x305   :  { %vm306_vm10 = vmor %vm304_vm9, %vm305_vm8 }
 0x306   :  { %v301_v14 = vsub.f32 1.0, %v300_v13 }
 0x308   :  { %v302_v15 = vmul.f32 %v2268_v12, %v301_v14 }
 0x30a   :  { %v303_v16 = vadd.f32 %v2268_v12, %v302_v15 }
 0x30c   :  { %v307_v19 = vsel %vm306_vm10, %v2268_v12, %v303_v16 }
 0x30d   :  { %v312_v22 = vsel %vm309_vm11, %v311_v20, %v307_v19 }
 0x30e   :  { %v319_v25 = vmul.f32 %v317_v24, %v312_v22 }
 0x36b   :  { %v322_v21 = vpop.permute.xlu0 %321 }
 0x36c   :  { %v324_v23 = vmul.f32 %v322_v21, %v312_v22 }
 0x36e   :  { %326 = vrot.lane.b32.xlu2 %v324_v23, %s2488_s5 }
 0x3c8   :  { %v327_v26 = vpop.permute.xlu2 %326 }
 0x3c9   :  { %v329_v27 = vadd.f32 %v327_v26, %v319_v25 }
 0x3cb   :  { %2269 = vtanh.f32 %v329_v27  ;;  %342 = vrot.lane.b32.xlu2 %v329_v27, %s2489_s28 }
 0x3d1   :  { %v2270_v28 = vpop.eup %2269 }
 0x3d2   :  { %332 = vrot.lane.b32.xlu0 %v2270_v28, %s2486_s30 }
 0x425   :  { %v343_v29 = vpop.permute.xlu2 %342 }
 0x426   :  { %345 = vst.msk [vmem:[#allocation3] sm:$0x3] %vm66_vm1, %v343_v29 }
 0x42d   :  { %v349_v33 = vld [vmem:[#allocation3] sm:$0x3] }
 0x444   :  { %v333_v31 = vpop.permute.xlu0 %332 }
 0x445   :  { %v335_v32 = vmul.f32 %v333_v31, %v312_v22 }
 0x447   :  { %337 = vrot.lane.b32.xlu1 %v335_v32, %s2488_s5 }
 0x44f   :  { %407 = vrot.lane.b32.xlu1 %v349_v33, %s2488_s5 }
 0x4b9   :  { %v338_v35 = vpop.permute.xlu1 %337 }
 0x4ba   :  { %340 = vst.msk [vmem:[#allocation2] sm:$0x3] %vm66_vm1, %v338_v35 }
 0x4bb   :  { %347 = vst.msk [vmem:[#allocation5 + $0x2] sm:$0x3] %vm66_vm1, %v338_v35 }
 0x4c1   :  { %v348_v36 = vld [vmem:[#allocation2] sm:$0x3]  ;;  %v408_v58 = vpop.permute.xlu1 %407 }
 0x4c2   :  { %v352_v37 = vpack.c.bf16 %v348_v36, %v348_v36 }
 0x4c4   :  { %2053 = vmatmul.msk.bf16.vlgmr.msrb.gmra.mxu0 %vm186_vm3, %v352_v37 }
 0x541   :  { %v381_v39 = vpop.f32.mrf.mxu0 }
 0x542   :  { %v385_v40 = vadd.f32 %v381_v39, %v351_v38  ;;  %v2213_v38 = vld [vmem:[%s2882_s4] sm:$0xff] }
 0x543   :  { %561 = vmatpush.bf16.msrb.mxu2 %v2213_v38  ;;  %v2218_v38 = vld [vmem:[%s2882_s4 + $0x8] sm:$0xff] }
 0x544   :  { %2271 = vtanh.f32 %v385_v40  ;;  %v2054_v43 = vmul.f32 -1.442695, %v385_v40  ;;  %742 = vmatpush.bf16.msra.mxu0 %v2218_v38 }
 0x546   :  { %2273 = vpow2.f32 %v2054_v43 }
 0x549   :  { %v383_v41 = vpop.f32.mrf.mxu0 }
 0x54a   :  { %v2272_v42 = vpop.eup %2271 }
 0x54b   :  { %412 = vrot.lane.b32.xlu0 %v2272_v42, %s2486_s30  ;;  %v533_v42 = vld [vmem:[#allocation4 + $0x8] sm:$0x3] }
 0x54c   :  { %v2274_v44 = vpop.eup %2273 }
 0x54d   :  { %v389_v45 = vadd.f32 1.0, %v2274_v44 }
 0x54f   :  { %2275 = vrcp.f32 %v389_v45  ;;  %v401_v51 = vand.u32 2147483648, %v389_v45  ;;  %vm395_vm13 = vweird.f32 %v389_v45  ;;  %v399_v52 = vand.u32 2147483647, %v389_v45 }
 0x551   :  { %v402_v54 = vor.u32 1.1754944e-38, %v401_v51  ;;  %vm400_vm15 = vcmp.eq.f32.partialorder %v399_v52, 8.507059e+37 }
 0x555   :  { %v2276_v46 = vpop.eup %2275 }
 0x556   :  { %v391_v47 = vmul.f32 %v2276_v46, %v389_v45  ;;  %vm396_vm12 = vweird.f32 %v2276_v46 }
 0x557   :  { %vm397_vm14 = vmor %vm395_vm13, %vm396_vm12 }
 0x558   :  { %v392_v48 = vsub.f32 1.0, %v391_v47 }
 0x55a   :  { %v393_v49 = vmul.f32 %v2276_v46, %v392_v48 }
 0x55c   :  { %v394_v50 = vadd.f32 %v2276_v46, %v393_v49 }
 0x55e   :  { %v398_v53 = vsel %vm397_vm14, %v2276_v46, %v394_v50 }
 0x55f   :  { %v403_v56 = vsel %vm400_vm15, %v402_v54, %v398_v53 }
 0x560   :  { %v410_v59 = vmul.f32 %v408_v58, %v403_v56 }
 0x5bd   :  { %v413_v55 = vpop.permute.xlu0 %412 }
 0x5be   :  { %v415_v57 = vmul.f32 %v413_v55, %v403_v56 }
 0x5c0   :  { %417 = vrot.lane.b32.xlu2 %v415_v57, %s2488_s5 }
 0x61a   :  { %v418_v60 = vpop.permute.xlu2 %417 }
 0x61b   :  { %v420_v61 = vadd.f32 %v418_v60, %v410_v59 }
 0x61d   :  { %2277 = vtanh.f32 %v420_v61  ;;  %433 = vrot.lane.b32.xlu2 %v420_v61, %s2489_s28 }
 0x623   :  { %v2278_v62 = vpop.eup %2277 }
 0x624   :  { %423 = vrot.lane.b32.xlu0 %v2278_v62, %s2486_s30 }
 0x677   :  { %v434_v63 = vpop.permute.xlu2 %433 }
 0x678   :  { %436 = vst.msk [vmem:[#allocation3] sm:$0x3] %vm66_vm1, %v434_v63 }
 0x67f   :  { %v440_v3 = vld [vmem:[#allocation3] sm:$0x3] }
 0x696   :  { %v424_v1 = vpop.permute.xlu0 %423 }
 0x697   :  { %v426_v2 = vmul.f32 %v424_v1, %v403_v56 }
 0x699   :  { %428 = vrot.lane.b32.xlu1 %v426_v2, %s2488_s5 }
 0x6a1   :  { %498 = vrot.lane.b32.xlu1 %v440_v3, %s2488_s5 }
 0x70b   :  { %v429_v5 = vpop.permute.xlu1 %428 }
 0x70c   :  { %431 = vst.msk [vmem:[#allocation2] sm:$0x3] %vm66_vm1, %v429_v5 }
 0x70d   :  { %438 = vst.msk [vmem:[#allocation5 + $0x4] sm:$0x3] %vm66_vm1, %v429_v5 }
 0x713   :  { %v439_v6 = vld [vmem:[#allocation2] sm:$0x3]  ;;  %v499_v28 = vpop.permute.xlu1 %498 }
 0x714   :  { %v443_v7 = vpack.c.bf16 %v439_v6, %v439_v6 }
 0x716   :  { %2063 = vmatmul.msk.bf16.vlgmr.msrb.gmra.mxu1 %vm186_vm3, %v443_v7 }
 0x793   :  { %v472_v9 = vpop.f32.mrf.mxu1 }
 0x794   :  { %v476_v10 = vadd.f32 %v472_v9, %v442_v8  ;;  %v2215_v8 = vld [vmem:[%s2882_s4] sm:$0xff] }
 0x795   :  { %652 = vmatpush.bf16.msrb.mxu3 %v2215_v8  ;;  %v2220_v8 = vld [vmem:[%s2882_s4 + $0x8] sm:$0xff] }
 0x796   :  { %2279 = vtanh.f32 %v476_v10  ;;  %v2064_v13 = vmul.f32 -1.442695, %v476_v10  ;;  %833 = vmatpush.bf16.msra.mxu1 %v2220_v8 }
 0x798   :  { %2281 = vpow2.f32 %v2064_v13 }
 0x79b   :  { %v474_v11 = vpop.f32.mrf.mxu1 }
 0x79c   :  { %v2280_v12 = vpop.eup %2279 }
 0x79d   :  { %503 = vrot.lane.b32.xlu0 %v2280_v12, %s2486_s30  ;;  %v624_v12 = vld [vmem:[#allocation4 + $0xa] sm:$0x3] }
 0x79e   :  { %v2282_v14 = vpop.eup %2281 }
 0x79f   :  { %v480_v15 = vadd.f32 1.0, %v2282_v14 }
 0x7a1   :  { %2283 = vrcp.f32 %v480_v15  ;;  %v492_v21 = vand.u32 2147483648, %v480_v15  ;;  %vm486_vm2 = vweird.f32 %v480_v15  ;;  %v490_v22 = vand.u32 2147483647, %v480_v15 }
 0x7a3   :  { %v493_v24 = vor.u32 1.1754944e-38, %v492_v21  ;;  %vm491_vm5 = vcmp.eq.f32.partialorder %v490_v22, 8.507059e+37 }
 0x7a7   :  { %v2284_v16 = vpop.eup %2283 }
 0x7a8   :  { %v482_v17 = vmul.f32 %v2284_v16, %v480_v15  ;;  %vm487_vm0 = vweird.f32 %v2284_v16 }
 0x7a9   :  { %vm488_vm4 = vmor %vm486_vm2, %vm487_vm0 }
 0x7aa   :  { %v483_v18 = vsub.f32 1.0, %v482_v17 }
 0x7ac   :  { %v484_v19 = vmul.f32 %v2284_v16, %v483_v18 }
 0x7ae   :  { %v485_v20 = vadd.f32 %v2284_v16, %v484_v19 }
 0x7b0   :  { %v489_v23 = vsel %vm488_vm4, %v2284_v16, %v485_v20 }
 0x7b1   :  { %v494_v26 = vsel %vm491_vm5, %v493_v24, %v489_v23 }
 0x7b2   :  { %v501_v29 = vmul.f32 %v499_v28, %v494_v26 }
 0x80f   :  { %v504_v25 = vpop.permute.xlu0 %503 }
 0x810   :  { %v506_v27 = vmul.f32 %v504_v25, %v494_v26 }
 0x812   :  { %508 = vrot.lane.b32.xlu2 %v506_v27, %s2488_s5 }
 0x86c   :  { %v509_v30 = vpop.permute.xlu2 %508 }
 0x86d   :  { %v511_v31 = vadd.f32 %v509_v30, %v501_v29 }
 0x86f   :  { %2285 = vtanh.f32 %v511_v31  ;;  %524 = vrot.lane.b32.xlu2 %v511_v31, %s2489_s28 }
 0x875   :  { %v2286_v32 = vpop.eup %2285 }
 0x876   :  { %514 = vrot.lane.b32.xlu0 %v2286_v32, %s2486_s30 }
 0x8c9   :  { %v525_v33 = vpop.permute.xlu2 %524 }
 0x8ca   :  { %527 = vst.msk [vmem:[#allocation3] sm:$0x3] %vm66_vm1, %v525_v33 }
 0x8d1   :  { %v531_v37 = vld [vmem:[#allocation3] sm:$0x3] }
 0x8e8   :  { %v515_v35 = vpop.permute.xlu0 %514 }
 0x8e9   :  { %v517_v36 = vmul.f32 %v515_v35, %v494_v26 }
 0x8eb   :  { %519 = vrot.lane.b32.xlu1 %v517_v36, %s2488_s5 }
 0x8f3   :  { %589 = vrot.lane.b32.xlu1 %v531_v37, %s2488_s5 }
 0x95d   :  { %v520_v39 = vpop.permute.xlu1 %519 }
 0x95e   :  { %522 = vst.msk [vmem:[#allocation2] sm:$0x3] %vm66_vm1, %v520_v39 }
 0x95f   :  { %529 = vst.msk [vmem:[#allocation5 + $0x6] sm:$0x3] %vm66_vm1, %v520_v39 }
 0x965   :  { %v530_v40 = vld [vmem:[#allocation2] sm:$0x3]  ;;  %v590_v62 = vpop.permute.xlu1 %589 }
 0x966   :  { %v534_v41 = vpack.c.bf16 %v530_v40, %v530_v40 }
 0x968   :  { %2073 = vmatmul.msk.bf16.vlgmr.msrb.gmra.mxu2 %vm186_vm3, %v534_v41 }
 0x9eb   :  { %v563_v43 = vpop.f32.mrf.mxu2 }
 0x9ec   :  { %v567_v44 = vadd.f32 %v563_v43, %v533_v42  ;;  %v2217_v42 = vld [vmem:[%s2882_s4] sm:$0xff] }
 0x9ed   :  { %743 = vmatpush.bf16.msra.mxu0 %v2217_v42 }
 0x9ee   :  { %2287 = vtanh.f32 %v567_v44  ;;  %v2074_v47 = vmul.f32 -1.442695, %v567_v44 }
 0x9f0   :  { %2289 = vpow2.f32 %v2074_v47 }
 0x9f3   :  { %v565_v45 = vpop.f32.mrf.mxu2 }
 0x9f4   :  { %v2288_v46 = vpop.eup %2287 }
 0x9f5   :  { %594 = vrot.lane.b32.xlu0 %v2288_v46, %s2486_s30  ;;  %v715_v46 = vld [vmem:[#allocation4 + $0xc] sm:$0x3] }
 0x9f6   :  { %v2290_v48 = vpop.eup %2289 }
 0x9f7   :  { %v571_v49 = vadd.f32 1.0, %v2290_v48 }
 0x9f9   :  { %2291 = vrcp.f32 %v571_v49  ;;  %v583_v55 = vand.u32 2147483648, %v571_v49  ;;  %vm577_vm7 = vweird.f32 %v571_v49  ;;  %v581_v56 = vand.u32 2147483647, %v571_v49 }
 0x9fb   :  { %v584_v58 = vor.u32 1.1754944e-38, %v583_v55  ;;  %vm582_vm9 = vcmp.eq.f32.partialorder %v581_v56, 8.507059e+37 }
 0x9ff   :  { %v2292_v50 = vpop.eup %2291 }
 0xa00   :  { %v573_v51 = vmul.f32 %v2292_v50, %v571_v49  ;;  %vm578_vm6 = vweird.f32 %v2292_v50 }
 0xa01   :  { %vm579_vm8 = vmor %vm577_vm7, %vm578_vm6 }
 0xa02   :  { %v574_v52 = vsub.f32 1.0, %v573_v51 }
 0xa04   :  { %v575_v53 = vmul.f32 %v2292_v50, %v574_v52 }
 0xa06   :  { %v576_v54 = vadd.f32 %v2292_v50, %v575_v53 }
 0xa08   :  { %v580_v57 = vsel %vm579_vm8, %v2292_v50, %v576_v54  ;;  %vm935_vm8 = vcmask 1041409  }
 0xa09   :  { %v585_v60 = vsel %vm582_vm9, %v584_v58, %v580_v57  ;;  %vm938_vm9 = vcmask 1042434  }
 0xa0a   :  { %v592_v63 = vmul.f32 %v590_v62, %v585_v60 }
 0xa67   :  { %v595_v59 = vpop.permute.xlu0 %594 }
 0xa68   :  { %v597_v61 = vmul.f32 %v595_v59, %v585_v60 }
 0xa6a   :  { %599 = vrot.lane.b32.xlu2 %v597_v61, %s2488_s5 }
 0xac4   :  { %v600_v0 = vpop.permute.xlu2 %599 }
 0xac5   :  { %v602_v1 = vadd.f32 %v600_v0, %v592_v63 }
 0xac7   :  { %2293 = vtanh.f32 %v602_v1  ;;  %615 = vrot.lane.b32.xlu2 %v602_v1, %s2489_s28 }
 0xacd   :  { %v2294_v2 = vpop.eup %2293 }
 0xace   :  { %605 = vrot.lane.b32.xlu0 %v2294_v2, %s2486_s30 }
 0xb21   :  { %v616_v3 = vpop.permute.xlu2 %615 }
 0xb22   :  { %618 = vst.msk [vmem:[#allocation3] sm:$0x3] %vm66_vm1, %v616_v3 }
 0xb29   :  { %v622_v7 = vld [vmem:[#allocation3] sm:$0x3] }
 0xb40   :  { %v606_v5 = vpop.permute.xlu0 %605 }
 0xb41   :  { %v608_v6 = vmul.f32 %v606_v5, %v585_v60 }
 0xb43   :  { %610 = vrot.lane.b32.xlu1 %v608_v6, %s2488_s5 }
 0xb4b   :  { %680 = vrot.lane.b32.xlu1 %v622_v7, %s2488_s5 }
 0xbb5   :  { %v611_v9 = vpop.permute.xlu1 %610 }
 0xbb6   :  { %613 = vst.msk [vmem:[#allocation2] sm:$0x3] %vm66_vm1, %v611_v9 }
 0xbb7   :  { %620 = vst.msk [vmem:[#allocation5 + $0x8] sm:$0x3] %vm66_vm1, %v611_v9 }
 0xbbd   :  { %v621_v10 = vld [vmem:[#allocation2] sm:$0x3]  ;;  %v681_v32 = vpop.permute.xlu1 %680 }
 0xbbe   :  { %v625_v11 = vpack.c.bf16 %v621_v10, %v621_v10 }
 0xbc0   :  { %2083 = vmatmul.msk.bf16.vlgmr.msrb.gmra.mxu3 %vm186_vm3, %v625_v11 }
 0xc43   :  { %v654_v13 = vpop.f32.mrf.mxu3 }
 0xc44   :  { %v658_v14 = vadd.f32 %v654_v13, %v624_v12  ;;  %v2219_v12 = vld [vmem:[%s2882_s4] sm:$0xff]  ;;  %s2493_s4 = smov [#allocation9]  }
 0xc45   :  { %834 = vmatpush.bf16.msra.mxu1 %v2219_v12  ;;  %s1972_s22 = sshll.u32 %s2493_s4, 4  ;;  %s1973_s22 = int_to_ptr.vmem [resolvable:$true] %s1972_s22 }
 0xc46   :  { %2295 = vtanh.f32 %v658_v14  ;;  %v2084_v17 = vmul.f32 -1.442695, %v658_v14 }
 0xc48   :  { %2297 = vpow2.f32 %v2084_v17 }
 0xc4b   :  { %v656_v15 = vpop.f32.mrf.mxu3 }
 0xc4c   :  { %v2296_v16 = vpop.eup %2295 }
 0xc4d   :  { %685 = vrot.lane.b32.xlu0 %v2296_v16, %s2486_s30  ;;  %v806_v16 = vld [vmem:[#allocation4 + $0xe] sm:$0x3] }
 0xc4e   :  { %v2298_v18 = vpop.eup %2297 }
 0xc4f   :  { %v662_v19 = vadd.f32 1.0, %v2298_v18 }
 0xc51   :  { %2299 = vrcp.f32 %v662_v19  ;;  %v674_v25 = vand.u32 2147483648, %v662_v19  ;;  %vm668_vm11 = vweird.f32 %v662_v19  ;;  %v672_v26 = vand.u32 2147483647, %v662_v19 }
 0xc53   :  { %v675_v28 = vor.u32 1.1754944e-38, %v674_v25  ;;  %vm673_vm13 = vcmp.eq.f32.partialorder %v672_v26, 8.507059e+37 }
 0xc57   :  { %v2300_v20 = vpop.eup %2299 }
 0xc58   :  { %v664_v21 = vmul.f32 %v2300_v20, %v662_v19  ;;  %vm669_vm10 = vweird.f32 %v2300_v20 }
 0xc59   :  { %vm670_vm12 = vmor %vm668_vm11, %vm669_vm10  ;;  %vm941_vm10 = vcmask 1043459   ;;  %vm944_vm11 = vcmask 1044484  }
 0xc5a   :  { %v665_v22 = vsub.f32 1.0, %v664_v21 }
 0xc5c   :  { %v666_v23 = vmul.f32 %v2300_v20, %v665_v22 }
 0xc5e   :  { %v667_v24 = vadd.f32 %v2300_v20, %v666_v23 }
 0xc60   :  { %v671_v27 = vsel %vm670_vm12, %v2300_v20, %v667_v24  ;;  %vm947_vm12 = vcmask 1045509  }
 0xc61   :  { %v676_v30 = vsel %vm673_vm13, %v675_v28, %v671_v27  ;;  %vm950_vm13 = vcmask 1046534  }
 0xc62   :  { %v683_v33 = vmul.f32 %v681_v32, %v676_v30 }
 0xcbf   :  { %v686_v29 = vpop.permute.xlu0 %685 }
 0xcc0   :  { %v688_v31 = vmul.f32 %v686_v29, %v676_v30 }
 0xcc2   :  { %690 = vrot.lane.b32.xlu2 %v688_v31, %s2488_s5 }
 0xd1c   :  { %v691_v34 = vpop.permute.xlu2 %690 }
 0xd1d   :  { %v693_v35 = vadd.f32 %v691_v34, %v683_v33 }
 0xd1f   :  { %2301 = vtanh.f32 %v693_v35  ;;  %706 = vrot.lane.b32.xlu2 %v693_v35, %s2489_s28 }
 0xd25   :  { %v2302_v36 = vpop.eup %2301 }
 0xd26   :  { %696 = vrot.lane.b32.xlu0 %v2302_v36, %s2486_s30 }
 0xd79   :  { %v707_v37 = vpop.permute.xlu2 %706 }
 0xd7a   :  { %709 = vst.msk [vmem:[#allocation3] sm:$0x3] %vm66_vm1, %v707_v37 }
 0xd81   :  { %v713_v41 = vld [vmem:[#allocation3] sm:$0x3] }
 0xd98   :  { %v697_v39 = vpop.permute.xlu0 %696 }
 0xd99   :  { %v699_v40 = vmul.f32 %v697_v39, %v676_v30 }
 0xd9b   :  { %701 = vrot.lane.b32.xlu1 %v699_v40, %s2488_s5 }
 0xda3   :  { %771 = vrot.lane.b32.xlu1 %v713_v41, %s2488_s5 }
 0xe0d   :  { %v702_v43 = vpop.permute.xlu1 %701 }
 0xe0e   :  { %704 = vst.msk [vmem:[#allocation2] sm:$0x3] %vm66_vm1, %v702_v43 }
 0xe0f   :  { %711 = vst.msk [vmem:[#allocation5 + $0xa] sm:$0x3] %vm66_vm1, %v702_v43  ;;  %v2222_v43 = vld [vmem:[%s2884_s6 + $0x8] sm:$0xff] }
 0xe10   :  { %977 = vmatpush.bf16.msra.mxu2 %v2222_v43  ;;  %1063 = vmatpush.bf16.msra.mxu3 %v2222_v43 }
 0xe15   :  { %v712_v44 = vld [vmem:[#allocation2] sm:$0x3]  ;;  %v772_v2 = vpop.permute.xlu1 %771 }
 0xe16   :  { %v716_v45 = vpack.c.bf16 %v712_v44, %v712_v44  ;;  %v2221_v44 = vld [vmem:[%s2884_s6] sm:$0xff] }
 0xe17   :  { %978 = vmatpush.bf16.msra.mxu2 %v2221_v44  ;;  %1064 = vmatpush.bf16.msra.mxu3 %v2221_v44 }
 0xe18   :  { %2093 = vmatmul.msk.bf16.vlgmr.msra.gmra.mxu0 %vm186_vm3, %v716_v45  ;;  %v2224_v45 = vld [vmem:[#allocation6 + $0x8] sm:$0xff] }
 0xe19   :  { %1124 = vmatpush.bf16.msrb.mxu0 %v2224_v45 }
 0xe95   :  { %v745_v47 = vpop.f32.mrf.mxu0 }
 0xe96   :  { %v749_v48 = vadd.f32 %v745_v47, %v715_v46  ;;  %v65_v46 = vld [vmem:[%s2879_s1 + $0x2] sm:$0x3] }
 0xe97   :  { %68 = vst.msk [vmem:[#allocation2 + $0x2] sm:$0x3] %vm66_vm1, %v65_v46  ;;  %v70_v47 = vld [vmem:[%s2880_s2 + $0x2] sm:$0x3] }
 0xe98   :  { %2303 = vtanh.f32 %v749_v48  ;;  %v2094_v51 = vmul.f32 -1.442695, %v749_v48  ;;  %v2223_v48 = vld [vmem:[#allocation6] sm:$0xff]  ;;  %72 = vst.msk [vmem:[#allocation3 + $0x2] sm:$0x3] %vm66_vm1, %v70_v47 }
 0xe99   :  { %1125 = vmatpush.bf16.msrb.mxu0 %v2223_v48 }
 0xe9a   :  { %2305 = vpow2.f32 %v2094_v51 }
 0xe9d   :  { %v747_v49 = vpop.f32.mrf.mxu0 }
 0xe9e   :  { %v2304_v50 = vpop.eup %2303  ;;  %v900_v49 = vld [vmem:[#allocation5 + $0x2] sm:$0x1] }
 0xe9f   :  { %776 = vrot.lane.b32.xlu0 %v2304_v50, %s2486_s30  ;;  %v1008_v50 = vld [vmem:[#allocation5 + $0x3] sm:$0x1]  ;;  %v908_v51 = vpack.c.bf16 %v900_v49, %v900_v49 }
 0xea0   :  { %v2306_v52 = vpop.eup %2305 }
 0xea1   :  { %v753_v53 = vadd.f32 1.0, %v2306_v52  ;;  %v901_v52 = vld [vmem:[#allocation5 + $0x4] sm:$0x1] }
 0xea3   :  { %2307 = vrcp.f32 %v753_v53  ;;  %v765_v59 = vand.u32 2147483648, %v753_v53  ;;  %vm759_vm15 = vweird.f32 %v753_v53  ;;  %v763_v60 = vand.u32 2147483647, %v753_v53 }
 0xea5   :  { %v766_v62 = vor.u32 1.1754944e-38, %v765_v59  ;;  %vm764_vm2 = vcmp.eq.f32.partialorder %v763_v60, 8.507059e+37  ;;  %v1096_v60 = vld [vmem:[#allocation3 + $0x2] sm:$0x3] }
 0xea9   :  { %v2308_v54 = vpop.eup %2307 }
 0xeaa   :  { %v755_v55 = vmul.f32 %v2308_v54, %v753_v53  ;;  %vm760_vm14 = vweird.f32 %v2308_v54  ;;  %v1009_v53 = vld [vmem:[#allocation5 + $0x5] sm:$0x1] }
 0xeab   :  { %vm761_vm0 = vmor %vm759_vm15, %vm760_vm14  ;;  %vm953_vm14 = vcmask 1047559  }
 0xeac   :  { %v756_v56 = vsub.f32 1.0, %v755_v55  ;;  %v899_v55 = vld [vmem:[#allocation5] sm:$0x1] }
 0xeae   :  { %v757_v57 = vmul.f32 %v2308_v54, %v756_v56  ;;  %v1094_v56 = vld [vmem:[#allocation2 + $0x2] sm:$0x3] }
 0xeaf   :  { %v1098_v59 = vpack.c.bf16 %v1094_v56, %v1094_v56 }
 0xeb0   :  { %v758_v58 = vadd.f32 %v2308_v54, %v757_v57  ;;  %v902_v57 = vld [vmem:[#allocation5 + $0x6] sm:$0x1] }
 0xeb1   :  { %2123 = vmatmul.msk.bf16.vlgmr.msrb.gmra.mxu0 %vm186_vm3, %v1098_v59 }
 0xeb2   :  { %v762_v61 = vsel %vm761_vm0, %v2308_v54, %v758_v58  ;;  %v1016_v54 = vpack.c.bf16 %v1008_v50, %v1008_v50  ;;  %v1007_v58 = vld [vmem:[#allocation5 + $0x1] sm:$0x1] }
 0xeb3   :  { %v767_v0 = vsel %vm764_vm2, %v766_v62, %v762_v61  ;;  %v903_v61 = vld [vmem:[#allocation5 + $0x8] sm:$0x1]  ;;  %v909_v62 = vpack.c.bf16 %v901_v52, %v901_v52  ;;  %v1015_v12 = vpack.c.bf16 %v1007_v58, %v1007_v58 }
 0xeb4   :  { %v774_v3 = vmul.f32 %v772_v2, %v767_v0  ;;  %v1017_v2 = vpack.c.bf16 %v1009_v53, %v1009_v53 }
 0xf11   :  { %v777_v63 = vpop.permute.xlu0 %776 }
 0xf12   :  { %v779_v1 = vmul.f32 %v777_v63, %v767_v0  ;;  %v927_v63 = vunpack.c.l.b16 %v908_v51 }
 0xf14   :  { %781 = vrot.lane.b32.xlu2 %v779_v1, %s2488_s5  ;;  %v1011_v1 = vld [vmem:[#allocation5 + $0x9] sm:$0x1] }
 0xf6e   :  { %v782_v4 = vpop.permute.xlu2 %781 }
 0xf6f   :  { %v784_v5 = vadd.f32 %v782_v4, %v774_v3  ;;  %v1032_v3 = vunpack.c.l.b16 %v1016_v54  ;;  %v904_v4 = vld [vmem:[#allocation5 + $0xa] sm:$0x1] }
 0xf71   :  { %2309 = vtanh.f32 %v784_v5  ;;  %797 = vrot.lane.b32.xlu2 %v784_v5, %s2489_s28  ;;  %v907_v5 = vpack.c.bf16 %v899_v55, %v899_v55 }
 0xf77   :  { %v2310_v6 = vpop.eup %2309 }
 0xf78   :  { %787 = vrot.lane.b32.xlu0 %v2310_v6, %s2486_s30  ;;  %v910_v6 = vpack.c.bf16 %v902_v57, %v902_v57 }
 0xfcb   :  { %v798_v7 = vpop.permute.xlu2 %797 }
 0xfcc   :  { %800 = vst.msk [vmem:[#allocation3] sm:$0x3] %vm66_vm1, %v798_v7  ;;  %v1012_v7 = vld [vmem:[#allocation5 + $0xb] sm:$0x1] }
 0xfd3   :  { %v804_v11 = vld [vmem:[#allocation3] sm:$0x3] }
 0xfea   :  { %v788_v9 = vpop.permute.xlu0 %787 }
 0xfeb   :  { %v790_v10 = vmul.f32 %v788_v9, %v767_v0  ;;  %v1010_v0 = vld [vmem:[#allocation5 + $0x7] sm:$0x1] }
 0xfed   :  { %792 = vrot.lane.b32.xlu1 %v790_v10, %s2488_s5  ;;  %v911_v10 = vpack.c.bf16 %v903_v61, %v903_v61 }
 0xff5   :  { %862 = vrot.lane.b32.xlu1 %v804_v11, %s2488_s5 }
0x105f   :  { %v793_v13 = vpop.permute.xlu1 %792 }
0x1060   :  { %795 = vst.msk [vmem:[#allocation2] sm:$0x3] %vm66_vm1, %v793_v13 }
0x1061   :  { %802 = vst.msk [vmem:[#allocation5 + $0xc] sm:$0x3] %vm66_vm1, %v793_v13  ;;  %v1018_v13 = vpack.c.bf16 %v1010_v0, %v1010_v0 }
0x1067   :  { %v803_v14 = vld [vmem:[#allocation2] sm:$0x3]  ;;  %v863_v36 = vpop.permute.xlu1 %862 }
0x1068   :  { %v807_v15 = vpack.c.bf16 %v803_v14, %v803_v14  ;;  %v905_v9 = vld [vmem:[#allocation5 + $0xc] sm:$0x1]  ;;  %v1013_v11 = vld [vmem:[#allocation5 + $0xd] sm:$0x1]  ;;  %v1019_v14 = vpack.c.bf16 %v1011_v1, %v1011_v1 }
0x106a   :  { %2103 = vmatmul.msk.bf16.vlgmr.msra.gmra.mxu1 %vm186_vm3, %v807_v15  ;;  %v928_v15 = vunpack.c.l.b16 %v909_v62 }
0x10e7   :  { %v836_v17 = vpop.f32.mrf.mxu1 }
0x10e8   :  { %v840_v18 = vadd.f32 %v836_v17, %v806_v16  ;;  %v934_v16 = vrot.slane %v927_v63, 7  ;;  %v1033_v17 = vunpack.c.l.b16 %v1017_v2 }
0x10ea   :  { %2311 = vtanh.f32 %v840_v18  ;;  %v2104_v21 = vmul.f32 -1.442695, %v840_v18  ;;  %v912_v18 = vpack.c.bf16 %v904_v4, %v904_v4 }
0x10ec   :  { %2313 = vpow2.f32 %v2104_v21  ;;  %v913_v21 = vpack.c.bf16 %v905_v9, %v905_v9 }
0x10ef   :  { %v838_v19 = vpop.f32.mrf.mxu1 }
0x10f0   :  { %v2312_v20 = vpop.eup %2311  ;;  %v1020_v19 = vpack.c.bf16 %v1012_v7, %v1012_v7  ;;  %v2253_v7 = vld [vmem:[%s2886_s8] ss:$0 sm:$0xff] }
0x10f1   :  { %867 = vrot.lane.b32.xlu0 %v2312_v20, %s2486_s30  ;;  %v1039_v20 = vrot.slane %v1032_v3, 7 }
0x10f2   :  { %v2314_v22 = vpop.eup %2313 }
0x10f3   :  { %v844_v23 = vadd.f32 1.0, %v2314_v22  ;;  %v926_v22 = vunpack.c.l.b16 %v907_v5  ;;  %v1127_v5 = vpop.f32.mrf.mxu0 }
0x10f5   :  { %2315 = vrcp.f32 %v844_v23  ;;  %v856_v29 = vand.u32 2147483648, %v844_v23  ;;  %vm850_vm5 = vweird.f32 %v844_v23  ;;  %v854_v30 = vand.u32 2147483647, %v844_v23 }
0x10f7   :  { %v857_v32 = vor.u32 1.1754944e-38, %v856_v29  ;;  %vm855_vm7 = vcmp.eq.f32.partialorder %v854_v30, 8.507059e+37  ;;  %v936_v29 = vsel %vm935_vm8, %v934_v16, %v926_v22  ;;  %v937_v30 = vrot.slane %v928_v15, 6 }
0x10f9   :  { %v939_v44 = vsel %vm938_vm9, %v937_v30, %v936_v29 }
0x10fb   :  { %v2316_v24 = vpop.eup %2315 }
0x10fc   :  { %v846_v25 = vmul.f32 %v2316_v24, %v844_v23  ;;  %vm851_vm4 = vweird.f32 %v2316_v24  ;;  %v929_v23 = vunpack.c.l.b16 %v910_v6  ;;  %v1129_v6 = vpop.f32.mrf.mxu0 }
0x10fd   :  { %vm852_vm6 = vmor %vm850_vm5, %vm851_vm4 }
0x10fe   :  { %v847_v26 = vsub.f32 1.0, %v846_v25  ;;  %v930_v25 = vunpack.c.l.b16 %v911_v10 }
0x1100   :  { %v848_v27 = vmul.f32 %v2316_v24, %v847_v26  ;;  %v1031_v26 = vunpack.c.l.b16 %v1015_v12 }
0x1102   :  { %v849_v28 = vadd.f32 %v2316_v24, %v848_v27  ;;  %v1034_v27 = vunpack.c.l.b16 %v1018_v13 }
0x1104   :  { %v853_v31 = vsel %vm852_vm6, %v2316_v24, %v849_v28  ;;  %v1021_v24 = vpack.c.bf16 %v1013_v11, %v1013_v11  ;;  %v1035_v28 = vunpack.c.l.b16 %v1019_v14 }
0x1105   :  { %v858_v34 = vsel %vm855_vm7, %v857_v32, %v853_v31  ;;  %v1041_v31 = vrot.slane %v1033_v17, 6  ;;  %v931_v32 = vunpack.c.l.b16 %v912_v18 }
0x1106   :  { %v865_v37 = vmul.f32 %v863_v36, %v858_v34  ;;  %v940_v36 = vrot.slane %v929_v23, 5 }
0x1107   :  { %v946_v48 = vrot.slane %v931_v32, 3 }
0x1108   :  { %v942_v51 = vsel %vm941_vm10, %v940_v36, %v939_v44 }
0x1163   :  { %v868_v33 = vpop.permute.xlu0 %867 }
0x1164   :  { %v870_v35 = vmul.f32 %v868_v33, %v858_v34  ;;  %v1036_v33 = vunpack.c.l.b16 %v1020_v19 }
0x1166   :  { %872 = vrot.lane.b32.xlu2 %v870_v35, %s2488_s5  ;;  %v932_v35 = vunpack.c.l.b16 %v913_v21  ;;  %v1047_v50 = vrot.slane %v1036_v33, 3 }
0x1168   :  { %v949_v52 = vrot.slane %v932_v35, 2 }
0x11c0   :  { %v873_v38 = vpop.permute.xlu2 %872 }
0x11c1   :  { %v2713_v39 = vadd.f32 %v873_v38, %v865_v37  ;;  %v1037_v37 = vunpack.c.l.b16 %v1021_v24  ;;  %v943_v38 = vrot.slane %v930_v25, 4 }
0x11c3   :  { %2317 = vtanh.f32 %v2713_v39  ;;  %v1049_v53 = vrot.slane %v1037_v37, 2  ;;  %v945_v57 = vsel %vm944_vm11, %v943_v38, %v942_v51 }
0x11c4   :  { %v948_v59 = vsel %vm947_vm12, %v946_v48, %v945_v57  ;;  %v2225_v57 = vld [vmem:[#allocation6] sm:$0xff] }
0x11c5   :  { %v951_v63 = vsel %vm950_vm13, %v949_v52, %v948_v59  ;;  %v2226_v52 = vld [vmem:[#allocation6 + $0x8] sm:$0xff] }
0x11c6   :  { %1213 = vmatpush.bf16.msrb.mxu1 %v2226_v52 }
0x11c9   :  { %v2318_v40 = vpop.eup %2317 }
0x11ca   :  { %878 = vrot.lane.b32.xlu0 %v2318_v40, %s2486_s30  ;;  %v1043_v40 = vrot.slane %v1034_v27, 5  ;;  %1214 = vmatpush.bf16.msrb.mxu1 %v2225_v57  ;;  %v2230_v57 = vld [vmem:[#allocation6 + $0x8] sm:$0xff] }
0x11cb   :  { %1391 = vmatpush.bf16.msrb.mxu3 %v2230_v57 }
0x11d2   :  { %1153 = vrot.lane.b32.xlu0 %v1096_v60, %s2488_s5 }
0x123c   :  { %v879_v41 = vpop.permute.xlu0 %878 }
0x123d   :  { %v881_v42 = vmul.f32 %v879_v41, %v858_v34  ;;  %v1040_v34 = vsel %vm935_vm8, %v1039_v20, %v1031_v26  ;;  %v1045_v41 = vrot.slane %v1035_v28, 4 }
0x123e   :  { %v1042_v46 = vsel %vm938_vm9, %v1041_v31, %v1040_v34 }
0x123f   :  { %883 = vrot.lane.b32.xlu1 %v881_v42, %s2488_s5  ;;  %v1044_v56 = vsel %vm941_vm10, %v1043_v40, %v1042_v46 }
0x1240   :  { %v1046_v58 = vsel %vm944_vm11, %v1045_v41, %v1044_v56 }
0x1241   :  { %v1048_v61 = vsel %vm947_vm12, %v1047_v50, %v1046_v58 }
0x1242   :  { %v1050_v0 = vsel %vm950_vm13, %v1049_v53, %v1048_v61 }
0x12b1   :  { %v884_v8 = vpop.permute.xlu1 %883 }
0x12b2   :  { %886 = vst.msk [vmem:[#allocation2] sm:$0x3] %vm66_vm1, %v884_v8 }
0x12b3   :  { %893 = vst.msk [vmem:[#allocation5 + $0xe] sm:$0x3] %vm66_vm1, %v884_v8 }
0x12b9   :  { %v1960_v42 = vld [vmem:[#allocation2] sm:$0x3] }
0x12ba   :  { %v906_v43 = vld [vmem:[#allocation5 + $0xe] sm:$0x1]  ;;  %v1014_v45 = vld [vmem:[#allocation5 + $0xf] sm:$0x1]  ;;  %1962 = vst.msk [vmem:[#allocation10] sm:$0x3] %vm66_vm1, %v1960_v42 }
0x12bb   :  { %v914_v47 = vpack.c.bf16 %v906_v43, %v906_v43  ;;  %v1022_v49 = vpack.c.bf16 %v1014_v45, %v1014_v45 }
0x12bd   :  { %v933_v54 = vunpack.c.l.b16 %v914_v47  ;;  %v1038_v55 = vunpack.c.l.b16 %v1022_v49  ;;  %v1154_v47 = vpop.permute.xlu0 %1153 }
0x12bf   :  { %v952_v60 = vrot.slane %v933_v54, 1  ;;  %v1051_v62 = vrot.slane %v1038_v55, 1 }
0x12c1   :  { %v954_v1 = vsel %vm953_vm14, %v952_v60, %v951_v63  ;;  %v1052_v2 = vsel %vm953_vm14, %v1051_v62, %v1050_v0 }
0x12c2   :  { %v955_v3 = vpack.c.b16 %v954_v1, %v954_v1  ;;  %v1053_v4 = vpack.c.b16 %v1052_v2, %v1052_v2 }
0x12c4   :  { %2113 = vmatmul.msk.bf16.vlgmr.msra.gmra.mxu2 %vm186_vm3, %v955_v3  ;;  %2114 = vmatmul.msk.bf16.vlgmr.msra.gmra.mxu3 %vm186_vm3, %v1053_v4 }
0x1347   :  { %v980_v8 = vpop.f32.mrf.mxu2  ;;  %v1066_v9 = vpop.f32.mrf.mxu3 }
0x1348   :  { %v981_v10 = vadd.f32 %v2253_v7, %v980_v8  ;;  %v1067_v11 = vadd.f32 %v2253_v7, %v1066_v9 }
0x134a   :  { %v985_v12 = vrot.slane %v981_v10, 1  ;;  %v986_v13 = vrot.slane %v981_v10, 2  ;;  %v987_v14 = vrot.slane %v981_v10, 3  ;;  %999 = vst [vmem:[#allocation4] sm:$0x1] %v981_v10  ;;  %v988_v15 = vrot.slane %v981_v10, 4 }
0x134b   :  { %1085 = vst [vmem:[#allocation4 + $0x1] sm:$0x1] %v1067_v11  ;;  %v989_v16 = vrot.slane %v981_v10, 5  ;;  %v990_v17 = vrot.slane %v981_v10, 6  ;;  %v991_v18 = vrot.slane %v981_v10, 7  ;;  %v1071_v19 = vrot.slane %v1067_v11, 1 }
0x134c   :  { %1000 = vst [vmem:[#allocation4 + $0x2] sm:$0x1] %v985_v12  ;;  %v1072_v22 = vrot.slane %v1067_v11, 2  ;;  %v1073_v23 = vrot.slane %v1067_v11, 3  ;;  %v1074_v24 = vrot.slane %v1067_v11, 4  ;;  %v1075_v26 = vrot.slane %v1067_v11, 5 }
0x134d   :  { %1001 = vst [vmem:[#allocation4 + $0x4] sm:$0x1] %v986_v13  ;;  %v1076_v28 = vrot.slane %v1067_v11, 6  ;;  %v1077_v29 = vrot.slane %v1067_v11, 7 }
0x134e   :  { %1002 = vst [vmem:[#allocation4 + $0x6] sm:$0x1] %v987_v14 }
0x134f   :  { %1003 = vst [vmem:[#allocation4 + $0x8] sm:$0x1] %v988_v15  ;;  %v982_v20 = vpop.f32.mrf.mxu2  ;;  %v1068_v21 = vpop.f32.mrf.mxu3 }
0x1350   :  { %1004 = vst [vmem:[#allocation4 + $0xa] sm:$0x1] %v989_v16 }
0x1351   :  { %1005 = vst [vmem:[#allocation4 + $0xc] sm:$0x1] %v990_v17 }
0x1352   :  { %1006 = vst [vmem:[#allocation4 + $0xe] sm:$0x1] %v991_v18  ;;  %v1097_v25 = vld [vmem:[#allocation4] sm:$0x3] }
0x1353   :  { %1086 = vst [vmem:[#allocation4 + $0x3] sm:$0x1] %v1071_v19  ;;  %v1131_v27 = vadd.f32 %v1127_v5, %v1097_v25 }
0x1354   :  { %1087 = vst [vmem:[#allocation4 + $0x5] sm:$0x1] %v1072_v22  ;;  %v2228_v22 = vld [vmem:[#allocation6 + $0x8] sm:$0xff] }
0x1355   :  { %1088 = vst [vmem:[#allocation4 + $0x7] sm:$0x1] %v1073_v23  ;;  %2319 = vtanh.f32 %v1131_v27  ;;  %v2124_v31 = vmul.f32 -1.442695, %v1131_v27  ;;  %1302 = vmatpush.bf16.msrb.mxu2 %v2228_v22  ;;  %v2227_v27 = vld [vmem:[#allocation6] sm:$0xff] }
0x1356   :  { %1089 = vst [vmem:[#allocation4 + $0x9] sm:$0x1] %v1074_v24 }
0x1357   :  { %1090 = vst [vmem:[#allocation4 + $0xb] sm:$0x1] %v1075_v26  ;;  %2321 = vpow2.f32 %v2124_v31 }
0x1358   :  { %1091 = vst [vmem:[#allocation4 + $0xd] sm:$0x1] %v1076_v28 }
0x1359   :  { %1092 = vst [vmem:[#allocation4 + $0xf] sm:$0x1] %v1077_v29  ;;  %1303 = vmatpush.bf16.msrb.mxu2 %v2227_v27  ;;  %v2232_v27 = vld [vmem:[#allocation6 + $0x8] sm:$0xff] }
0x135a   :  { %v1186_v61 = vld [vmem:[#allocation4 + $0x2] sm:$0x3]  ;;  %1480 = vmatpush.bf16.msra.mxu0 %v2232_v27 }
0x135b   :  { %v2320_v30 = vpop.eup %2319  ;;  %v1275_v31 = vld [vmem:[#allocation4 + $0x4] sm:$0x3] }
0x135c   :  { %1158 = vrot.lane.b32.xlu2 %v2320_v30, %s2486_s30 }
0x135d   :  { %v2322_v32 = vpop.eup %2321 }
0x135e   :  { %v1135_v33 = vadd.f32 1.0, %v2322_v32 }
0x1360   :  { %2323 = vrcp.f32 %v1135_v33  ;;  %v1147_v40 = vand.u32 2147483648, %v1135_v33  ;;  %vm1141_vm0 = vweird.f32 %v1135_v33  ;;  %v1145_v41 = vand.u32 2147483647, %v1135_v33 }
0x1362   :  { %v1148_v43 = vor.u32 1.1754944e-38, %v1147_v40  ;;  %vm1146_vm4 = vcmp.eq.f32.partialorder %v1145_v41, 8.507059e+37 }
0x1366   :  { %v2324_v34 = vpop.eup %2323 }
0x1367   :  { %v1137_v35 = vmul.f32 %v2324_v34, %v1135_v33  ;;  %vm1142_vm15 = vweird.f32 %v2324_v34 }
0x1368   :  { %vm1143_vm2 = vmor %vm1141_vm0, %vm1142_vm15 }
0x1369   :  { %v1138_v36 = vsub.f32 1.0, %v1137_v35 }
0x136b   :  { %v1139_v37 = vmul.f32 %v2324_v34, %v1138_v36 }
0x136d   :  { %v1140_v38 = vadd.f32 %v2324_v34, %v1139_v37 }
0x136f   :  { %v1144_v42 = vsel %vm1143_vm2, %v2324_v34, %v1140_v38 }
0x1370   :  { %v1149_v44 = vsel %vm1146_vm4, %v1148_v43, %v1144_v42 }
0x1371   :  { %v1156_v48 = vmul.f32 %v1154_v47, %v1149_v44 }
0x13b6   :  { %v1159_v45 = vpop.permute.xlu2 %1158 }
0x13b7   :  { %v1161_v46 = vmul.f32 %v1159_v45, %v1149_v44 }
0x13b9   :  { %1163 = vrot.lane.b32.xlu1 %v1161_v46, %s2488_s5 }
0x142b   :  { %v1164_v49 = vpop.permute.xlu1 %1163 }
0x142c   :  { %v1166_v50 = vadd.f32 %v1164_v49, %v1156_v48 }
0x142e   :  { %2325 = vtanh.f32 %v1166_v50  ;;  %1179 = vrot.lane.b32.xlu1 %v1166_v50, %s2489_s28 }
0x1434   :  { %v2326_v51 = vpop.eup %2325 }
0x1435   :  { %1169 = vrot.lane.b32.xlu2 %v2326_v51, %s2486_s30 }
0x148f   :  { %v1170_v53 = vpop.permute.xlu2 %1169 }
0x1490   :  { %v1172_v54 = vmul.f32 %v1170_v53, %v1149_v44 }
0x1492   :  { %1174 = vrot.lane.b32.xlu0 %v1172_v54, %s2488_s5 }
0x14a0   :  { %v1180_v55 = vpop.permute.xlu1 %1179 }
0x14a1   :  { %1182 = vst.msk [vmem:[#allocation3 + $0x2] sm:$0x3] %vm66_vm1, %v1180_v55 }
0x14a8   :  { %v1185_v56 = vld [vmem:[#allocation3 + $0x2] sm:$0x3] }
0x14a9   :  { %1242 = vrot.lane.b32.xlu0 %v1185_v56, %s2488_s5 }
0x1504   :  { %v1175_v58 = vpop.permute.xlu0 %1174 }
0x1505   :  { %1177 = vst.msk [vmem:[#allocation2 + $0x2] sm:$0x3] %vm66_vm1, %v1175_v58 }
0x1506   :  { %1183 = vst.msk [vmem:[#allocation5] sm:$0x3] %vm66_vm1, %v1175_v58 }
0x150c   :  { %v1184_v59 = vld [vmem:[#allocation2 + $0x2] sm:$0x3] }
0x150d   :  { %v1187_v60 = vpack.c.bf16 %v1184_v59, %v1184_v59 }
0x150f   :  { %2133 = vmatmul.msk.bf16.vlgmr.msrb.gmra.mxu1 %vm186_vm3, %v1187_v60 }
0x151b   :  { %v1243_v17 = vpop.permute.xlu0 %1242 }
0x158c   :  { %v1216_v62 = vpop.f32.mrf.mxu1 }
0x158d   :  { %v1220_v63 = vadd.f32 %v1216_v62, %v1186_v61  ;;  %v2229_v62 = vld [vmem:[#allocation6] sm:$0xff] }
0x158e   :  { %1392 = vmatpush.bf16.msrb.mxu3 %v2229_v62  ;;  %v2234_v62 = vld [vmem:[#allocation6 + $0x8] sm:$0xff] }
0x158f   :  { %2327 = vtanh.f32 %v1220_v63  ;;  %v2134_v2 = vmul.f32 -1.442695, %v1220_v63  ;;  %1569 = vmatpush.bf16.msra.mxu1 %v2234_v62 }
0x1591   :  { %2329 = vpow2.f32 %v2134_v2  ;;  %v1364_v2 = vld [vmem:[#allocation4 + $0x6] sm:$0x3] }
0x1594   :  { %v1218_v0 = vpop.f32.mrf.mxu1 }
0x1595   :  { %v2328_v1 = vpop.eup %2327 }
0x1596   :  { %1247 = vrot.lane.b32.xlu2 %v2328_v1, %s2486_s30 }
0x1597   :  { %v2330_v3 = vpop.eup %2329 }
0x1598   :  { %v1224_v4 = vadd.f32 1.0, %v2330_v3 }
0x159a   :  { %2331 = vrcp.f32 %v1224_v4  ;;  %v1236_v10 = vand.u32 2147483648, %v1224_v4  ;;  %vm1230_vm6 = vweird.f32 %v1224_v4  ;;  %v1234_v11 = vand.u32 2147483647, %v1224_v4 }
0x159c   :  { %v1237_v13 = vor.u32 1.1754944e-38, %v1236_v10  ;;  %vm1235_vm15 = vcmp.eq.f32.partialorder %v1234_v11, 8.507059e+37 }
0x15a0   :  { %v2332_v5 = vpop.eup %2331 }
0x15a1   :  { %v1226_v6 = vmul.f32 %v2332_v5, %v1224_v4  ;;  %vm1231_vm5 = vweird.f32 %v2332_v5 }
0x15a2   :  { %vm1232_vm7 = vmor %vm1230_vm6, %vm1231_vm5 }
0x15a3   :  { %v1227_v7 = vsub.f32 1.0, %v1226_v6 }
0x15a5   :  { %v1228_v8 = vmul.f32 %v2332_v5, %v1227_v7 }
0x15a7   :  { %v1229_v9 = vadd.f32 %v2332_v5, %v1228_v8 }
0x15a9   :  { %v1233_v12 = vsel %vm1232_vm7, %v2332_v5, %v1229_v9 }
0x15aa   :  { %v1238_v15 = vsel %vm1235_vm15, %v1237_v13, %v1233_v12 }
0x15ab   :  { %v1245_v18 = vmul.f32 %v1243_v17, %v1238_v15 }
0x15f0   :  { %v1248_v14 = vpop.permute.xlu2 %1247 }
0x15f1   :  { %v1250_v16 = vmul.f32 %v1248_v14, %v1238_v15 }
0x15f3   :  { %1252 = vrot.lane.b32.xlu1 %v1250_v16, %s2488_s5 }
0x1665   :  { %v1253_v19 = vpop.permute.xlu1 %1252 }
0x1666   :  { %v1255_v20 = vadd.f32 %v1253_v19, %v1245_v18 }
0x1668   :  { %2333 = vtanh.f32 %v1255_v20  ;;  %1268 = vrot.lane.b32.xlu1 %v1255_v20, %s2489_s28 }
0x166e   :  { %v2334_v21 = vpop.eup %2333 }
0x166f   :  { %1258 = vrot.lane.b32.xlu2 %v2334_v21, %s2486_s30 }
0x16c9   :  { %v1259_v23 = vpop.permute.xlu2 %1258 }
0x16ca   :  { %v1261_v24 = vmul.f32 %v1259_v23, %v1238_v15 }
0x16cc   :  { %1263 = vrot.lane.b32.xlu0 %v1261_v24, %s2488_s5 }
0x16da   :  { %v1269_v25 = vpop.permute.xlu1 %1268 }
0x16db   :  { %1271 = vst.msk [vmem:[#allocation3 + $0x2] sm:$0x3] %vm66_vm1, %v1269_v25 }
0x16e2   :  { %v1274_v26 = vld [vmem:[#allocation3 + $0x2] sm:$0x3] }
0x16e3   :  { %1331 = vrot.lane.b32.xlu0 %v1274_v26, %s2488_s5 }
0x173e   :  { %v1264_v28 = vpop.permute.xlu0 %1263 }
0x173f   :  { %1266 = vst.msk [vmem:[#allocation2 + $0x2] sm:$0x3] %vm66_vm1, %v1264_v28 }
0x1740   :  { %1272 = vst.msk [vmem:[#allocation5 + $0x2] sm:$0x3] %vm66_vm1, %v1264_v28 }
0x1746   :  { %v1273_v29 = vld [vmem:[#allocation2 + $0x2] sm:$0x3] }
0x1747   :  { %v1276_v30 = vpack.c.bf16 %v1273_v29, %v1273_v29 }
0x1749   :  { %2143 = vmatmul.msk.bf16.vlgmr.msrb.gmra.mxu2 %vm186_vm3, %v1276_v30 }
0x1755   :  { %v1332_v52 = vpop.permute.xlu0 %1331 }
0x17cc   :  { %v1305_v32 = vpop.f32.mrf.mxu2 }
0x17cd   :  { %v1309_v33 = vadd.f32 %v1305_v32, %v1275_v31  ;;  %v2231_v32 = vld [vmem:[#allocation6] sm:$0xff] }
0x17ce   :  { %1481 = vmatpush.bf16.msra.mxu0 %v2231_v32  ;;  %v2236_v32 = vld [vmem:[#allocation6 + $0x8] sm:$0xff] }
0x17cf   :  { %2335 = vtanh.f32 %v1309_v33  ;;  %v2144_v36 = vmul.f32 -1.442695, %v1309_v33  ;;  %1658 = vmatpush.bf16.msra.mxu2 %v2236_v32 }
0x17d1   :  { %2337 = vpow2.f32 %v2144_v36  ;;  %v1453_v36 = vld [vmem:[#allocation4 + $0x8] sm:$0x3] }
0x17d4   :  { %v1307_v34 = vpop.f32.mrf.mxu2 }
0x17d5   :  { %v2336_v35 = vpop.eup %2335 }
0x17d6   :  { %1336 = vrot.lane.b32.xlu2 %v2336_v35, %s2486_s30 }
0x17d7   :  { %v2338_v37 = vpop.eup %2337 }
0x17d8   :  { %v1313_v38 = vadd.f32 1.0, %v2338_v37 }
0x17da   :  { %2339 = vrcp.f32 %v1313_v38  ;;  %v1325_v45 = vand.u32 2147483648, %v1313_v38  ;;  %vm1319_vm2 = vweird.f32 %v1313_v38  ;;  %v1323_v46 = vand.u32 2147483647, %v1313_v38 }
0x17dc   :  { %v1326_v48 = vor.u32 1.1754944e-38, %v1325_v45  ;;  %vm1324_vm5 = vcmp.eq.f32.partialorder %v1323_v46, 8.507059e+37 }
0x17e0   :  { %v2340_v40 = vpop.eup %2339 }
0x17e1   :  { %v1315_v41 = vmul.f32 %v2340_v40, %v1313_v38  ;;  %vm1320_vm0 = vweird.f32 %v2340_v40 }
0x17e2   :  { %vm1321_vm4 = vmor %vm1319_vm2, %vm1320_vm0 }
0x17e3   :  { %v1316_v42 = vsub.f32 1.0, %v1315_v41 }
0x17e5   :  { %v1317_v43 = vmul.f32 %v2340_v40, %v1316_v42 }
0x17e7   :  { %v1318_v44 = vadd.f32 %v2340_v40, %v1317_v43 }
0x17e9   :  { %v1322_v47 = vsel %vm1321_vm4, %v2340_v40, %v1318_v44 }
0x17ea   :  { %v1327_v50 = vsel %vm1324_vm5, %v1326_v48, %v1322_v47 }
0x17eb   :  { %v1334_v53 = vmul.f32 %v1332_v52, %v1327_v50 }
0x1830   :  { %v1337_v49 = vpop.permute.xlu2 %1336 }
0x1831   :  { %v1339_v51 = vmul.f32 %v1337_v49, %v1327_v50 }
0x1833   :  { %1341 = vrot.lane.b32.xlu1 %v1339_v51, %s2488_s5 }
0x18a5   :  { %v1342_v54 = vpop.permute.xlu1 %1341 }
0x18a6   :  { %v1344_v55 = vadd.f32 %v1342_v54, %v1334_v53 }
0x18a8   :  { %2341 = vtanh.f32 %v1344_v55  ;;  %1357 = vrot.lane.b32.xlu1 %v1344_v55, %s2489_s28 }
0x18ae   :  { %v2342_v56 = vpop.eup %2341 }
0x18af   :  { %1347 = vrot.lane.b32.xlu2 %v2342_v56, %s2486_s30 }
0x1909   :  { %v1348_v58 = vpop.permute.xlu2 %1347 }
0x190a   :  { %v1350_v59 = vmul.f32 %v1348_v58, %v1327_v50 }
0x190c   :  { %1352 = vrot.lane.b32.xlu0 %v1350_v59, %s2488_s5 }
0x191a   :  { %v1358_v60 = vpop.permute.xlu1 %1357 }
0x191b   :  { %1360 = vst.msk [vmem:[#allocation3 + $0x2] sm:$0x3] %vm66_vm1, %v1358_v60 }
0x1922   :  { %v1363_v61 = vld [vmem:[#allocation3 + $0x2] sm:$0x3] }
0x1923   :  { %1420 = vrot.lane.b32.xlu0 %v1363_v61, %s2488_s5 }
0x197e   :  { %v1353_v63 = vpop.permute.xlu0 %1352 }
0x197f   :  { %1355 = vst.msk [vmem:[#allocation2 + $0x2] sm:$0x3] %vm66_vm1, %v1353_v63 }
0x1980   :  { %1361 = vst.msk [vmem:[#allocation5 + $0x4] sm:$0x3] %vm66_vm1, %v1353_v63 }
0x1986   :  { %v1362_v0 = vld [vmem:[#allocation2 + $0x2] sm:$0x3] }
0x1987   :  { %v1365_v1 = vpack.c.bf16 %v1362_v0, %v1362_v0 }
0x1989   :  { %2153 = vmatmul.msk.bf16.vlgmr.msrb.gmra.mxu3 %vm186_vm3, %v1365_v1 }
0x1995   :  { %v1421_v22 = vpop.permute.xlu0 %1420 }
0x1a0c   :  { %v1394_v3 = vpop.f32.mrf.mxu3 }
0x1a0d   :  { %v1398_v4 = vadd.f32 %v1394_v3, %v1364_v2  ;;  %v2233_v3 = vld [vmem:[#allocation6] sm:$0xff] }
0x1a0e   :  { %1570 = vmatpush.bf16.msra.mxu1 %v2233_v3  ;;  %v2238_v3 = vld [vmem:[#allocation6 + $0x8] sm:$0xff] }
0x1a0f   :  { %2343 = vtanh.f32 %v1398_v4  ;;  %v2154_v7 = vmul.f32 -1.442695, %v1398_v4  ;;  %1747 = vmatpush.bf16.msra.mxu3 %v2238_v3 }
0x1a11   :  { %2345 = vpow2.f32 %v2154_v7  ;;  %v1542_v7 = vld [vmem:[#allocation4 + $0xa] sm:$0x3] }
0x1a14   :  { %v1396_v5 = vpop.f32.mrf.mxu3 }
0x1a15   :  { %v2344_v6 = vpop.eup %2343 }
0x1a16   :  { %1425 = vrot.lane.b32.xlu2 %v2344_v6, %s2486_s30 }
0x1a17   :  { %v2346_v8 = vpop.eup %2345 }
0x1a18   :  { %v1402_v9 = vadd.f32 1.0, %v2346_v8 }
0x1a1a   :  { %2347 = vrcp.f32 %v1402_v9  ;;  %v1414_v15 = vand.u32 2147483648, %v1402_v9  ;;  %vm1408_vm7 = vweird.f32 %v1402_v9  ;;  %v1412_v16 = vand.u32 2147483647, %v1402_v9 }
0x1a1c   :  { %v1415_v18 = vor.u32 1.1754944e-38, %v1414_v15  ;;  %vm1413_vm0 = vcmp.eq.f32.partialorder %v1412_v16, 8.507059e+37 }
0x1a20   :  { %v2348_v10 = vpop.eup %2347 }
0x1a21   :  { %v1404_v11 = vmul.f32 %v2348_v10, %v1402_v9  ;;  %vm1409_vm6 = vweird.f32 %v2348_v10 }
0x1a22   :  { %vm1410_vm15 = vmor %vm1408_vm7, %vm1409_vm6 }
0x1a23   :  { %v1405_v12 = vsub.f32 1.0, %v1404_v11 }
0x1a25   :  { %v1406_v13 = vmul.f32 %v2348_v10, %v1405_v12 }
0x1a27   :  { %v1407_v14 = vadd.f32 %v2348_v10, %v1406_v13 }
0x1a29   :  { %v1411_v17 = vsel %vm1410_vm15, %v2348_v10, %v1407_v14 }
0x1a2a   :  { %v1416_v20 = vsel %vm1413_vm0, %v1415_v18, %v1411_v17 }
0x1a2b   :  { %v1423_v23 = vmul.f32 %v1421_v22, %v1416_v20 }
0x1a70   :  { %v1426_v19 = vpop.permute.xlu2 %1425 }
0x1a71   :  { %v1428_v21 = vmul.f32 %v1426_v19, %v1416_v20 }
0x1a73   :  { %1430 = vrot.lane.b32.xlu1 %v1428_v21, %s2488_s5 }
0x1ae5   :  { %v1431_v24 = vpop.permute.xlu1 %1430 }
0x1ae6   :  { %v1433_v25 = vadd.f32 %v1431_v24, %v1423_v23 }
0x1ae8   :  { %2349 = vtanh.f32 %v1433_v25  ;;  %1446 = vrot.lane.b32.xlu1 %v1433_v25, %s2489_s28 }
0x1aee   :  { %v2350_v26 = vpop.eup %2349 }
0x1aef   :  { %1436 = vrot.lane.b32.xlu2 %v2350_v26, %s2486_s30 }
0x1b49   :  { %v1437_v28 = vpop.permute.xlu2 %1436 }
0x1b4a   :  { %v1439_v29 = vmul.f32 %v1437_v28, %v1416_v20 }
0x1b4c   :  { %1441 = vrot.lane.b32.xlu0 %v1439_v29, %s2488_s5 }
0x1b5a   :  { %v1447_v30 = vpop.permute.xlu1 %1446 }
0x1b5b   :  { %1449 = vst.msk [vmem:[#allocation3 + $0x2] sm:$0x3] %vm66_vm1, %v1447_v30 }
0x1b62   :  { %v1452_v31 = vld [vmem:[#allocation3 + $0x2] sm:$0x3] }
0x1b63   :  { %1509 = vrot.lane.b32.xlu0 %v1452_v31, %s2488_s5 }
0x1bbe   :  { %v1442_v33 = vpop.permute.xlu0 %1441 }
0x1bbf   :  { %1444 = vst.msk [vmem:[#allocation2 + $0x2] sm:$0x3] %vm66_vm1, %v1442_v33 }
0x1bc0   :  { %1450 = vst.msk [vmem:[#allocation5 + $0x6] sm:$0x3] %vm66_vm1, %v1442_v33 }
0x1bc6   :  { %v1451_v34 = vld [vmem:[#allocation2 + $0x2] sm:$0x3] }
0x1bc7   :  { %v1454_v35 = vpack.c.bf16 %v1451_v34, %v1451_v34 }
0x1bc9   :  { %2163 = vmatmul.msk.bf16.vlgmr.msra.gmra.mxu0 %vm186_vm3, %v1454_v35 }
0x1bd5   :  { %v1510_v57 = vpop.permute.xlu0 %1509 }
0x1c46   :  { %v1483_v37 = vpop.f32.mrf.mxu0 }
0x1c47   :  { %v1487_v38 = vadd.f32 %v1483_v37, %v1453_v36  ;;  %v2235_v37 = vld [vmem:[#allocation6] sm:$0xff] }
0x1c48   :  { %1659 = vmatpush.bf16.msra.mxu2 %v2235_v37 }
0x1c49   :  { %2351 = vtanh.f32 %v1487_v38  ;;  %v2164_v42 = vmul.f32 -1.442695, %v1487_v38 }
0x1c4b   :  { %2353 = vpow2.f32 %v2164_v42  ;;  %v1631_v42 = vld [vmem:[#allocation4 + $0xc] sm:$0x3] }
0x1c4e   :  { %v1485_v40 = vpop.f32.mrf.mxu0 }
0x1c4f   :  { %v2352_v41 = vpop.eup %2351 }
0x1c50   :  { %1514 = vrot.lane.b32.xlu2 %v2352_v41, %s2486_s30 }
0x1c51   :  { %v2354_v43 = vpop.eup %2353 }
0x1c52   :  { %v1491_v44 = vadd.f32 1.0, %v2354_v43 }
0x1c54   :  { %2355 = vrcp.f32 %v1491_v44  ;;  %v1503_v50 = vand.u32 2147483648, %v1491_v44  ;;  %vm1497_vm4 = vweird.f32 %v1491_v44  ;;  %v1501_v51 = vand.u32 2147483647, %v1491_v44 }
0x1c56   :  { %v1504_v53 = vor.u32 1.1754944e-38, %v1503_v50  ;;  %vm1502_vm6 = vcmp.eq.f32.partialorder %v1501_v51, 8.507059e+37 }
0x1c5a   :  { %v2356_v45 = vpop.eup %2355 }
0x1c5b   :  { %v1493_v46 = vmul.f32 %v2356_v45, %v1491_v44  ;;  %vm1498_vm2 = vweird.f32 %v2356_v45 }
0x1c5c   :  { %vm1499_vm5 = vmor %vm1497_vm4, %vm1498_vm2 }
0x1c5d   :  { %v1494_v47 = vsub.f32 1.0, %v1493_v46 }
0x1c5f   :  { %v1495_v48 = vmul.f32 %v2356_v45, %v1494_v47 }
0x1c61   :  { %v1496_v49 = vadd.f32 %v2356_v45, %v1495_v48 }
0x1c63   :  { %v1500_v52 = vsel %vm1499_vm5, %v2356_v45, %v1496_v49 }
0x1c64   :  { %v1505_v55 = vsel %vm1502_vm6, %v1504_v53, %v1500_v52 }
0x1c65   :  { %v1512_v58 = vmul.f32 %v1510_v57, %v1505_v55 }
0x1caa   :  { %v1515_v54 = vpop.permute.xlu2 %1514 }
0x1cab   :  { %v1517_v56 = vmul.f32 %v1515_v54, %v1505_v55 }
0x1cad   :  { %1519 = vrot.lane.b32.xlu1 %v1517_v56, %s2488_s5 }
0x1d1f   :  { %v1520_v59 = vpop.permute.xlu1 %1519 }
0x1d20   :  { %v1522_v60 = vadd.f32 %v1520_v59, %v1512_v58 }
0x1d22   :  { %2357 = vtanh.f32 %v1522_v60  ;;  %1535 = vrot.lane.b32.xlu1 %v1522_v60, %s2489_s28 }
0x1d28   :  { %v2358_v61 = vpop.eup %2357 }
0x1d29   :  { %1525 = vrot.lane.b32.xlu2 %v2358_v61, %s2486_s30 }
0x1d83   :  { %v1526_v63 = vpop.permute.xlu2 %1525 }
0x1d84   :  { %v1528_v0 = vmul.f32 %v1526_v63, %v1505_v55 }
0x1d86   :  { %1530 = vrot.lane.b32.xlu0 %v1528_v0, %s2488_s5 }
0x1d94   :  { %v1536_v1 = vpop.permute.xlu1 %1535 }
0x1d95   :  { %1538 = vst.msk [vmem:[#allocation3 + $0x2] sm:$0x3] %vm66_vm1, %v1536_v1 }
0x1d9c   :  { %v1541_v2 = vld [vmem:[#allocation3 + $0x2] sm:$0x3] }
0x1d9d   :  { %1598 = vrot.lane.b32.xlu0 %v1541_v2, %s2488_s5 }
0x1df8   :  { %v1531_v4 = vpop.permute.xlu0 %1530 }
0x1df9   :  { %1533 = vst.msk [vmem:[#allocation2 + $0x2] sm:$0x3] %vm66_vm1, %v1531_v4 }
0x1dfa   :  { %1539 = vst.msk [vmem:[#allocation5 + $0x8] sm:$0x3] %vm66_vm1, %v1531_v4 }
0x1e00   :  { %v1540_v5 = vld [vmem:[#allocation2 + $0x2] sm:$0x3] }
0x1e01   :  { %v1543_v6 = vpack.c.bf16 %v1540_v5, %v1540_v5 }
0x1e03   :  { %2173 = vmatmul.msk.bf16.vlgmr.msra.gmra.mxu1 %vm186_vm3, %v1543_v6 }
0x1e0f   :  { %v1599_v27 = vpop.permute.xlu0 %1598 }
0x1e80   :  { %v1572_v8 = vpop.f32.mrf.mxu1 }
0x1e81   :  { %v1576_v9 = vadd.f32 %v1572_v8, %v1542_v7  ;;  %v2237_v8 = vld [vmem:[#allocation6] sm:$0xff] }
0x1e82   :  { %1748 = vmatpush.bf16.msra.mxu3 %v2237_v8 }
0x1e83   :  { %2359 = vtanh.f32 %v1576_v9  ;;  %v2174_v12 = vmul.f32 -1.442695, %v1576_v9 }
0x1e85   :  { %2361 = vpow2.f32 %v2174_v12  ;;  %v1720_v12 = vld [vmem:[#allocation4 + $0xe] sm:$0x3] }
0x1e88   :  { %v1574_v10 = vpop.f32.mrf.mxu1 }
0x1e89   :  { %v2360_v11 = vpop.eup %2359 }
0x1e8a   :  { %1603 = vrot.lane.b32.xlu2 %v2360_v11, %s2486_s30 }
0x1e8b   :  { %v2362_v13 = vpop.eup %2361 }
0x1e8c   :  { %v1580_v14 = vadd.f32 1.0, %v2362_v13 }
0x1e8e   :  { %2363 = vrcp.f32 %v1580_v14  ;;  %v1592_v20 = vand.u32 2147483648, %v1580_v14  ;;  %vm1586_vm15 = vweird.f32 %v1580_v14  ;;  %v1590_v21 = vand.u32 2147483647, %v1580_v14 }
0x1e90   :  { %v1593_v23 = vor.u32 1.1754944e-38, %v1592_v20  ;;  %vm1591_vm2 = vcmp.eq.f32.partialorder %v1590_v21, 8.507059e+37 }
0x1e94   :  { %v2364_v15 = vpop.eup %2363 }
0x1e95   :  { %v1582_v16 = vmul.f32 %v2364_v15, %v1580_v14  ;;  %vm1587_vm7 = vweird.f32 %v2364_v15 }
0x1e96   :  { %vm1588_vm0 = vmor %vm1586_vm15, %vm1587_vm7 }
0x1e97   :  { %v1583_v17 = vsub.f32 1.0, %v1582_v16 }
0x1e99   :  { %v1584_v18 = vmul.f32 %v2364_v15, %v1583_v17 }
0x1e9b   :  { %v1585_v19 = vadd.f32 %v2364_v15, %v1584_v18 }
0x1e9d   :  { %v1589_v22 = vsel %vm1588_vm0, %v2364_v15, %v1585_v19 }
0x1e9e   :  { %v1594_v25 = vsel %vm1591_vm2, %v1593_v23, %v1589_v22 }
0x1e9f   :  { %v1601_v28 = vmul.f32 %v1599_v27, %v1594_v25 }
0x1ee4   :  { %v1604_v24 = vpop.permute.xlu2 %1603 }
0x1ee5   :  { %v1606_v26 = vmul.f32 %v1604_v24, %v1594_v25 }
0x1ee7   :  { %1608 = vrot.lane.b32.xlu1 %v1606_v26, %s2488_s5 }
0x1f59   :  { %v1609_v29 = vpop.permute.xlu1 %1608 }
0x1f5a   :  { %v1611_v30 = vadd.f32 %v1609_v29, %v1601_v28 }
0x1f5c   :  { %2365 = vtanh.f32 %v1611_v30  ;;  %1624 = vrot.lane.b32.xlu1 %v1611_v30, %s2489_s28 }
0x1f62   :  { %v2366_v31 = vpop.eup %2365 }
0x1f63   :  { %1614 = vrot.lane.b32.xlu2 %v2366_v31, %s2486_s30 }
0x1fbd   :  { %v1615_v33 = vpop.permute.xlu2 %1614 }
0x1fbe   :  { %v1617_v34 = vmul.f32 %v1615_v33, %v1594_v25 }
0x1fc0   :  { %1619 = vrot.lane.b32.xlu0 %v1617_v34, %s2488_s5 }
0x1fce   :  { %v1625_v35 = vpop.permute.xlu1 %1624 }
0x1fcf   :  { %1627 = vst.msk [vmem:[#allocation3 + $0x2] sm:$0x3] %vm66_vm1, %v1625_v35 }
0x1fd6   :  { %v1630_v36 = vld [vmem:[#allocation3 + $0x2] sm:$0x3] }
0x1fd7   :  { %1687 = vrot.lane.b32.xlu0 %v1630_v36, %s2488_s5 }
0x2032   :  { %v1620_v38 = vpop.permute.xlu0 %1619 }
0x2033   :  { %1622 = vst.msk [vmem:[#allocation2 + $0x2] sm:$0x3] %vm66_vm1, %v1620_v38 }
0x2034   :  { %1628 = vst.msk [vmem:[#allocation5 + $0xa] sm:$0x3] %vm66_vm1, %v1620_v38 }
0x203a   :  { %v1629_v40 = vld [vmem:[#allocation2 + $0x2] sm:$0x3] }
0x203b   :  { %v1632_v41 = vpack.c.bf16 %v1629_v40, %v1629_v40 }
0x203d   :  { %2183 = vmatmul.msk.bf16.vlgmr.msra.gmra.mxu2 %vm186_vm3, %v1632_v41 }
0x2049   :  { %v1688_v62 = vpop.permute.xlu0 %1687 }
0x20c0   :  { %v1661_v43 = vpop.f32.mrf.mxu2 }
0x20c1   :  { %v1665_v44 = vadd.f32 %v1661_v43, %v1631_v42  ;;  %v2240_v43 = vld [vmem:[%s2887_s9 + $0x8] sm:$0xff] }
0x20c2   :  { %1883 = vmatpush.bf16.msrb.mxu0 %v2240_v43  ;;  %1948 = vmatpush.bf16.msrb.mxu1 %v2240_v43 }
0x20c3   :  { %2367 = vtanh.f32 %v1665_v44  ;;  %v2184_v47 = vmul.f32 -1.442695, %v1665_v44  ;;  %v2239_v44 = vld [vmem:[%s2887_s9] sm:$0xff] }
0x20c5   :  { %2369 = vpow2.f32 %v2184_v47  ;;  %v1814_v47 = vld [vmem:[#allocation5 + $0x4] sm:$0x1] }
0x20c6   :  { %1884 = vmatpush.bf16.msrb.mxu0 %v2239_v44  ;;  %1949 = vmatpush.bf16.msrb.mxu1 %v2239_v44 }
0x20c8   :  { %v1663_v45 = vpop.f32.mrf.mxu2 }
0x20c9   :  { %v2368_v46 = vpop.eup %2367  ;;  %v1813_v45 = vld [vmem:[#allocation5 + $0x2] sm:$0x1] }
0x20ca   :  { %1692 = vrot.lane.b32.xlu2 %v2368_v46, %s2486_s30  ;;  %v1893_v46 = vld [vmem:[#allocation5 + $0x3] sm:$0x1] }
0x20cb   :  { %v2370_v48 = vpop.eup %2369 }
0x20cc   :  { %v1669_v49 = vadd.f32 1.0, %v2370_v48  ;;  %v1815_v48 = vld [vmem:[#allocation5 + $0x6] sm:$0x1] }
0x20ce   :  { %2371 = vrcp.f32 %v1669_v49  ;;  %v1681_v55 = vand.u32 2147483648, %v1669_v49  ;;  %vm1675_vm5 = vweird.f32 %v1669_v49  ;;  %v1679_v56 = vand.u32 2147483647, %v1669_v49 }
0x20d0   :  { %v1682_v58 = vor.u32 1.1754944e-38, %v1681_v55  ;;  %vm1680_vm7 = vcmp.eq.f32.partialorder %v1679_v56, 8.507059e+37  ;;  %v1812_v55 = vld [vmem:[#allocation5] sm:$0x1]  ;;  %v1817_v56 = vld [vmem:[#allocation5 + $0xa] sm:$0x1] }
0x20d4   :  { %v2372_v50 = vpop.eup %2371 }
0x20d5   :  { %v1671_v51 = vmul.f32 %v2372_v50, %v1669_v49  ;;  %vm1676_vm4 = vweird.f32 %v2372_v50  ;;  %v1894_v49 = vld [vmem:[#allocation5 + $0x5] sm:$0x1] }
0x20d6   :  { %vm1677_vm6 = vmor %vm1675_vm5, %vm1676_vm4 }
0x20d7   :  { %v1672_v52 = vsub.f32 1.0, %v1671_v51  ;;  %v1821_v51 = vpack.c.bf16 %v1813_v45, %v1813_v45 }
0x20d9   :  { %v1673_v53 = vmul.f32 %v2372_v50, %v1672_v52  ;;  %v1895_v52 = vld [vmem:[#allocation5 + $0x7] sm:$0x1] }
0x20db   :  { %v1674_v54 = vadd.f32 %v2372_v50, %v1673_v53  ;;  %v1896_v53 = vld [vmem:[#allocation5 + $0x9] sm:$0x1] }
0x20dc   :  { %v1904_v3 = vpack.c.bf16 %v1896_v53, %v1896_v53 }
0x20dd   :  { %v1678_v57 = vsel %vm1677_vm6, %v2372_v50, %v1674_v54  ;;  %v1816_v50 = vld [vmem:[#allocation5 + $0x8] sm:$0x1]  ;;  %v1901_v54 = vpack.c.bf16 %v1893_v46, %v1893_v46 }
0x20de   :  { %v1683_v60 = vsel %vm1680_vm7, %v1682_v58, %v1678_v57  ;;  %v1822_v57 = vpack.c.bf16 %v1814_v47, %v1814_v47  ;;  %v1892_v58 = vld [vmem:[#allocation5 + $0x1] sm:$0x1] }
0x20df   :  { %v1690_v63 = vmul.f32 %v1688_v62, %v1683_v60  ;;  %v1900_v8 = vpack.c.bf16 %v1892_v58, %v1892_v58 }
0x2124   :  { %v1693_v59 = vpop.permute.xlu2 %1692 }
0x2125   :  { %v1695_v61 = vmul.f32 %v1693_v59, %v1683_v60  ;;  %v1897_v59 = vld [vmem:[#allocation5 + $0xb] sm:$0x1] }
0x2127   :  { %1697 = vrot.lane.b32.xlu1 %v1695_v61, %s2488_s5 }
0x2199   :  { %v1698_v0 = vpop.permute.xlu1 %1697 }
0x219a   :  { %v1700_v1 = vadd.f32 %v1698_v0, %v1690_v63  ;;  %v1823_v63 = vpack.c.bf16 %v1815_v48, %v1815_v48  ;;  %v1824_v0 = vpack.c.bf16 %v1816_v50, %v1816_v50 }
0x219c   :  { %2373 = vtanh.f32 %v1700_v1  ;;  %1713 = vrot.lane.b32.xlu1 %v1700_v1, %s2489_s28 }
0x21a2   :  { %v2374_v2 = vpop.eup %2373 }
0x21a3   :  { %1703 = vrot.lane.b32.xlu2 %v2374_v2, %s2486_s30  ;;  %v1903_v2 = vpack.c.bf16 %v1895_v52, %v1895_v52 }
0x21fd   :  { %v1704_v4 = vpop.permute.xlu2 %1703 }
0x21fe   :  { %v1706_v5 = vmul.f32 %v1704_v4, %v1683_v60  ;;  %v1902_v60 = vpack.c.bf16 %v1894_v49, %v1894_v49  ;;  %v1840_v4 = vunpack.c.l.b16 %v1821_v51 }
0x2200   :  { %1708 = vrot.lane.b32.xlu0 %v1706_v5, %s2488_s5  ;;  %v1917_v5 = vunpack.c.l.b16 %v1901_v54 }
0x220e   :  { %v1714_v6 = vpop.permute.xlu1 %1713 }
0x220f   :  { %1716 = vst.msk [vmem:[#allocation3 + $0x2] sm:$0x3] %vm66_vm1, %v1714_v6  ;;  %v1820_v6 = vpack.c.bf16 %v1812_v55, %v1812_v55 }
0x2216   :  { %v1719_v7 = vld [vmem:[#allocation3 + $0x2] sm:$0x3] }
0x2217   :  { %1776 = vrot.lane.b32.xlu0 %v1719_v7, %s2488_s5  ;;  %v1825_v7 = vpack.c.bf16 %v1817_v56, %v1817_v56 }
0x2272   :  { %v1709_v9 = vpop.permute.xlu0 %1708 }
0x2273   :  { %1711 = vst.msk [vmem:[#allocation2 + $0x2] sm:$0x3] %vm66_vm1, %v1709_v9 }
0x2274   :  { %1717 = vst.msk [vmem:[#allocation5 + $0xc] sm:$0x3] %vm66_vm1, %v1709_v9  ;;  %v1905_v9 = vpack.c.bf16 %v1897_v59, %v1897_v59 }
0x227a   :  { %v1718_v10 = vld [vmem:[#allocation2 + $0x2] sm:$0x3] }
0x227b   :  { %v1721_v11 = vpack.c.bf16 %v1718_v10, %v1718_v10  ;;  %v1818_v62 = vld [vmem:[#allocation5 + $0xc] sm:$0x1]  ;;  %v1898_v1 = vld [vmem:[#allocation5 + $0xd] sm:$0x1] }
0x227c   :  { %v1826_v10 = vpack.c.bf16 %v1818_v62, %v1818_v62 }
0x227d   :  { %2193 = vmatmul.msk.bf16.vlgmr.msra.gmra.mxu3 %vm186_vm3, %v1721_v11  ;;  %v1841_v11 = vunpack.c.l.b16 %v1822_v57 }
0x2289   :  { %v1777_v32 = vpop.permute.xlu0 %1776 }
0x2300   :  { %v1750_v13 = vpop.f32.mrf.mxu3 }
0x2301   :  { %v1754_v14 = vadd.f32 %v1750_v13, %v1720_v12  ;;  %v1906_v12 = vpack.c.bf16 %v1898_v1, %v1898_v1  ;;  %v1918_v13 = vunpack.c.l.b16 %v1902_v60 }
0x2303   :  { %2375 = vtanh.f32 %v1754_v14  ;;  %v2194_v17 = vmul.f32 -1.442695, %v1754_v14  ;;  %v1842_v14 = vunpack.c.l.b16 %v1823_v63 }
0x2305   :  { %2377 = vpow2.f32 %v2194_v17  ;;  %v1920_v17 = vunpack.c.l.b16 %v1904_v3 }
0x2308   :  { %v1752_v15 = vpop.f32.mrf.mxu3 }
0x2309   :  { %v2376_v16 = vpop.eup %2375  ;;  %v1843_v15 = vunpack.c.l.b16 %v1824_v0 }
0x230a   :  { %1781 = vrot.lane.b32.xlu2 %v2376_v16, %s2486_s30  ;;  %v1919_v16 = vunpack.c.l.b16 %v1903_v2 }
0x230b   :  { %v2378_v18 = vpop.eup %2377 }
0x230c   :  { %v1758_v19 = vadd.f32 1.0, %v2378_v18  ;;  %v1847_v18 = vrot.slane %v1840_v4, 7 }
0x230e   :  { %2379 = vrcp.f32 %v1758_v19  ;;  %v1770_v25 = vand.u32 2147483648, %v1758_v19  ;;  %vm1764_vm0 = vweird.f32 %v1758_v19  ;;  %v1768_v26 = vand.u32 2147483647, %v1758_v19 }
0x2310   :  { %v1771_v28 = vor.u32 1.1754944e-38, %v1770_v25  ;;  %vm1769_vm4 = vcmp.eq.f32.partialorder %v1768_v26, 8.507059e+37  ;;  %v1849_v25 = vrot.slane %v1841_v11, 6  ;;  %v1922_v26 = vunpack.c.l.b16 %v1906_v12 }
0x2312   :  { %v1934_v44 = vrot.slane %v1922_v26, 2 }
0x2314   :  { %v2380_v20 = vpop.eup %2379 }
0x2315   :  { %v1760_v21 = vmul.f32 %v2380_v20, %v1758_v19  ;;  %vm1765_vm15 = vweird.f32 %v2380_v20  ;;  %v1924_v19 = vrot.slane %v1917_v5, 7 }
0x2316   :  { %vm1766_vm2 = vmor %vm1764_vm0, %vm1765_vm15 }
0x2317   :  { %v1761_v22 = vsub.f32 1.0, %v1760_v21  ;;  %v1844_v21 = vunpack.c.l.b16 %v1825_v7 }
0x2319   :  { %v1762_v23 = vmul.f32 %v2380_v20, %v1761_v22  ;;  %v1916_v22 = vunpack.c.l.b16 %v1900_v8 }
0x231b   :  { %v1763_v24 = vadd.f32 %v2380_v20, %v1762_v23  ;;  %v1921_v23 = vunpack.c.l.b16 %v1905_v9 }
0x231d   :  { %v1767_v27 = vsel %vm1766_vm2, %v2380_v20, %v1763_v24  ;;  %v1839_v20 = vunpack.c.l.b16 %v1820_v6  ;;  %v1845_v24 = vunpack.c.l.b16 %v1826_v10 }
0x231e   :  { %v1772_v30 = vsel %vm1769_vm4, %v1771_v28, %v1767_v27  ;;  %v1926_v27 = vrot.slane %v1918_v13, 6  ;;  %v1851_v28 = vrot.slane %v1842_v14, 5 }
0x231f   :  { %v1779_v33 = vmul.f32 %v1777_v32, %v1772_v30 }
0x2364   :  { %v1782_v29 = vpop.permute.xlu2 %1781 }
0x2365   :  { %v1784_v31 = vmul.f32 %v1782_v29, %v1772_v30  ;;  %v1853_v29 = vrot.slane %v1843_v15, 4 }
0x2367   :  { %1786 = vrot.lane.b32.xlu1 %v1784_v31, %s2488_s5  ;;  %v1930_v31 = vrot.slane %v1920_v17, 4 }
0x236f   :  { %888 = vrot.lane.b32.xlu1 %v2713_v39, %s2489_s28 }
0x23d9   :  { %v1787_v34 = vpop.permute.xlu1 %1786 }
0x23da   :  { %v1789_v35 = vadd.f32 %v1787_v34, %v1779_v33  ;;  %v1848_v34 = vsel %vm935_vm8, %v1847_v18, %v1839_v20 }
0x23dc   :  { %2381 = vtanh.f32 %v1789_v35 }
0x23e1   :  { %v889_v36 = vpop.permute.xlu1 %888 }
0x23e2   :  { %v2382_v37 = vpop.eup %2381  ;;  %891 = vst.msk [vmem:[#allocation3] sm:$0x3] %vm66_vm1, %v889_v36  ;;  %v1925_v36 = vsel %vm935_vm8, %v1924_v19, %v1916_v22 }
0x23e3   :  { %1792 = vrot.lane.b32.xlu2 %v2382_v37, %s2486_s30  ;;  %v1927_v43 = vsel %vm938_vm9, %v1926_v27, %v1925_v36 }
0x23e9   :  { %v1964_v38 = vld [vmem:[#allocation3] sm:$0x3] }
0x23ea   :  { %1966 = vst.msk [vmem:[#allocation12] sm:$0x3] %vm66_vm1, %v1964_v38  ;;  %v1855_v38 = vrot.slane %v1844_v21, 3 }
0x23eb   :  { %1802 = vrot.lane.b32.xlu2 %v1789_v35, %s2489_s28 }
0x243d   :  { %v1793_v40 = vpop.permute.xlu2 %1792 }
0x243e   :  { %v1795_v41 = vmul.f32 %v1793_v40, %v1772_v30  ;;  %v1928_v30 = vrot.slane %v1919_v16, 5 }
0x2440   :  { %1797 = vrot.lane.b32.xlu0 %v1795_v41, %s2488_s5  ;;  %v1932_v41 = vrot.slane %v1921_v23, 3  ;;  %v1929_v48 = vsel %vm941_vm10, %v1928_v30, %v1927_v43 }
0x2441   :  { %v1931_v50 = vsel %vm944_vm11, %v1930_v31, %v1929_v48 }
0x2442   :  { %v1933_v53 = vsel %vm947_vm12, %v1932_v41, %v1931_v50 }
0x2443   :  { %v1935_v56 = vsel %vm950_vm13, %v1934_v44, %v1933_v53 }
0x2445   :  { %v1803_v39 = vpop.permute.xlu2 %1802 }
0x2446   :  { %1805 = vst.msk [vmem:[#allocation3 + $0x2] sm:$0x3] %vm66_vm1, %v1803_v39  ;;  %v1850_v39 = vsel %vm938_vm9, %v1849_v25, %v1848_v34 }
0x2447   :  { %v1852_v46 = vsel %vm941_vm10, %v1851_v28, %v1850_v39 }
0x2448   :  { %v1854_v49 = vsel %vm944_vm11, %v1853_v29, %v1852_v46 }
0x2449   :  { %v1856_v51 = vsel %vm947_vm12, %v1855_v38, %v1854_v49 }
0x244d   :  { %v1965_v42 = vld [vmem:[#allocation3 + $0x2] sm:$0x3] }
0x244e   :  { %1967 = vst.msk [vmem:[#allocation12 + $0x2] sm:$0x3] %vm66_vm1, %v1965_v42  ;;  %v1857_v42 = vrot.slane %v1845_v24, 2 }
0x2450   :  { %v1858_v55 = vsel %vm950_vm13, %v1857_v42, %v1856_v51 }
0x24b2   :  { %v1798_v61 = vpop.permute.xlu0 %1797 }
0x24b3   :  { %1800 = vst.msk [vmem:[#allocation2 + $0x2] sm:$0x3] %vm66_vm1, %v1798_v61 }
0x24b4   :  { %1806 = vst.msk [vmem:[#allocation5 + $0xe] sm:$0x3] %vm66_vm1, %v1798_v61  ;;  %v2254_v61 = vld [vmem:[%s2888_s10] ss:$0 sm:$0xff] }
0x24ba   :  { %v1961_v32 = vld [vmem:[#allocation2 + $0x2] sm:$0x3] }
0x24bb   :  { %v1819_v33 = vld [vmem:[#allocation5 + $0xe] sm:$0x1]  ;;  %v1899_v35 = vld [vmem:[#allocation5 + $0xf] sm:$0x1]  ;;  %1963 = vst.msk [vmem:[#allocation10 + $0x2] sm:$0x3] %vm66_vm1, %v1961_v32 }
0x24bc   :  { %v1827_v37 = vpack.c.bf16 %v1819_v33, %v1819_v33  ;;  %v1907_v40 = vpack.c.bf16 %v1899_v35, %v1899_v35  ;;  %1993 = dma.vmem_to_hbm [thread:$0]  %s1986_s15, 64, %s1988_s29, [#allocation11], %s2488_s5, %s2488_s5, %s2491_s16   ;;  %vm1890_vm1 = vcmask 130048  }
0x24bd   :  { %2006 = dma.vmem_to_hbm [thread:$0]  %s1999_s18, 64, %s2001_s20, [#allocation11], %s2488_s5, %s2488_s5, %s2491_s16  }
0x24be   :  { %v1846_v45 = vunpack.c.l.b16 %v1827_v37  ;;  %v1923_v47 = vunpack.c.l.b16 %v1907_v40  ;;  %s2495_s5 = smov 8  }
0x24c0   :  { %v1859_v52 = vrot.slane %v1846_v45, 1  ;;  %v1936_v54 = vrot.slane %v1923_v47, 1 }
0x24c2   :  { %v1860_v57 = vsel %vm953_vm14, %v1859_v52, %v1858_v55  ;;  %v1937_v58 = vsel %vm953_vm14, %v1936_v54, %v1935_v56 }
0x24c3   :  { %v1861_v59 = vpack.c.b16 %v1860_v57, %v1860_v57  ;;  %v1938_v60 = vpack.c.b16 %v1937_v58, %v1937_v58 }
0x24c5   :  { %2203 = vmatmul.msk.bf16.vlgmr.msrb.gmra.mxu0 %vm186_vm3, %v1861_v59  ;;  %2204 = vmatmul.msk.bf16.vlgmr.msrb.gmra.mxu1 %vm186_vm3, %v1938_v60 }
0x2542   :  { %v1886_v62 = vpop.f32.mrf.mxu0  ;;  %v1951_v63 = vpop.f32.mrf.mxu1 }
0x2543   :  { %v1887_v0 = vadd.f32 %v2254_v61, %v1886_v62  ;;  %v1952_v1 = vadd.f32 %v2254_v61, %v1951_v63 }
0x2545   :  { %1891 = vst.msk [vmem:[#allocation9] sm:$0xff] %vm1890_vm1, %v1887_v0 }
0x2546   :  { %1956 = vst.msk [vmem:[#allocation9 + $0x8] sm:$0xff] %vm1890_vm1, %v1952_v1 }
0x2547   :  { %1980 = dma.vmem_to_hbm [thread:$0]  %s1973_s22, 256, %s1975_s24, [#allocation8], %s2494_s13, %s2494_s13, %s2495_s5  }
0x254a   :  { %v1888_v2 = vpop.f32.mrf.mxu0  ;;  %v1953_v3 = vpop.f32.mrf.mxu1 }
0x254b   :  { %2481 = dma.done.wait [#allocation8], 256  }
0x254c   :  { %2482 = vsyncadd [#allocation8], 4294967040 }
0x254d   :  { %2483 = dma.done.wait [#allocation11], 128  }
0x254e   :  { %2484 = vsyncadd [#allocation11], 4294967168 }
0x254f   :  { %2019 = vsyncpa [#allocation7], 1 }
0x2550   :  { %2020 = vsyncpa [#allocation8], 1 }
0x2551   :  { %2021 = vsyncpa [#allocation11], 1 }

</bundles_post_ra>
